<compile_context>
chip_gen: v7x
topology: tpu7x:2x2x1
jax: 0.10.0
libtpu: 0.0.40
codegen_flags: <defaults>
</compile_context>

<pallas_src>
import functools

import jax
import jax.numpy as jnp
from jax.experimental import pallas as pl
from jax.experimental.pallas import tpu as pltpu


def _round_up(x, m):
    return (x + m - 1) // m * m


def _sepconv_kernel(x_hbm, wdw_ref, wpw_ref, bias_ref, o_ref,
                    xwin_ref, dw_ref, dma_sem, *,
                    kernel_size, stride, dilation, row_tile, w_out, h_in_tile):
    """Fused depthwise (BN-folded) conv + pointwise 1x1 conv for one tile.

    x_hbm   : (N, Hp, Wp, Cin_p)      padded input, raw HBM ref (pl.ANY)
    wdw_ref : (K, K, Cin_p)           depthwise weights (BN scale folded in)
    wpw_ref : (nJ, Cin_p, TN)         pointwise weights, fully VMEM-resident
    bias_ref: (nJ, 1, TN)             BN shift folded through the pointwise conv
    o_ref   : (TH, Wo_p, TN)          output tile
    xwin_ref: (Hin_t, Wp, Cin_p)      VMEM scratch: current input row window
    dw_ref  : (TH*Wo_p, Cin_p)        VMEM scratch: depthwise result
    dma_sem : scalar DMA semaphore
    """
    c_in = xwin_ref.shape[-1]
    b = pl.program_id(0)
    r = pl.program_id(1)
    j = pl.program_id(2)

    # ---- depthwise stage: once per (batch, row-tile); reused across Cout
    # ---- tiles (innermost, "arbitrary" grid axis — see correctness note).
    @pl.when(j == 0)
    def _():
        # Manual DMA of the overlapping row window (halo = k_eff - 1 rows).
        row0 = r * (row_tile * stride)
        cp = pltpu.make_async_copy(
            x_hbm.at[b, pl.ds(row0, h_in_tile)], xwin_ref, dma_sem)
        cp.start()
        cp.wait()

        w_taps = wdw_ref[...]                                 # (K, K, Cin_p)
        for hrow in range(row_tile):                          # static unroll
            acc = jnp.zeros((w_out, c_in), jnp.float32)       # a few vregs/row
            for kh in range(kernel_size):
                row = hrow * stride + kh * dilation
                for kw in range(kernel_size):
                    col0 = kw * dilation
                    if stride == 1:
                        patch = xwin_ref[row, pl.ds(col0, w_out), :]
                    else:
                        patch = xwin_ref[row, pl.ds(col0, w_out, stride), :]
                    acc = acc + (patch * w_taps[kh, kw, :]).astype(jnp.float32)
            dw_ref[pl.ds(hrow * w_out, w_out), :] = acc.astype(dw_ref.dtype)

    # ---- pointwise stage: (TH*Wo, Cin) @ (Cin, TN) on the MXU + folded bias.
    wpw_tile = wpw_ref[j]                                     # (Cin_p, TN)
    bias_tile = bias_ref[j].astype(jnp.float32)               # (1, TN)
    out = jnp.dot(dw_ref[...], wpw_tile, preferred_element_type=jnp.float32)
    out = out + bias_tile
    o_ref[...] = out.reshape(row_tile, w_out, -1).astype(o_ref.dtype)


def separable_conv2d(x_nchw, w_dw, gamma, beta, running_mean, running_var, w_pw,
                     kernel_size=3, stride=1, dilation=1, eps=1e-5,
                     row_tile=None):
    """Equivalent of SeparableConv2d.forward (NCHW in, NCHW out), eval-mode BN."""
    n, c_in, h, w = x_nchw.shape
    planes = w_pw.shape[0]
    orig_dtype = x_nchw.dtype

    # fixed_padding + output size
    k_eff = kernel_size + (kernel_size - 1) * (dilation - 1)
    pad_total = k_eff - 1
    pad_beg = pad_total // 2
    h_out = (h + pad_total - k_eff) // stride + 1
    w_out = (w + pad_total - k_eff) // stride + 1

    # ---- tiling / padding choices --------------------------------------
    lane = 128
    c_in_p = _round_up(c_in, lane)               # lane-dense Cin (MXU K dim)
    c_out_p = _round_up(planes, lane)            # lane-dense Cout
    cout_tile = 256 if c_out_p % 256 == 0 else 128
    n_cout_tiles = c_out_p // cout_tile
    w_out_p = _round_up(w_out, 8)                # keeps in-kernel reshapes free

    in_itemsize = x_nchw.dtype.itemsize
    mxu_dtype = jnp.bfloat16 if orig_dtype == jnp.bfloat16 else jnp.float32
    mxu_itemsize = 2 if mxu_dtype == jnp.bfloat16 else 4
    compute_dtype = jnp.bfloat16 if orig_dtype == jnp.bfloat16 else jnp.float32

    # Generation-aware VMEM capacity (conservative fallback = v7x-sized 64 MiB).
    try:
        vmem_cap = int(pltpu.get_tpu_info().vmem_capacity_bytes)
    except Exception:
        vmem_cap = 64 * 2**20
    vmem_cap_use = int(vmem_cap * 0.85)

    def _budget(th):
        h_in = (th - 1) * stride + k_eff
        wpq = (w_out_p - 1) * stride + k_eff
        wpw_width = max(wpq, w + pad_beg)
        xwin_b = h_in * wpw_width * c_in_p * in_itemsize          # manual window
        dw_b = th * w_out_p * c_in_p * mxu_itemsize               # dw scratch
        out_b = 2 * th * w_out_p * cout_tile * in_itemsize        # dbl-buffered out
        wpw_b = c_in_p * c_out_p * mxu_itemsize                   # resident weight
        wdw_b = kernel_size * kernel_size * c_in_p * 4
        bias_b = n_cout_tiles * cout_tile * 4
        return xwin_b + dw_b + out_b + wpw_b + wdw_b + bias_b

    # Pick output rows per step so the MXU M dim (th * Wo_p) is >= ~256, then
    # shrink if the VMEM budget is exceeded.
    if row_tile is not None:
        th = min(row_tile, h_out)
    else:
        target_m = 256
        th = min(h_out, max(1, -(-target_m // w_out_p)))
        while th > 1 and _budget(th) > vmem_cap_use:
            th = max(1, th // 2)

    n_row_tiles = -(-h_out // th)
    h_out_p = n_row_tiles * th
    h_in_tile = (th - 1) * stride + k_eff        # input rows needed per tile
    hp_req = (h_out_p - 1) * stride + k_eff      # padded-input extent actually read
    wp_req = (w_out_p - 1) * stride + k_eff

    # ---- layout: NCHW -> NHWC, spatial + channel zero padding ----------
    x_nhwc = jnp.transpose(x_nchw, (0, 2, 3, 1))
    xp = jnp.pad(
        x_nhwc,
        ((0, 0),
         (pad_beg, max(hp_req - h - pad_beg, 0)),
         (pad_beg, max(wp_req - w - pad_beg, 0)),
         (0, c_in_p - c_in)))
    wp_pad = xp.shape[2]

    # ---- fold BN (eval mode) into the weights ---------------------------
    inv_std = 1.0 / jnp.sqrt(running_var.astype(jnp.float32) + eps)
    scale = gamma.astype(jnp.float32) * inv_std                       # (Cin,)
    shift = beta.astype(jnp.float32) - running_mean.astype(jnp.float32) * scale

    # PyTorch depthwise weight (Cin, 1, K, K) -> (K, K, Cin), scaled by BN.
    wdw = jnp.transpose(w_dw[:, 0, :, :], (1, 2, 0)).astype(jnp.float32) * scale
    wdw = jnp.pad(wdw, ((0, 0), (0, 0), (0, c_in_p - c_in))).astype(compute_dtype)

    # PyTorch pointwise weight (Cout, Cin, 1, 1) -> (Cin, Cout); BN bias folded
    # through the pointwise conv into a per-Cout output bias.
    wpw = jnp.transpose(w_pw[:, :, 0, 0], (1, 0)).astype(jnp.float32)
    bias_out = (shift @ wpw).reshape(1, planes)                       # (1, Cout)
    wpw = jnp.pad(wpw, ((0, c_in_p - c_in), (0, c_out_p - planes))).astype(mxu_dtype)
    bias_out = jnp.pad(bias_out, ((0, 0), (0, c_out_p - planes)))

    # Split the Cout axis so the kernel picks its tile with a leading-axis
    # dynamic index (keeps the full weight resident in VMEM, one DMA total).
    wpw_tiled = wpw.reshape(c_in_p, n_cout_tiles, cout_tile).transpose(1, 0, 2)
    bias_tiled = bias_out.reshape(1, n_cout_tiles, cout_tile).transpose(1, 0, 2)

    # ---- explicit VMEM budget / limit -----------------------------------
    vmem_budget = _budget(th)
    vmem_limit = int(min(max(int(1.5 * vmem_budget), 32 * 2**20), vmem_cap_use))

    # ---- cost estimate (advisory for the XLA scheduler) ------------------
    flops = (2 * n * h_out * w_out * c_in * kernel_size * kernel_size
             + 2 * n * h_out * w_out * c_in * planes)
    bytes_accessed = (n * n_row_tiles * h_in_tile * wp_pad * c_in_p * in_itemsize
                      + n * h_out_p * w_out_p * c_out_p * in_itemsize
                      + c_in_p * c_out_p * mxu_itemsize)
    cost = pl.CostEstimate(flops=int(flops), transcendentals=0,
                           bytes_accessed=int(bytes_accessed))

    kernel = functools.partial(
        _sepconv_kernel, kernel_size=kernel_size, stride=stride,
        dilation=dilation, row_tile=th, w_out=w_out_p, h_in_tile=h_in_tile)

    out_nhwc = pl.pallas_call(
        kernel,
        out_shape=jax.ShapeDtypeStruct((n, h_out_p, w_out_p, c_out_p), orig_dtype),
        grid_spec=pltpu.PrefetchScalarGridSpec(
            num_scalar_prefetch=0,
            grid=(n, n_row_tiles, n_cout_tiles),
            in_specs=[
                # Padded input stays in HBM; the kernel DMAs its row window.
                pl.BlockSpec(memory_space=pl.ANY),
                # Depthwise taps: tiny, constant block -> resident.
                pl.BlockSpec((kernel_size, kernel_size, c_in_p),
                             lambda b, r, j: (0, 0, 0)),
                # Full pointwise weight / bias: constant block -> resident.
                pl.BlockSpec((n_cout_tiles, c_in_p, cout_tile),
                             lambda b, r, j: (0, 0, 0)),
                pl.BlockSpec((n_cout_tiles, 1, cout_tile),
                             lambda b, r, j: (0, 0, 0)),
            ],
            out_specs=pl.BlockSpec((None, th, w_out_p, cout_tile),
                                   lambda b, r, j: (b, r, 0, j)),
            scratch_shapes=[
                pltpu.VMEM((h_in_tile, wp_pad, c_in_p), orig_dtype),  # input window
                pltpu.VMEM((th * w_out_p, c_in_p), mxu_dtype),        # depthwise out
                pltpu.SemaphoreType.DMA(()),
            ],
        ),
        compiler_params=pltpu.CompilerParams(
            dimension_semantics=("parallel", "parallel", "arbitrary"),
            vmem_limit_bytes=vmem_limit),
        cost_estimate=cost,
    )(xp, wdw, wpw_tiled, bias_tiled)

    out = out_nhwc[:, :h_out, :w_out, :planes]
    return jnp.transpose(out, (0, 3, 1, 2))           # back to NCHW


def _reference(x, w_dw, gamma, beta, rm, rv, w_pw,
               kernel_size=3, stride=1, dilation=1, eps=1e-5):
    """Pure-JAX reference (lax convs) mirroring the PyTorch forward."""
    k_eff = kernel_size + (kernel_size - 1) * (dilation - 1)
    pad_total = k_eff - 1
    pad_beg = pad_total // 2
    pad_end = pad_total - pad_beg
    xp = jnp.pad(x, ((0, 0), (0, 0), (pad_beg, pad_end), (pad_beg, pad_end)))
    y = jax.lax.conv_general_dilated(
        xp, w_dw, window_strides=(stride, stride), padding='VALID',
        rhs_dilation=(dilation, dilation),
        dimension_numbers=('NCHW', 'OIHW', 'NCHW'),
        feature_group_count=x.shape[1])
    y = ((y - rm[None, :, None, None]) / jnp.sqrt(rv[None, :, None, None] + eps)
         * gamma[None, :, None, None] + beta[None, :, None, None])
    return jax.lax.conv_general_dilated(
        y, w_pw, (1, 1), 'VALID',
        dimension_numbers=('NCHW', 'OIHW', 'NCHW'))


if __name__ == "__main__":
    key = jax.random.PRNGKey(0)
    k1, k2, k3, k4, k5, k6 = jax.random.split(key, 6)

    N, C_IN, H, W = 2, 4, 16, 16
    PLANES, K = 8, 3

    x = jax.random.normal(k1, (N, C_IN, H, W), jnp.float32)
    w_dw = jax.random.normal(k2, (C_IN, 1, K, K), jnp.float32) * 0.1       # depthwise
    w_pw = jax.random.normal(k3, (PLANES, C_IN, 1, 1), jnp.float32) * 0.1  # pointwise
    gamma = 1.0 + 0.1 * jax.random.normal(k4, (C_IN,), jnp.float32)
    beta = 0.1 * jax.random.normal(k5, (C_IN,), jnp.float32)
    running_mean = 0.1 * jax.random.normal(k6, (C_IN,), jnp.float32)
    running_var = jnp.ones((C_IN,), jnp.float32) * 1.3

    # Case 1: default SeparableConv2d(kernel_size=3, stride=1, dilation=1)
    out = separable_conv2d(x, w_dw, gamma, beta, running_mean, running_var, w_pw)
    out = jax.block_until_ready(out)
    ref = _reference(x, w_dw, gamma, beta, running_mean, running_var, w_pw)
    assert out.shape == (N, PLANES, H, W), out.shape
    assert jnp.allclose(out, ref, atol=1e-4, rtol=1e-4), \
        float(jnp.max(jnp.abs(out - ref)))

    # Case 2: dilated variant (as used in DeepLab ASPP-style blocks)
    out2 = separable_conv2d(x, w_dw, gamma, beta, running_mean, running_var, w_pw,
                            kernel_size=3, stride=1, dilation=2)
    out2 = jax.block_until_ready(out2)
    ref2 = _reference(x, w_dw, gamma, beta, running_mean, running_var, w_pw,
                      kernel_size=3, stride=1, dilation=2)
    assert out2.shape == ref2.shape, (out2.shape, ref2.shape)
    assert jnp.allclose(out2, ref2, atol=1e-4, rtol=1e-4), \
        float(jnp.max(jnp.abs(out2 - ref2)))

    # Case 3: non-default row tiling (exercises multiple row tiles + manual DMA
    # window offsets).
    out3 = separable_conv2d(x, w_dw, gamma, beta, running_mean, running_var, w_pw,
                            row_tile=8)
    out3 = jax.block_until_ready(out3)
    assert jnp.allclose(out3, ref, atol=1e-4, rtol=1e-4), \
        float(jnp.max(jnp.abs(out3 - ref)))

    print("KERNEL_OK")
</pallas_src>

<mosaic_0001>
module attributes {stable_mosaic.version = 11 : i64} {
  func.func @_sepconv_kernel(%arg0: i32, %arg1: i32, %arg2: i32, %arg3: memref<2x18x18x128xf32, #tpu.memory_space<any>>, %arg4: memref<3x3x128xf32, #tpu.memory_space<vmem>>, %arg5: memref<1x128x128xf32, #tpu.memory_space<vmem>>, %arg6: memref<1x1x128xf32, #tpu.memory_space<vmem>>, %arg7: memref<1x16x16x128xf32, #tpu.memory_space<vmem>>, %arg8: memref<18x18x128xf32, #tpu.memory_space<vmem>>, %arg9: memref<256x128xf32, #tpu.memory_space<vmem>>, %arg10: memref<!tpu.dma_semaphore, #tpu.memory_space<semaphore_mem>>) attributes {dimension_semantics = [#tpu.dimension_semantics<parallel>, #tpu.dimension_semantics<parallel>, #tpu.dimension_semantics<arbitrary>], iteration_bounds = array<i64: 2, 1, 1>, scalar_prefetch = 0 : i64, scratch_operands = 3 : i64, tpu.core_type = #tpu.core_type<tc>, window_params = [{}, {pipeline_mode = #tpu.pipeline_mode<synchronous>, transform_indices = @transform_1, window_bounds = array<i64: 3, 3, 128>}, {pipeline_mode = #tpu.pipeline_mode<synchronous>, transform_indices = @transform_2, window_bounds = array<i64: 1, 128, 128>}, {pipeline_mode = #tpu.pipeline_mode<synchronous>, transform_indices = @transform_3, window_bounds = array<i64: 1, 1, 128>}, {transform_indices = @transform_4, window_bounds = array<i64: 1, 16, 16, 128>}]} {
    %c0_i32 = arith.constant 0 : i32
    %0 = arith.cmpi eq, %arg2, %c0_i32 : i32
    %1 = arith.extui %0 : i1 to i32
    %c0_i32_0 = arith.constant 0 : i32
    %2 = arith.cmpi ne, %1, %c0_i32_0 : i32
    scf.if %2 {
      %c16_i32 = arith.constant 16 : i32
      %17 = arith.muli %arg1, %c16_i32 : i32
      %c0_i32_10 = arith.constant 0 : i32
      %c0_i32_11 = arith.constant 0 : i32
      %18 = tpu.memref_slice %arg3[%arg0, %17, %c0_i32_10, %c0_i32_11] : memref<2x18x18x128xf32, #tpu.memory_space<any>> -> memref<1x18x18x128xf32, #tpu.memory_space<any>>
      %19 = tpu.memref_squeeze %18 : memref<1x18x18x128xf32, #tpu.memory_space<any>> -> memref<18x18x128xf32, #tpu.memory_space<any>>
      tpu.enqueue_dma source(%19 : memref<18x18x128xf32, #tpu.memory_space<any>>) target(%arg8 : memref<18x18x128xf32, #tpu.memory_space<vmem>>) target_semaphore(%arg10 : memref<!tpu.dma_semaphore, #tpu.memory_space<semaphore_mem>>)
      %c0_i32_12 = arith.constant 0 : i32
      %c0_i32_13 = arith.constant 0 : i32
      %20 = tpu.memref_slice %arg3[%arg0, %17, %c0_i32_12, %c0_i32_13] : memref<2x18x18x128xf32, #tpu.memory_space<any>> -> memref<1x18x18x128xf32, #tpu.memory_space<any>>
      %21 = tpu.memref_squeeze %20 : memref<1x18x18x128xf32, #tpu.memory_space<any>> -> memref<18x18x128xf32, #tpu.memory_space<any>>
      tpu.wait_dma2 semaphore(%arg10 : memref<!tpu.dma_semaphore, #tpu.memory_space<semaphore_mem>>) src(%21 : memref<18x18x128xf32, #tpu.memory_space<any>>) dst(%arg8 : memref<18x18x128xf32, #tpu.memory_space<vmem>>)
      %c0_14 = arith.constant 0 : index
      %c0_15 = arith.constant 0 : index
      %c0_16 = arith.constant 0 : index
      %22 = vector.load %arg4[%c0_14, %c0_15, %c0_16] : memref<3x3x128xf32, #tpu.memory_space<vmem>>, vector<3x3x128xf32>
      %cst_17 = arith.constant 0.000000e+00 : f32
      %23 = vector.broadcast %cst_17 : f32 to vector<16x128xf32>
      %c0_18 = arith.constant 0 : index
      %c0_19 = arith.constant 0 : index
      %c0_20 = arith.constant 0 : index
      %24 = vector.load %arg8[%c0_18, %c0_19, %c0_20] : memref<18x18x128xf32, #tpu.memory_space<vmem>>, vector<1x16x128xf32>
      %25 = vector.shape_cast %24 : vector<1x16x128xf32> to vector<16x128xf32>
      %26 = vector.extract_strided_slice %22 {offsets = [0, 0, 0], sizes = [1, 1, 128], strides = [1, 1, 1]} : vector<3x3x128xf32> to vector<1x1x128xf32>
      %27 = vector.shape_cast %26 : vector<1x1x128xf32> to vector<128xf32>
      %28 = vector.shape_cast %27 : vector<128xf32> to vector<1x128xf32>
      %29 = vector.broadcast %28 : vector<1x128xf32> to vector<16x128xf32>
      %30 = arith.mulf %25, %29 : vector<16x128xf32>
      %31 = arith.addf %23, %30 : vector<16x128xf32>
      %c0_21 = arith.constant 0 : index
      %c1 = arith.constant 1 : index
      %c0_22 = arith.constant 0 : index
      %32 = vector.load %arg8[%c0_21, %c1, %c0_22] : memref<18x18x128xf32, #tpu.memory_space<vmem>>, vector<1x16x128xf32>
      %33 = vector.shape_cast %32 : vector<1x16x128xf32> to vector<16x128xf32>
      %34 = vector.extract_strided_slice %22 {offsets = [0, 1, 0], sizes = [1, 1, 128], strides = [1, 1, 1]} : vector<3x3x128xf32> to vector<1x1x128xf32>
      %35 = vector.shape_cast %34 : vector<1x1x128xf32> to vector<128xf32>
      %36 = vector.shape_cast %35 : vector<128xf32> to vector<1x128xf32>
      %37 = vector.broadcast %36 : vector<1x128xf32> to vector<16x128xf32>
      %38 = arith.mulf %33, %37 : vector<16x128xf32>
      %39 = arith.addf %31, %38 : vector<16x128xf32>
      %c0_23 = arith.constant 0 : index
      %c2 = arith.constant 2 : index
      %c0_24 = arith.constant 0 : index
      %40 = vector.load %arg8[%c0_23, %c2, %c0_24] : memref<18x18x128xf32, #tpu.memory_space<vmem>>, vector<1x16x128xf32>
      %41 = vector.shape_cast %40 : vector<1x16x128xf32> to vector<16x128xf32>
      %42 = vector.extract_strided_slice %22 {offsets = [0, 2, 0], sizes = [1, 1, 128], strides = [1, 1, 1]} : vector<3x3x128xf32> to vector<1x1x128xf32>
      %43 = vector.shape_cast %42 : vector<1x1x128xf32> to vector<128xf32>
      %44 = vector.shape_cast %43 : vector<128xf32> to vector<1x128xf32>
      %45 = vector.broadcast %44 : vector<1x128xf32> to vector<16x128xf32>
      %46 = arith.mulf %41, %45 : vector<16x128xf32>
      %47 = arith.addf %39, %46 : vector<16x128xf32>
      %c1_25 = arith.constant 1 : index
      %c0_26 = arith.constant 0 : index
      %c0_27 = arith.constant 0 : index
      %48 = vector.load %arg8[%c1_25, %c0_26, %c0_27] : memref<18x18x128xf32, #tpu.memory_space<vmem>>, vector<1x16x128xf32>
      %49 = vector.shape_cast %48 : vector<1x16x128xf32> to vector<16x128xf32>
      %50 = vector.extract_strided_slice %22 {offsets = [1, 0, 0], sizes = [1, 1, 128], strides = [1, 1, 1]} : vector<3x3x128xf32> to vector<1x1x128xf32>
      %51 = vector.shape_cast %50 : vector<1x1x128xf32> to vector<128xf32>
      %52 = vector.shape_cast %51 : vector<128xf32> to vector<1x128xf32>
      %53 = vector.broadcast %52 : vector<1x128xf32> to vector<16x128xf32>
      %54 = arith.mulf %49, %53 : vector<16x128xf32>
      %55 = arith.addf %47, %54 : vector<16x128xf32>
      %c1_28 = arith.constant 1 : index
      %c1_29 = arith.constant 1 : index
      %c0_30 = arith.constant 0 : index
      %56 = vector.load %arg8[%c1_28, %c1_29, %c0_30] : memref<18x18x128xf32, #tpu.memory_space<vmem>>, vector<1x16x128xf32>
      %57 = vector.shape_cast %56 : vector<1x16x128xf32> to vector<16x128xf32>
      %58 = vector.extract_strided_slice %22 {offsets = [1, 1, 0], sizes = [1, 1, 128], strides = [1, 1, 1]} : vector<3x3x128xf32> to vector<1x1x128xf32>
      %59 = vector.shape_cast %58 : vector<1x1x128xf32> to vector<128xf32>
      %60 = vector.shape_cast %59 : vector<128xf32> to vector<1x128xf32>
      %61 = vector.broadcast %60 : vector<1x128xf32> to vector<16x128xf32>
      %62 = arith.mulf %57, %61 : vector<16x128xf32>
      %63 = arith.addf %55, %62 : vector<16x128xf32>
      %c1_31 = arith.constant 1 : index
      %c2_32 = arith.constant 2 : index
      %c0_33 = arith.constant 0 : index
      %64 = vector.load %arg8[%c1_31, %c2_32, %c0_33] : memref<18x18x128xf32, #tpu.memory_space<vmem>>, vector<1x16x128xf32>
      %65 = vector.shape_cast %64 : vector<1x16x128xf32> to vector<16x128xf32>
      %66 = vector.extract_strided_slice %22 {offsets = [1, 2, 0], sizes = [1, 1, 128], strides = [1, 1, 1]} : vector<3x3x128xf32> to vector<1x1x128xf32>
      %67 = vector.shape_cast %66 : vector<1x1x128xf32> to vector<128xf32>
      %68 = vector.shape_cast %67 : vector<128xf32> to vector<1x128xf32>
      %69 = vector.broadcast %68 : vector<1x128xf32> to vector<16x128xf32>
      %70 = arith.mulf %65, %69 : vector<16x128xf32>
      %71 = arith.addf %63, %70 : vector<16x128xf32>
      %c2_34 = arith.constant 2 : index
      %c0_35 = arith.constant 0 : index
      %c0_36 = arith.constant 0 : index
      %72 = vector.load %arg8[%c2_34, %c0_35, %c0_36] : memref<18x18x128xf32, #tpu.memory_space<vmem>>, vector<1x16x128xf32>
      %73 = vector.shape_cast %72 : vector<1x16x128xf32> to vector<16x128xf32>
      %74 = vector.extract_strided_slice %22 {offsets = [2, 0, 0], sizes = [1, 1, 128], strides = [1, 1, 1]} : vector<3x3x128xf32> to vector<1x1x128xf32>
      %75 = vector.shape_cast %74 : vector<1x1x128xf32> to vector<128xf32>
      %76 = vector.shape_cast %75 : vector<128xf32> to vector<1x128xf32>
      %77 = vector.broadcast %76 : vector<1x128xf32> to vector<16x128xf32>
      %78 = arith.mulf %73, %77 : vector<16x128xf32>
      %79 = arith.addf %71, %78 : vector<16x128xf32>
      %c2_37 = arith.constant 2 : index
      %c1_38 = arith.constant 1 : index
      %c0_39 = arith.constant 0 : index
      %80 = vector.load %arg8[%c2_37, %c1_38, %c0_39] : memref<18x18x128xf32, #tpu.memory_space<vmem>>, vector<1x16x128xf32>
      %81 = vector.shape_cast %80 : vector<1x16x128xf32> to vector<16x128xf32>
      %82 = vector.extract_strided_slice %22 {offsets = [2, 1, 0], sizes = [1, 1, 128], strides = [1, 1, 1]} : vector<3x3x128xf32> to vector<1x1x128xf32>
      %83 = vector.shape_cast %82 : vector<1x1x128xf32> to vector<128xf32>
      %84 = vector.shape_cast %83 : vector<128xf32> to vector<1x128xf32>
      %85 = vector.broadcast %84 : vector<1x128xf32> to vector<16x128xf32>
      %86 = arith.mulf %81, %85 : vector<16x128xf32>
      %87 = arith.addf %79, %86 : vector<16x128xf32>
      %c2_40 = arith.constant 2 : index
      %c2_41 = arith.constant 2 : index
      %c0_42 = arith.constant 0 : index
      %88 = vector.load %arg8[%c2_40, %c2_41, %c0_42] : memref<18x18x128xf32, #tpu.memory_space<vmem>>, vector<1x16x128xf32>
      %89 = vector.shape_cast %88 : vector<1x16x128xf32> to vector<16x128xf32>
      %90 = vector.extract_strided_slice %22 {offsets = [2, 2, 0], sizes = [1, 1, 128], strides = [1, 1, 1]} : vector<3x3x128xf32> to vector<1x1x128xf32>
      %91 = vector.shape_cast %90 : vector<1x1x128xf32> to vector<128xf32>
      %92 = vector.shape_cast %91 : vector<128xf32> to vector<1x128xf32>
      %93 = vector.broadcast %92 : vector<1x128xf32> to vector<16x128xf32>
      %94 = arith.mulf %89, %93 : vector<16x128xf32>
      %95 = arith.addf %87, %94 : vector<16x128xf32>
      %c0_43 = arith.constant 0 : index
      %c0_44 = arith.constant 0 : index
      %96 = vector.load %arg9[%c0_43, %c0_44] : memref<256x128xf32, #tpu.memory_space<vmem>>, vector<16x128xf32>
      tpu.vector_store %arg9[%c0_43, %c0_44], %95 {strides = array<i32>} : memref<256x128xf32, #tpu.memory_space<vmem>>, vector<16x128xf32>,
      %cst_45 = arith.constant 0.000000e+00 : f32
      %97 = vector.broadcast %cst_45 : f32 to vector<16x128xf32>
      %c1_46 = arith.constant 1 : index
      %c0_47 = arith.constant 0 : index
      %c0_48 = arith.constant 0 : index
      %98 = vector.load %arg8[%c1_46, %c0_47, %c0_48] : memref<18x18x128xf32, #tpu.memory_space<vmem>>, vector<1x16x128xf32>
      %99 = vector.shape_cast %98 : vector<1x16x128xf32> to vector<16x128xf32>
      %100 = vector.extract_strided_slice %22 {offsets = [0, 0, 0], sizes = [1, 1, 128], strides = [1, 1, 1]} : vector<3x3x128xf32> to vector<1x1x128xf32>
      %101 = vector.shape_cast %100 : vector<1x1x128xf32> to vector<128xf32>
      %102 = vector.shape_cast %101 : vector<128xf32> to vector<1x128xf32>
      %103 = vector.broadcast %102 : vector<1x128xf32> to vector<16x128xf32>
      %104 = arith.mulf %99, %103 : vector<16x128xf32>
      %105 = arith.addf %97, %104 : vector<16x128xf32>
      %c1_49 = arith.constant 1 : index
      %c1_50 = arith.constant 1 : index
      %c0_51 = arith.constant 0 : index
      %106 = vector.load %arg8[%c1_49, %c1_50, %c0_51] : memref<18x18x128xf32, #tpu.memory_space<vmem>>, vector<1x16x128xf32>
      %107 = vector.shape_cast %106 : vector<1x16x128xf32> to vector<16x128xf32>
      %108 = vector.extract_strided_slice %22 {offsets = [0, 1, 0], sizes = [1, 1, 128], strides = [1, 1, 1]} : vector<3x3x128xf32> to vector<1x1x128xf32>
      %109 = vector.shape_cast %108 : vector<1x1x128xf32> to vector<128xf32>
      %110 = vector.shape_cast %109 : vector<128xf32> to vector<1x128xf32>
      %111 = vector.broadcast %110 : vector<1x128xf32> to vector<16x128xf32>
      %112 = arith.mulf %107, %111 : vector<16x128xf32>
      %113 = arith.addf %105, %112 : vector<16x128xf32>
      %c1_52 = arith.constant 1 : index
      %c2_53 = arith.constant 2 : index
      %c0_54 = arith.constant 0 : index
      %114 = vector.load %arg8[%c1_52, %c2_53, %c0_54] : memref<18x18x128xf32, #tpu.memory_space<vmem>>, vector<1x16x128xf32>
      %115 = vector.shape_cast %114 : vector<1x16x128xf32> to vector<16x128xf32>
      %116 = vector.extract_strided_slice %22 {offsets = [0, 2, 0], sizes = [1, 1, 128], strides = [1, 1, 1]} : vector<3x3x128xf32> to vector<1x1x128xf32>
      %117 = vector.shape_cast %116 : vector<1x1x128xf32> to vector<128xf32>
      %118 = vector.shape_cast %117 : vector<128xf32> to vector<1x128xf32>
      %119 = vector.broadcast %118 : vector<1x128xf32> to vector<16x128xf32>
      %120 = arith.mulf %115, %119 : vector<16x128xf32>
      %121 = arith.addf %113, %120 : vector<16x128xf32>
      %c2_55 = arith.constant 2 : index
      %c0_56 = arith.constant 0 : index
      %c0_57 = arith.constant 0 : index
      %122 = vector.load %arg8[%c2_55, %c0_56, %c0_57] : memref<18x18x128xf32, #tpu.memory_space<vmem>>, vector<1x16x128xf32>
      %123 = vector.shape_cast %122 : vector<1x16x128xf32> to vector<16x128xf32>
      %124 = vector.extract_strided_slice %22 {offsets = [1, 0, 0], sizes = [1, 1, 128], strides = [1, 1, 1]} : vector<3x3x128xf32> to vector<1x1x128xf32>
      %125 = vector.shape_cast %124 : vector<1x1x128xf32> to vector<128xf32>
      %126 = vector.shape_cast %125 : vector<128xf32> to vector<1x128xf32>
      %127 = vector.broadcast %126 : vector<1x128xf32> to vector<16x128xf32>
      %128 = arith.mulf %123, %127 : vector<16x128xf32>
      %129 = arith.addf %121, %128 : vector<16x128xf32>
      %c2_58 = arith.constant 2 : index
      %c1_59 = arith.constant 1 : index
      %c0_60 = arith.constant 0 : index
      %130 = vector.load %arg8[%c2_58, %c1_59, %c0_60] : memref<18x18x128xf32, #tpu.memory_space<vmem>>, vector<1x16x128xf32>
      %131 = vector.shape_cast %130 : vector<1x16x128xf32> to vector<16x128xf32>
      %132 = vector.extract_strided_slice %22 {offsets = [1, 1, 0], sizes = [1, 1, 128], strides = [1, 1, 1]} : vector<3x3x128xf32> to vector<1x1x128xf32>
      %133 = vector.shape_cast %132 : vector<1x1x128xf32> to vector<128xf32>
      %134 = vector.shape_cast %133 : vector<128xf32> to vector<1x128xf32>
      %135 = vector.broadcast %134 : vector<1x128xf32> to vector<16x128xf32>
      %136 = arith.mulf %131, %135 : vector<16x128xf32>
      %137 = arith.addf %129, %136 : vector<16x128xf32>
      %c2_61 = arith.constant 2 : index
      %c2_62 = arith.constant 2 : index
      %c0_63 = arith.constant 0 : index
      %138 = vector.load %arg8[%c2_61, %c2_62, %c0_63] : memref<18x18x128xf32, #tpu.memory_space<vmem>>, vector<1x16x128xf32>
      %139 = vector.shape_cast %138 : vector<1x16x128xf32> to vector<16x128xf32>
      %140 = vector.extract_strided_slice %22 {offsets = [1, 2, 0], sizes = [1, 1, 128], strides = [1, 1, 1]} : vector<3x3x128xf32> to vector<1x1x128xf32>
      %141 = vector.shape_cast %140 : vector<1x1x128xf32> to vector<128xf32>
      %142 = vector.shape_cast %141 : vector<128xf32> to vector<1x128xf32>
      %143 = vector.broadcast %142 : vector<1x128xf32> to vector<16x128xf32>
      %144 = arith.mulf %139, %143 : vector<16x128xf32>
      %145 = arith.addf %137, %144 : vector<16x128xf32>
      %c3 = arith.constant 3 : index
      %c0_64 = arith.constant 0 : index
      %c0_65 = arith.constant 0 : index
      %146 = vector.load %arg8[%c3, %c0_64, %c0_65] : memref<18x18x128xf32, #tpu.memory_space<vmem>>, vector<1x16x128xf32>
      %147 = vector.shape_cast %146 : vector<1x16x128xf32> to vector<16x128xf32>
      %148 = vector.extract_strided_slice %22 {offsets = [2, 0, 0], sizes = [1, 1, 128], strides = [1, 1, 1]} : vector<3x3x128xf32> to vector<1x1x128xf32>
      %149 = vector.shape_cast %148 : vector<1x1x128xf32> to vector<128xf32>
      %150 = vector.shape_cast %149 : vector<128xf32> to vector<1x128xf32>
      %151 = vector.broadcast %150 : vector<1x128xf32> to vector<16x128xf32>
      %152 = arith.mulf %147, %151 : vector<16x128xf32>
      %153 = arith.addf %145, %152 : vector<16x128xf32>
      %c3_66 = arith.constant 3 : index
      %c1_67 = arith.constant 1 : index
      %c0_68 = arith.constant 0 : index
      %154 = vector.load %arg8[%c3_66, %c1_67, %c0_68] : memref<18x18x128xf32, #tpu.memory_space<vmem>>, vector<1x16x128xf32>
      %155 = vector.shape_cast %154 : vector<1x16x128xf32> to vector<16x128xf32>
      %156 = vector.extract_strided_slice %22 {offsets = [2, 1, 0], sizes = [1, 1, 128], strides = [1, 1, 1]} : vector<3x3x128xf32> to vector<1x1x128xf32>
      %157 = vector.shape_cast %156 : vector<1x1x128xf32> to vector<128xf32>
      %158 = vector.shape_cast %157 : vector<128xf32> to vector<1x128xf32>
      %159 = vector.broadcast %158 : vector<1x128xf32> to vector<16x128xf32>
      %160 = arith.mulf %155, %159 : vector<16x128xf32>
      %161 = arith.addf %153, %160 : vector<16x128xf32>
      %c3_69 = arith.constant 3 : index
      %c2_70 = arith.constant 2 : index
      %c0_71 = arith.constant 0 : index
      %162 = vector.load %arg8[%c3_69, %c2_70, %c0_71] : memref<18x18x128xf32, #tpu.memory_space<vmem>>, vector<1x16x128xf32>
      %163 = vector.shape_cast %162 : vector<1x16x128xf32> to vector<16x128xf32>
      %164 = vector.extract_strided_slice %22 {offsets = [2, 2, 0], sizes = [1, 1, 128], strides = [1, 1, 1]} : vector<3x3x128xf32> to vector<1x1x128xf32>
      %165 = vector.shape_cast %164 : vector<1x1x128xf32> to vector<128xf32>
      %166 = vector.shape_cast %165 : vector<128xf32> to vector<1x128xf32>
      %167 = vector.broadcast %166 : vector<1x128xf32> to vector<16x128xf32>
      %168 = arith.mulf %163, %167 : vector<16x128xf32>
      %169 = arith.addf %161, %168 : vector<16x128xf32>
      %c16 = arith.constant 16 : index
      %c0_72 = arith.constant 0 : index
      %170 = vector.load %arg9[%c16, %c0_72] : memref<256x128xf32, #tpu.memory_space<vmem>>, vector<16x128xf32>
      tpu.vector_store %arg9[%c16, %c0_72], %169 {strides = array<i32>} : memref<256x128xf32, #tpu.memory_space<vmem>>, vector<16x128xf32>,
      %cst_73 = arith.constant 0.000000e+00 : f32
      %171 = vector.broadcast %cst_73 : f32 to vector<16x128xf32>
      %c2_74 = arith.constant 2 : index
      %c0_75 = arith.constant 0 : index
      %c0_76 = arith.constant 0 : index
      %172 = vector.load %arg8[%c2_74, %c0_75, %c0_76] : memref<18x18x128xf32, #tpu.memory_space<vmem>>, vector<1x16x128xf32>
      %173 = vector.shape_cast %172 : vector<1x16x128xf32> to vector<16x128xf32>
      %174 = vector.extract_strided_slice %22 {offsets = [0, 0, 0], sizes = [1, 1, 128], strides = [1, 1, 1]} : vector<3x3x128xf32> to vector<1x1x128xf32>
      %175 = vector.shape_cast %174 : vector<1x1x128xf32> to vector<128xf32>
      %176 = vector.shape_cast %175 : vector<128xf32> to vector<1x128xf32>
      %177 = vector.broadcast %176 : vector<1x128xf32> to vector<16x128xf32>
      %178 = arith.mulf %173, %177 : vector<16x128xf32>
      %179 = arith.addf %171, %178 : vector<16x128xf32>
      %c2_77 = arith.constant 2 : index
      %c1_78 = arith.constant 1 : index
      %c0_79 = arith.constant 0 : index
      %180 = vector.load %arg8[%c2_77, %c1_78, %c0_79] : memref<18x18x128xf32, #tpu.memory_space<vmem>>, vector<1x16x128xf32>
      %181 = vector.shape_cast %180 : vector<1x16x128xf32> to vector<16x128xf32>
      %182 = vector.extract_strided_slice %22 {offsets = [0, 1, 0], sizes = [1, 1, 128], strides = [1, 1, 1]} : vector<3x3x128xf32> to vector<1x1x128xf32>
      %183 = vector.shape_cast %182 : vector<1x1x128xf32> to vector<128xf32>
      %184 = vector.shape_cast %183 : vector<128xf32> to vector<1x128xf32>
      %185 = vector.broadcast %184 : vector<1x128xf32> to vector<16x128xf32>
      %186 = arith.mulf %181, %185 : vector<16x128xf32>
      %187 = arith.addf %179, %186 : vector<16x128xf32>
      %c2_80 = arith.constant 2 : index
      %c2_81 = arith.constant 2 : index
      %c0_82 = arith.constant 0 : index
      %188 = vector.load %arg8[%c2_80, %c2_81, %c0_82] : memref<18x18x128xf32, #tpu.memory_space<vmem>>, vector<1x16x128xf32>
      %189 = vector.shape_cast %188 : vector<1x16x128xf32> to vector<16x128xf32>
      %190 = vector.extract_strided_slice %22 {offsets = [0, 2, 0], sizes = [1, 1, 128], strides = [1, 1, 1]} : vector<3x3x128xf32> to vector<1x1x128xf32>
      %191 = vector.shape_cast %190 : vector<1x1x128xf32> to vector<128xf32>
      %192 = vector.shape_cast %191 : vector<128xf32> to vector<1x128xf32>
      %193 = vector.broadcast %192 : vector<1x128xf32> to vector<16x128xf32>
      %194 = arith.mulf %189, %193 : vector<16x128xf32>
      %195 = arith.addf %187, %194 : vector<16x128xf32>
      %c3_83 = arith.constant 3 : index
      %c0_84 = arith.constant 0 : index
      %c0_85 = arith.constant 0 : index
      %196 = vector.load %arg8[%c3_83, %c0_84, %c0_85] : memref<18x18x128xf32, #tpu.memory_space<vmem>>, vector<1x16x128xf32>
      %197 = vector.shape_cast %196 : vector<1x16x128xf32> to vector<16x128xf32>
      %198 = vector.extract_strided_slice %22 {offsets = [1, 0, 0], sizes = [1, 1, 128], strides = [1, 1, 1]} : vector<3x3x128xf32> to vector<1x1x128xf32>
      %199 = vector.shape_cast %198 : vector<1x1x128xf32> to vector<128xf32>
      %200 = vector.shape_cast %199 : vector<128xf32> to vector<1x128xf32>
      %201 = vector.broadcast %200 : vector<1x128xf32> to vector<16x128xf32>
      %202 = arith.mulf %197, %201 : vector<16x128xf32>
      %203 = arith.addf %195, %202 : vector<16x128xf32>
      %c3_86 = arith.constant 3 : index
      %c1_87 = arith.constant 1 : index
      %c0_88 = arith.constant 0 : index
      %204 = vector.load %arg8[%c3_86, %c1_87, %c0_88] : memref<18x18x128xf32, #tpu.memory_space<vmem>>, vector<1x16x128xf32>
      %205 = vector.shape_cast %204 : vector<1x16x128xf32> to vector<16x128xf32>
      %206 = vector.extract_strided_slice %22 {offsets = [1, 1, 0], sizes = [1, 1, 128], strides = [1, 1, 1]} : vector<3x3x128xf32> to vector<1x1x128xf32>
      %207 = vector.shape_cast %206 : vector<1x1x128xf32> to vector<128xf32>
      %208 = vector.shape_cast %207 : vector<128xf32> to vector<1x128xf32>
      %209 = vector.broadcast %208 : vector<1x128xf32> to vector<16x128xf32>
      %210 = arith.mulf %205, %209 : vector<16x128xf32>
      %211 = arith.addf %203, %210 : vector<16x128xf32>
      %c3_89 = arith.constant 3 : index
      %c2_90 = arith.constant 2 : index
      %c0_91 = arith.constant 0 : index
      %212 = vector.load %arg8[%c3_89, %c2_90, %c0_91] : memref<18x18x128xf32, #tpu.memory_space<vmem>>, vector<1x16x128xf32>
      %213 = vector.shape_cast %212 : vector<1x16x128xf32> to vector<16x128xf32>
      %214 = vector.extract_strided_slice %22 {offsets = [1, 2, 0], sizes = [1, 1, 128], strides = [1, 1, 1]} : vector<3x3x128xf32> to vector<1x1x128xf32>
      %215 = vector.shape_cast %214 : vector<1x1x128xf32> to vector<128xf32>
      %216 = vector.shape_cast %215 : vector<128xf32> to vector<1x128xf32>
      %217 = vector.broadcast %216 : vector<1x128xf32> to vector<16x128xf32>
      %218 = arith.mulf %213, %217 : vector<16x128xf32>
      %219 = arith.addf %211, %218 : vector<16x128xf32>
      %c4 = arith.constant 4 : index
      %c0_92 = arith.constant 0 : index
      %c0_93 = arith.constant 0 : index
      %220 = vector.load %arg8[%c4, %c0_92, %c0_93] : memref<18x18x128xf32, #tpu.memory_space<vmem>>, vector<1x16x128xf32>
      %221 = vector.shape_cast %220 : vector<1x16x128xf32> to vector<16x128xf32>
      %222 = vector.extract_strided_slice %22 {offsets = [2, 0, 0], sizes = [1, 1, 128], strides = [1, 1, 1]} : vector<3x3x128xf32> to vector<1x1x128xf32>
      %223 = vector.shape_cast %222 : vector<1x1x128xf32> to vector<128xf32>
      %224 = vector.shape_cast %223 : vector<128xf32> to vector<1x128xf32>
      %225 = vector.broadcast %224 : vector<1x128xf32> to vector<16x128xf32>
      %226 = arith.mulf %221, %225 : vector<16x128xf32>
      %227 = arith.addf %219, %226 : vector<16x128xf32>
      %c4_94 = arith.constant 4 : index
      %c1_95 = arith.constant 1 : index
      %c0_96 = arith.constant 0 : index
      %228 = vector.load %arg8[%c4_94, %c1_95, %c0_96] : memref<18x18x128xf32, #tpu.memory_space<vmem>>, vector<1x16x128xf32>
      %229 = vector.shape_cast %228 : vector<1x16x128xf32> to vector<16x128xf32>
      %230 = vector.extract_strided_slice %22 {offsets = [2, 1, 0], sizes = [1, 1, 128], strides = [1, 1, 1]} : vector<3x3x128xf32> to vector<1x1x128xf32>
      %231 = vector.shape_cast %230 : vector<1x1x128xf32> to vector<128xf32>
      %232 = vector.shape_cast %231 : vector<128xf32> to vector<1x128xf32>
      %233 = vector.broadcast %232 : vector<1x128xf32> to vector<16x128xf32>
      %234 = arith.mulf %229, %233 : vector<16x128xf32>
      %235 = arith.addf %227, %234 : vector<16x128xf32>
      %c4_97 = arith.constant 4 : index
      %c2_98 = arith.constant 2 : index
      %c0_99 = arith.constant 0 : index
      %236 = vector.load %arg8[%c4_97, %c2_98, %c0_99] : memref<18x18x128xf32, #tpu.memory_space<vmem>>, vector<1x16x128xf32>
      %237 = vector.shape_cast %236 : vector<1x16x128xf32> to vector<16x128xf32>
      %238 = vector.extract_strided_slice %22 {offsets = [2, 2, 0], sizes = [1, 1, 128], strides = [1, 1, 1]} : vector<3x3x128xf32> to vector<1x1x128xf32>
      %239 = vector.shape_cast %238 : vector<1x1x128xf32> to vector<128xf32>
      %240 = vector.shape_cast %239 : vector<128xf32> to vector<1x128xf32>
      %241 = vector.broadcast %240 : vector<1x128xf32> to vector<16x128xf32>
      %242 = arith.mulf %237, %241 : vector<16x128xf32>
      %243 = arith.addf %235, %242 : vector<16x128xf32>
      %c32 = arith.constant 32 : index
      %c0_100 = arith.constant 0 : index
      %244 = vector.load %arg9[%c32, %c0_100] : memref<256x128xf32, #tpu.memory_space<vmem>>, vector<16x128xf32>
      tpu.vector_store %arg9[%c32, %c0_100], %243 {strides = array<i32>} : memref<256x128xf32, #tpu.memory_space<vmem>>, vector<16x128xf32>,
      %cst_101 = arith.constant 0.000000e+00 : f32
      %245 = vector.broadcast %cst_101 : f32 to vector<16x128xf32>
      %c3_102 = arith.constant 3 : index
      %c0_103 = arith.constant 0 : index
      %c0_104 = arith.constant 0 : index
      %246 = vector.load %arg8[%c3_102, %c0_103, %c0_104] : memref<18x18x128xf32, #tpu.memory_space<vmem>>, vector<1x16x128xf32>
      %247 = vector.shape_cast %246 : vector<1x16x128xf32> to vector<16x128xf32>
      %248 = vector.extract_strided_slice %22 {offsets = [0, 0, 0], sizes = [1, 1, 128], strides = [1, 1, 1]} : vector<3x3x128xf32> to vector<1x1x128xf32>
      %249 = vector.shape_cast %248 : vector<1x1x128xf32> to vector<128xf32>
      %250 = vector.shape_cast %249 : vector<128xf32> to vector<1x128xf32>
      %251 = vector.broadcast %250 : vector<1x128xf32> to vector<16x128xf32>
      %252 = arith.mulf %247, %251 : vector<16x128xf32>
      %253 = arith.addf %245, %252 : vector<16x128xf32>
      %c3_105 = arith.constant 3 : index
      %c1_106 = arith.constant 1 : index
      %c0_107 = arith.constant 0 : index
      %254 = vector.load %arg8[%c3_105, %c1_106, %c0_107] : memref<18x18x128xf32, #tpu.memory_space<vmem>>, vector<1x16x128xf32>
      %255 = vector.shape_cast %254 : vector<1x16x128xf32> to vector<16x128xf32>
      %256 = vector.extract_strided_slice %22 {offsets = [0, 1, 0], sizes = [1, 1, 128], strides = [1, 1, 1]} : vector<3x3x128xf32> to vector<1x1x128xf32>
      %257 = vector.shape_cast %256 : vector<1x1x128xf32> to vector<128xf32>
      %258 = vector.shape_cast %257 : vector<128xf32> to vector<1x128xf32>
      %259 = vector.broadcast %258 : vector<1x128xf32> to vector<16x128xf32>
      %260 = arith.mulf %255, %259 : vector<16x128xf32>
      %261 = arith.addf %253, %260 : vector<16x128xf32>
      %c3_108 = arith.constant 3 : index
      %c2_109 = arith.constant 2 : index
      %c0_110 = arith.constant 0 : index
      %262 = vector.load %arg8[%c3_108, %c2_109, %c0_110] : memref<18x18x128xf32, #tpu.memory_space<vmem>>, vector<1x16x128xf32>
      %263 = vector.shape_cast %262 : vector<1x16x128xf32> to vector<16x128xf32>
      %264 = vector.extract_strided_slice %22 {offsets = [0, 2, 0], sizes = [1, 1, 128], strides = [1, 1, 1]} : vector<3x3x128xf32> to vector<1x1x128xf32>
      %265 = vector.shape_cast %264 : vector<1x1x128xf32> to vector<128xf32>
      %266 = vector.shape_cast %265 : vector<128xf32> to vector<1x128xf32>
      %267 = vector.broadcast %266 : vector<1x128xf32> to vector<16x128xf32>
      %268 = arith.mulf %263, %267 : vector<16x128xf32>
      %269 = arith.addf %261, %268 : vector<16x128xf32>
      %c4_111 = arith.constant 4 : index
      %c0_112 = arith.constant 0 : index
      %c0_113 = arith.constant 0 : index
      %270 = vector.load %arg8[%c4_111, %c0_112, %c0_113] : memref<18x18x128xf32, #tpu.memory_space<vmem>>, vector<1x16x128xf32>
      %271 = vector.shape_cast %270 : vector<1x16x128xf32> to vector<16x128xf32>
      %272 = vector.extract_strided_slice %22 {offsets = [1, 0, 0], sizes = [1, 1, 128], strides = [1, 1, 1]} : vector<3x3x128xf32> to vector<1x1x128xf32>
      %273 = vector.shape_cast %272 : vector<1x1x128xf32> to vector<128xf32>
      %274 = vector.shape_cast %273 : vector<128xf32> to vector<1x128xf32>
      %275 = vector.broadcast %274 : vector<1x128xf32> to vector<16x128xf32>
      %276 = arith.mulf %271, %275 : vector<16x128xf32>
      %277 = arith.addf %269, %276 : vector<16x128xf32>
      %c4_114 = arith.constant 4 : index
      %c1_115 = arith.constant 1 : index
      %c0_116 = arith.constant 0 : index
      %278 = vector.load %arg8[%c4_114, %c1_115, %c0_116] : memref<18x18x128xf32, #tpu.memory_space<vmem>>, vector<1x16x128xf32>
      %279 = vector.shape_cast %278 : vector<1x16x128xf32> to vector<16x128xf32>
      %280 = vector.extract_strided_slice %22 {offsets = [1, 1, 0], sizes = [1, 1, 128], strides = [1, 1, 1]} : vector<3x3x128xf32> to vector<1x1x128xf32>
      %281 = vector.shape_cast %280 : vector<1x1x128xf32> to vector<128xf32>
      %282 = vector.shape_cast %281 : vector<128xf32> to vector<1x128xf32>
      %283 = vector.broadcast %282 : vector<1x128xf32> to vector<16x128xf32>
      %284 = arith.mulf %279, %283 : vector<16x128xf32>
      %285 = arith.addf %277, %284 : vector<16x128xf32>
      %c4_117 = arith.constant 4 : index
      %c2_118 = arith.constant 2 : index
      %c0_119 = arith.constant 0 : index
      %286 = vector.load %arg8[%c4_117, %c2_118, %c0_119] : memref<18x18x128xf32, #tpu.memory_space<vmem>>, vector<1x16x128xf32>
      %287 = vector.shape_cast %286 : vector<1x16x128xf32> to vector<16x128xf32>
      %288 = vector.extract_strided_slice %22 {offsets = [1, 2, 0], sizes = [1, 1, 128], strides = [1, 1, 1]} : vector<3x3x128xf32> to vector<1x1x128xf32>
      %289 = vector.shape_cast %288 : vector<1x1x128xf32> to vector<128xf32>
      %290 = vector.shape_cast %289 : vector<128xf32> to vector<1x128xf32>
      %291 = vector.broadcast %290 : vector<1x128xf32> to vector<16x128xf32>
      %292 = arith.mulf %287, %291 : vector<16x128xf32>
      %293 = arith.addf %285, %292 : vector<16x128xf32>
      %c5 = arith.constant 5 : index
      %c0_120 = arith.constant 0 : index
      %c0_121 = arith.constant 0 : index
      %294 = vector.load %arg8[%c5, %c0_120, %c0_121] : memref<18x18x128xf32, #tpu.memory_space<vmem>>, vector<1x16x128xf32>
      %295 = vector.shape_cast %294 : vector<1x16x128xf32> to vector<16x128xf32>
      %296 = vector.extract_strided_slice %22 {offsets = [2, 0, 0], sizes = [1, 1, 128], strides = [1, 1, 1]} : vector<3x3x128xf32> to vector<1x1x128xf32>
      %297 = vector.shape_cast %296 : vector<1x1x128xf32> to vector<128xf32>
      %298 = vector.shape_cast %297 : vector<128xf32> to vector<1x128xf32>
      %299 = vector.broadcast %298 : vector<1x128xf32> to vector<16x128xf32>
      %300 = arith.mulf %295, %299 : vector<16x128xf32>
      %301 = arith.addf %293, %300 : vector<16x128xf32>
      %c5_122 = arith.constant 5 : index
      %c1_123 = arith.constant 1 : index
      %c0_124 = arith.constant 0 : index
      %302 = vector.load %arg8[%c5_122, %c1_123, %c0_124] : memref<18x18x128xf32, #tpu.memory_space<vmem>>, vector<1x16x128xf32>
      %303 = vector.shape_cast %302 : vector<1x16x128xf32> to vector<16x128xf32>
      %304 = vector.extract_strided_slice %22 {offsets = [2, 1, 0], sizes = [1, 1, 128], strides = [1, 1, 1]} : vector<3x3x128xf32> to vector<1x1x128xf32>
      %305 = vector.shape_cast %304 : vector<1x1x128xf32> to vector<128xf32>
      %306 = vector.shape_cast %305 : vector<128xf32> to vector<1x128xf32>
      %307 = vector.broadcast %306 : vector<1x128xf32> to vector<16x128xf32>
      %308 = arith.mulf %303, %307 : vector<16x128xf32>
      %309 = arith.addf %301, %308 : vector<16x128xf32>
      %c5_125 = arith.constant 5 : index
      %c2_126 = arith.constant 2 : index
      %c0_127 = arith.constant 0 : index
      %310 = vector.load %arg8[%c5_125, %c2_126, %c0_127] : memref<18x18x128xf32, #tpu.memory_space<vmem>>, vector<1x16x128xf32>
      %311 = vector.shape_cast %310 : vector<1x16x128xf32> to vector<16x128xf32>
      %312 = vector.extract_strided_slice %22 {offsets = [2, 2, 0], sizes = [1, 1, 128], strides = [1, 1, 1]} : vector<3x3x128xf32> to vector<1x1x128xf32>
      %313 = vector.shape_cast %312 : vector<1x1x128xf32> to vector<128xf32>
      %314 = vector.shape_cast %313 : vector<128xf32> to vector<1x128xf32>
      %315 = vector.broadcast %314 : vector<1x128xf32> to vector<16x128xf32>
      %316 = arith.mulf %311, %315 : vector<16x128xf32>
      %317 = arith.addf %309, %316 : vector<16x128xf32>
      %c48 = arith.constant 48 : index
      %c0_128 = arith.constant 0 : index
      %318 = vector.load %arg9[%c48, %c0_128] : memref<256x128xf32, #tpu.memory_space<vmem>>, vector<16x128xf32>
      tpu.vector_store %arg9[%c48, %c0_128], %317 {strides = array<i32>} : memref<256x128xf32, #tpu.memory_space<vmem>>, vector<16x128xf32>,
      %cst_129 = arith.constant 0.000000e+00 : f32
      %319 = vector.broadcast %cst_129 : f32 to vector<16x128xf32>
      %c4_130 = arith.constant 4 : index
      %c0_131 = arith.constant 0 : index
      %c0_132 = arith.constant 0 : index
      %320 = vector.load %arg8[%c4_130, %c0_131, %c0_132] : memref<18x18x128xf32, #tpu.memory_space<vmem>>, vector<1x16x128xf32>
      %321 = vector.shape_cast %320 : vector<1x16x128xf32> to vector<16x128xf32>
      %322 = vector.extract_strided_slice %22 {offsets = [0, 0, 0], sizes = [1, 1, 128], strides = [1, 1, 1]} : vector<3x3x128xf32> to vector<1x1x128xf32>
      %323 = vector.shape_cast %322 : vector<1x1x128xf32> to vector<128xf32>
      %324 = vector.shape_cast %323 : vector<128xf32> to vector<1x128xf32>
      %325 = vector.broadcast %324 : vector<1x128xf32> to vector<16x128xf32>
      %326 = arith.mulf %321, %325 : vector<16x128xf32>
      %327 = arith.addf %319, %326 : vector<16x128xf32>
      %c4_133 = arith.constant 4 : index
      %c1_134 = arith.constant 1 : index
      %c0_135 = arith.constant 0 : index
      %328 = vector.load %arg8[%c4_133, %c1_134, %c0_135] : memref<18x18x128xf32, #tpu.memory_space<vmem>>, vector<1x16x128xf32>
      %329 = vector.shape_cast %328 : vector<1x16x128xf32> to vector<16x128xf32>
      %330 = vector.extract_strided_slice %22 {offsets = [0, 1, 0], sizes = [1, 1, 128], strides = [1, 1, 1]} : vector<3x3x128xf32> to vector<1x1x128xf32>
      %331 = vector.shape_cast %330 : vector<1x1x128xf32> to vector<128xf32>
      %332 = vector.shape_cast %331 : vector<128xf32> to vector<1x128xf32>
      %333 = vector.broadcast %332 : vector<1x128xf32> to vector<16x128xf32>
      %334 = arith.mulf %329, %333 : vector<16x128xf32>
      %335 = arith.addf %327, %334 : vector<16x128xf32>
      %c4_136 = arith.constant 4 : index
      %c2_137 = arith.constant 2 : index
      %c0_138 = arith.constant 0 : index
      %336 = vector.load %arg8[%c4_136, %c2_137, %c0_138] : memref<18x18x128xf32, #tpu.memory_space<vmem>>, vector<1x16x128xf32>
      %337 = vector.shape_cast %336 : vector<1x16x128xf32> to vector<16x128xf32>
      %338 = vector.extract_strided_slice %22 {offsets = [0, 2, 0], sizes = [1, 1, 128], strides = [1, 1, 1]} : vector<3x3x128xf32> to vector<1x1x128xf32>
      %339 = vector.shape_cast %338 : vector<1x1x128xf32> to vector<128xf32>
      %340 = vector.shape_cast %339 : vector<128xf32> to vector<1x128xf32>
      %341 = vector.broadcast %340 : vector<1x128xf32> to vector<16x128xf32>
      %342 = arith.mulf %337, %341 : vector<16x128xf32>
      %343 = arith.addf %335, %342 : vector<16x128xf32>
      %c5_139 = arith.constant 5 : index
      %c0_140 = arith.constant 0 : index
      %c0_141 = arith.constant 0 : index
      %344 = vector.load %arg8[%c5_139, %c0_140, %c0_141] : memref<18x18x128xf32, #tpu.memory_space<vmem>>, vector<1x16x128xf32>
      %345 = vector.shape_cast %344 : vector<1x16x128xf32> to vector<16x128xf32>
      %346 = vector.extract_strided_slice %22 {offsets = [1, 0, 0], sizes = [1, 1, 128], strides = [1, 1, 1]} : vector<3x3x128xf32> to vector<1x1x128xf32>
      %347 = vector.shape_cast %346 : vector<1x1x128xf32> to vector<128xf32>
      %348 = vector.shape_cast %347 : vector<128xf32> to vector<1x128xf32>
      %349 = vector.broadcast %348 : vector<1x128xf32> to vector<16x128xf32>
      %350 = arith.mulf %345, %349 : vector<16x128xf32>
      %351 = arith.addf %343, %350 : vector<16x128xf32>
      %c5_142 = arith.constant 5 : index
      %c1_143 = arith.constant 1 : index
      %c0_144 = arith.constant 0 : index
      %352 = vector.load %arg8[%c5_142, %c1_143, %c0_144] : memref<18x18x128xf32, #tpu.memory_space<vmem>>, vector<1x16x128xf32>
      %353 = vector.shape_cast %352 : vector<1x16x128xf32> to vector<16x128xf32>
      %354 = vector.extract_strided_slice %22 {offsets = [1, 1, 0], sizes = [1, 1, 128], strides = [1, 1, 1]} : vector<3x3x128xf32> to vector<1x1x128xf32>
      %355 = vector.shape_cast %354 : vector<1x1x128xf32> to vector<128xf32>
      %356 = vector.shape_cast %355 : vector<128xf32> to vector<1x128xf32>
      %357 = vector.broadcast %356 : vector<1x128xf32> to vector<16x128xf32>
      %358 = arith.mulf %353, %357 : vector<16x128xf32>
      %359 = arith.addf %351, %358 : vector<16x128xf32>
      %c5_145 = arith.constant 5 : index
      %c2_146 = arith.constant 2 : index
      %c0_147 = arith.constant 0 : index
      %360 = vector.load %arg8[%c5_145, %c2_146, %c0_147] : memref<18x18x128xf32, #tpu.memory_space<vmem>>, vector<1x16x128xf32>
      %361 = vector.shape_cast %360 : vector<1x16x128xf32> to vector<16x128xf32>
      %362 = vector.extract_strided_slice %22 {offsets = [1, 2, 0], sizes = [1, 1, 128], strides = [1, 1, 1]} : vector<3x3x128xf32> to vector<1x1x128xf32>
      %363 = vector.shape_cast %362 : vector<1x1x128xf32> to vector<128xf32>
      %364 = vector.shape_cast %363 : vector<128xf32> to vector<1x128xf32>
      %365 = vector.broadcast %364 : vector<1x128xf32> to vector<16x128xf32>
      %366 = arith.mulf %361, %365 : vector<16x128xf32>
      %367 = arith.addf %359, %366 : vector<16x128xf32>
      %c6 = arith.constant 6 : index
      %c0_148 = arith.constant 0 : index
      %c0_149 = arith.constant 0 : index
      %368 = vector.load %arg8[%c6, %c0_148, %c0_149] : memref<18x18x128xf32, #tpu.memory_space<vmem>>, vector<1x16x128xf32>
      %369 = vector.shape_cast %368 : vector<1x16x128xf32> to vector<16x128xf32>
      %370 = vector.extract_strided_slice %22 {offsets = [2, 0, 0], sizes = [1, 1, 128], strides = [1, 1, 1]} : vector<3x3x128xf32> to vector<1x1x128xf32>
      %371 = vector.shape_cast %370 : vector<1x1x128xf32> to vector<128xf32>
      %372 = vector.shape_cast %371 : vector<128xf32> to vector<1x128xf32>
      %373 = vector.broadcast %372 : vector<1x128xf32> to vector<16x128xf32>
      %374 = arith.mulf %369, %373 : vector<16x128xf32>
      %375 = arith.addf %367, %374 : vector<16x128xf32>
      %c6_150 = arith.constant 6 : index
      %c1_151 = arith.constant 1 : index
      %c0_152 = arith.constant 0 : index
      %376 = vector.load %arg8[%c6_150, %c1_151, %c0_152] : memref<18x18x128xf32, #tpu.memory_space<vmem>>, vector<1x16x128xf32>
      %377 = vector.shape_cast %376 : vector<1x16x128xf32> to vector<16x128xf32>
      %378 = vector.extract_strided_slice %22 {offsets = [2, 1, 0], sizes = [1, 1, 128], strides = [1, 1, 1]} : vector<3x3x128xf32> to vector<1x1x128xf32>
      %379 = vector.shape_cast %378 : vector<1x1x128xf32> to vector<128xf32>
      %380 = vector.shape_cast %379 : vector<128xf32> to vector<1x128xf32>
      %381 = vector.broadcast %380 : vector<1x128xf32> to vector<16x128xf32>
      %382 = arith.mulf %377, %381 : vector<16x128xf32>
      %383 = arith.addf %375, %382 : vector<16x128xf32>
      %c6_153 = arith.constant 6 : index
      %c2_154 = arith.constant 2 : index
      %c0_155 = arith.constant 0 : index
      %384 = vector.load %arg8[%c6_153, %c2_154, %c0_155] : memref<18x18x128xf32, #tpu.memory_space<vmem>>, vector<1x16x128xf32>
      %385 = vector.shape_cast %384 : vector<1x16x128xf32> to vector<16x128xf32>
      %386 = vector.extract_strided_slice %22 {offsets = [2, 2, 0], sizes = [1, 1, 128], strides = [1, 1, 1]} : vector<3x3x128xf32> to vector<1x1x128xf32>
      %387 = vector.shape_cast %386 : vector<1x1x128xf32> to vector<128xf32>
      %388 = vector.shape_cast %387 : vector<128xf32> to vector<1x128xf32>
      %389 = vector.broadcast %388 : vector<1x128xf32> to vector<16x128xf32>
      %390 = arith.mulf %385, %389 : vector<16x128xf32>
      %391 = arith.addf %383, %390 : vector<16x128xf32>
      %c64 = arith.constant 64 : index
      %c0_156 = arith.constant 0 : index
      %392 = vector.load %arg9[%c64, %c0_156] : memref<256x128xf32, #tpu.memory_space<vmem>>, vector<16x128xf32>
      tpu.vector_store %arg9[%c64, %c0_156], %391 {strides = array<i32>} : memref<256x128xf32, #tpu.memory_space<vmem>>, vector<16x128xf32>,
      %cst_157 = arith.constant 0.000000e+00 : f32
      %393 = vector.broadcast %cst_157 : f32 to vector<16x128xf32>
      %c5_158 = arith.constant 5 : index
      %c0_159 = arith.constant 0 : index
      %c0_160 = arith.constant 0 : index
      %394 = vector.load %arg8[%c5_158, %c0_159, %c0_160] : memref<18x18x128xf32, #tpu.memory_space<vmem>>, vector<1x16x128xf32>
      %395 = vector.shape_cast %394 : vector<1x16x128xf32> to vector<16x128xf32>
      %396 = vector.extract_strided_slice %22 {offsets = [0, 0, 0], sizes = [1, 1, 128], strides = [1, 1, 1]} : vector<3x3x128xf32> to vector<1x1x128xf32>
      %397 = vector.shape_cast %396 : vector<1x1x128xf32> to vector<128xf32>
      %398 = vector.shape_cast %397 : vector<128xf32> to vector<1x128xf32>
      %399 = vector.broadcast %398 : vector<1x128xf32> to vector<16x128xf32>
      %400 = arith.mulf %395, %399 : vector<16x128xf32>
      %401 = arith.addf %393, %400 : vector<16x128xf32>
      %c5_161 = arith.constant 5 : index
      %c1_162 = arith.constant 1 : index
      %c0_163 = arith.constant 0 : index
      %402 = vector.load %arg8[%c5_161, %c1_162, %c0_163] : memref<18x18x128xf32, #tpu.memory_space<vmem>>, vector<1x16x128xf32>
      %403 = vector.shape_cast %402 : vector<1x16x128xf32> to vector<16x128xf32>
      %404 = vector.extract_strided_slice %22 {offsets = [0, 1, 0], sizes = [1, 1, 128], strides = [1, 1, 1]} : vector<3x3x128xf32> to vector<1x1x128xf32>
      %405 = vector.shape_cast %404 : vector<1x1x128xf32> to vector<128xf32>
      %406 = vector.shape_cast %405 : vector<128xf32> to vector<1x128xf32>
      %407 = vector.broadcast %406 : vector<1x128xf32> to vector<16x128xf32>
      %408 = arith.mulf %403, %407 : vector<16x128xf32>
      %409 = arith.addf %401, %408 : vector<16x128xf32>
      %c5_164 = arith.constant 5 : index
      %c2_165 = arith.constant 2 : index
      %c0_166 = arith.constant 0 : index
      %410 = vector.load %arg8[%c5_164, %c2_165, %c0_166] : memref<18x18x128xf32, #tpu.memory_space<vmem>>, vector<1x16x128xf32>
      %411 = vector.shape_cast %410 : vector<1x16x128xf32> to vector<16x128xf32>
      %412 = vector.extract_strided_slice %22 {offsets = [0, 2, 0], sizes = [1, 1, 128], strides = [1, 1, 1]} : vector<3x3x128xf32> to vector<1x1x128xf32>
      %413 = vector.shape_cast %412 : vector<1x1x128xf32> to vector<128xf32>
      %414 = vector.shape_cast %413 : vector<128xf32> to vector<1x128xf32>
      %415 = vector.broadcast %414 : vector<1x128xf32> to vector<16x128xf32>
      %416 = arith.mulf %411, %415 : vector<16x128xf32>
      %417 = arith.addf %409, %416 : vector<16x128xf32>
      %c6_167 = arith.constant 6 : index
      %c0_168 = arith.constant 0 : index
      %c0_169 = arith.constant 0 : index
      %418 = vector.load %arg8[%c6_167, %c0_168, %c0_169] : memref<18x18x128xf32, #tpu.memory_space<vmem>>, vector<1x16x128xf32>
      %419 = vector.shape_cast %418 : vector<1x16x128xf32> to vector<16x128xf32>
      %420 = vector.extract_strided_slice %22 {offsets = [1, 0, 0], sizes = [1, 1, 128], strides = [1, 1, 1]} : vector<3x3x128xf32> to vector<1x1x128xf32>
      %421 = vector.shape_cast %420 : vector<1x1x128xf32> to vector<128xf32>
      %422 = vector.shape_cast %421 : vector<128xf32> to vector<1x128xf32>
      %423 = vector.broadcast %422 : vector<1x128xf32> to vector<16x128xf32>
      %424 = arith.mulf %419, %423 : vector<16x128xf32>
      %425 = arith.addf %417, %424 : vector<16x128xf32>
      %c6_170 = arith.constant 6 : index
      %c1_171 = arith.constant 1 : index
      %c0_172 = arith.constant 0 : index
      %426 = vector.load %arg8[%c6_170, %c1_171, %c0_172] : memref<18x18x128xf32, #tpu.memory_space<vmem>>, vector<1x16x128xf32>
      %427 = vector.shape_cast %426 : vector<1x16x128xf32> to vector<16x128xf32>
      %428 = vector.extract_strided_slice %22 {offsets = [1, 1, 0], sizes = [1, 1, 128], strides = [1, 1, 1]} : vector<3x3x128xf32> to vector<1x1x128xf32>
      %429 = vector.shape_cast %428 : vector<1x1x128xf32> to vector<128xf32>
      %430 = vector.shape_cast %429 : vector<128xf32> to vector<1x128xf32>
      %431 = vector.broadcast %430 : vector<1x128xf32> to vector<16x128xf32>
      %432 = arith.mulf %427, %431 : vector<16x128xf32>
      %433 = arith.addf %425, %432 : vector<16x128xf32>
      %c6_173 = arith.constant 6 : index
      %c2_174 = arith.constant 2 : index
      %c0_175 = arith.constant 0 : index
      %434 = vector.load %arg8[%c6_173, %c2_174, %c0_175] : memref<18x18x128xf32, #tpu.memory_space<vmem>>, vector<1x16x128xf32>
      %435 = vector.shape_cast %434 : vector<1x16x128xf32> to vector<16x128xf32>
      %436 = vector.extract_strided_slice %22 {offsets = [1, 2, 0], sizes = [1, 1, 128], strides = [1, 1, 1]} : vector<3x3x128xf32> to vector<1x1x128xf32>
      %437 = vector.shape_cast %436 : vector<1x1x128xf32> to vector<128xf32>
      %438 = vector.shape_cast %437 : vector<128xf32> to vector<1x128xf32>
      %439 = vector.broadcast %438 : vector<1x128xf32> to vector<16x128xf32>
      %440 = arith.mulf %435, %439 : vector<16x128xf32>
      %441 = arith.addf %433, %440 : vector<16x128xf32>
      %c7 = arith.constant 7 : index
      %c0_176 = arith.constant 0 : index
      %c0_177 = arith.constant 0 : index
      %442 = vector.load %arg8[%c7, %c0_176, %c0_177] : memref<18x18x128xf32, #tpu.memory_space<vmem>>, vector<1x16x128xf32>
      %443 = vector.shape_cast %442 : vector<1x16x128xf32> to vector<16x128xf32>
      %444 = vector.extract_strided_slice %22 {offsets = [2, 0, 0], sizes = [1, 1, 128], strides = [1, 1, 1]} : vector<3x3x128xf32> to vector<1x1x128xf32>
      %445 = vector.shape_cast %444 : vector<1x1x128xf32> to vector<128xf32>
      %446 = vector.shape_cast %445 : vector<128xf32> to vector<1x128xf32>
      %447 = vector.broadcast %446 : vector<1x128xf32> to vector<16x128xf32>
      %448 = arith.mulf %443, %447 : vector<16x128xf32>
      %449 = arith.addf %441, %448 : vector<16x128xf32>
      %c7_178 = arith.constant 7 : index
      %c1_179 = arith.constant 1 : index
      %c0_180 = arith.constant 0 : index
      %450 = vector.load %arg8[%c7_178, %c1_179, %c0_180] : memref<18x18x128xf32, #tpu.memory_space<vmem>>, vector<1x16x128xf32>
      %451 = vector.shape_cast %450 : vector<1x16x128xf32> to vector<16x128xf32>
      %452 = vector.extract_strided_slice %22 {offsets = [2, 1, 0], sizes = [1, 1, 128], strides = [1, 1, 1]} : vector<3x3x128xf32> to vector<1x1x128xf32>
      %453 = vector.shape_cast %452 : vector<1x1x128xf32> to vector<128xf32>
      %454 = vector.shape_cast %453 : vector<128xf32> to vector<1x128xf32>
      %455 = vector.broadcast %454 : vector<1x128xf32> to vector<16x128xf32>
      %456 = arith.mulf %451, %455 : vector<16x128xf32>
      %457 = arith.addf %449, %456 : vector<16x128xf32>
      %c7_181 = arith.constant 7 : index
      %c2_182 = arith.constant 2 : index
      %c0_183 = arith.constant 0 : index
      %458 = vector.load %arg8[%c7_181, %c2_182, %c0_183] : memref<18x18x128xf32, #tpu.memory_space<vmem>>, vector<1x16x128xf32>
      %459 = vector.shape_cast %458 : vector<1x16x128xf32> to vector<16x128xf32>
      %460 = vector.extract_strided_slice %22 {offsets = [2, 2, 0], sizes = [1, 1, 128], strides = [1, 1, 1]} : vector<3x3x128xf32> to vector<1x1x128xf32>
      %461 = vector.shape_cast %460 : vector<1x1x128xf32> to vector<128xf32>
      %462 = vector.shape_cast %461 : vector<128xf32> to vector<1x128xf32>
      %463 = vector.broadcast %462 : vector<1x128xf32> to vector<16x128xf32>
      %464 = arith.mulf %459, %463 : vector<16x128xf32>
      %465 = arith.addf %457, %464 : vector<16x128xf32>
      %c80 = arith.constant 80 : index
      %c0_184 = arith.constant 0 : index
      %466 = vector.load %arg9[%c80, %c0_184] : memref<256x128xf32, #tpu.memory_space<vmem>>, vector<16x128xf32>
      tpu.vector_store %arg9[%c80, %c0_184], %465 {strides = array<i32>} : memref<256x128xf32, #tpu.memory_space<vmem>>, vector<16x128xf32>,
      %cst_185 = arith.constant 0.000000e+00 : f32
      %467 = vector.broadcast %cst_185 : f32 to vector<16x128xf32>
      %c6_186 = arith.constant 6 : index
      %c0_187 = arith.constant 0 : index
      %c0_188 = arith.constant 0 : index
      %468 = vector.load %arg8[%c6_186, %c0_187, %c0_188] : memref<18x18x128xf32, #tpu.memory_space<vmem>>, vector<1x16x128xf32>
      %469 = vector.shape_cast %468 : vector<1x16x128xf32> to vector<16x128xf32>
      %470 = vector.extract_strided_slice %22 {offsets = [0, 0, 0], sizes = [1, 1, 128], strides = [1, 1, 1]} : vector<3x3x128xf32> to vector<1x1x128xf32>
      %471 = vector.shape_cast %470 : vector<1x1x128xf32> to vector<128xf32>
      %472 = vector.shape_cast %471 : vector<128xf32> to vector<1x128xf32>
      %473 = vector.broadcast %472 : vector<1x128xf32> to vector<16x128xf32>
      %474 = arith.mulf %469, %473 : vector<16x128xf32>
      %475 = arith.addf %467, %474 : vector<16x128xf32>
      %c6_189 = arith.constant 6 : index
      %c1_190 = arith.constant 1 : index
      %c0_191 = arith.constant 0 : index
      %476 = vector.load %arg8[%c6_189, %c1_190, %c0_191] : memref<18x18x128xf32, #tpu.memory_space<vmem>>, vector<1x16x128xf32>
      %477 = vector.shape_cast %476 : vector<1x16x128xf32> to vector<16x128xf32>
      %478 = vector.extract_strided_slice %22 {offsets = [0, 1, 0], sizes = [1, 1, 128], strides = [1, 1, 1]} : vector<3x3x128xf32> to vector<1x1x128xf32>
      %479 = vector.shape_cast %478 : vector<1x1x128xf32> to vector<128xf32>
      %480 = vector.shape_cast %479 : vector<128xf32> to vector<1x128xf32>
      %481 = vector.broadcast %480 : vector<1x128xf32> to vector<16x128xf32>
      %482 = arith.mulf %477, %481 : vector<16x128xf32>
      %483 = arith.addf %475, %482 : vector<16x128xf32>
      %c6_192 = arith.constant 6 : index
      %c2_193 = arith.constant 2 : index
      %c0_194 = arith.constant 0 : index
      %484 = vector.load %arg8[%c6_192, %c2_193, %c0_194] : memref<18x18x128xf32, #tpu.memory_space<vmem>>, vector<1x16x128xf32>
      %485 = vector.shape_cast %484 : vector<1x16x128xf32> to vector<16x128xf32>
      %486 = vector.extract_strided_slice %22 {offsets = [0, 2, 0], sizes = [1, 1, 128], strides = [1, 1, 1]} : vector<3x3x128xf32> to vector<1x1x128xf32>
      %487 = vector.shape_cast %486 : vector<1x1x128xf32> to vector<128xf32>
      %488 = vector.shape_cast %487 : vector<128xf32> to vector<1x128xf32>
      %489 = vector.broadcast %488 : vector<1x128xf32> to vector<16x128xf32>
      %490 = arith.mulf %485, %489 : vector<16x128xf32>
      %491 = arith.addf %483, %490 : vector<16x128xf32>
      %c7_195 = arith.constant 7 : index
      %c0_196 = arith.constant 0 : index
      %c0_197 = arith.constant 0 : index
      %492 = vector.load %arg8[%c7_195, %c0_196, %c0_197] : memref<18x18x128xf32, #tpu.memory_space<vmem>>, vector<1x16x128xf32>
      %493 = vector.shape_cast %492 : vector<1x16x128xf32> to vector<16x128xf32>
      %494 = vector.extract_strided_slice %22 {offsets = [1, 0, 0], sizes = [1, 1, 128], strides = [1, 1, 1]} : vector<3x3x128xf32> to vector<1x1x128xf32>
      %495 = vector.shape_cast %494 : vector<1x1x128xf32> to vector<128xf32>
      %496 = vector.shape_cast %495 : vector<128xf32> to vector<1x128xf32>
      %497 = vector.broadcast %496 : vector<1x128xf32> to vector<16x128xf32>
      %498 = arith.mulf %493, %497 : vector<16x128xf32>
      %499 = arith.addf %491, %498 : vector<16x128xf32>
      %c7_198 = arith.constant 7 : index
      %c1_199 = arith.constant 1 : index
      %c0_200 = arith.constant 0 : index
      %500 = vector.load %arg8[%c7_198, %c1_199, %c0_200] : memref<18x18x128xf32, #tpu.memory_space<vmem>>, vector<1x16x128xf32>
      %501 = vector.shape_cast %500 : vector<1x16x128xf32> to vector<16x128xf32>
      %502 = vector.extract_strided_slice %22 {offsets = [1, 1, 0], sizes = [1, 1, 128], strides = [1, 1, 1]} : vector<3x3x128xf32> to vector<1x1x128xf32>
      %503 = vector.shape_cast %502 : vector<1x1x128xf32> to vector<128xf32>
      %504 = vector.shape_cast %503 : vector<128xf32> to vector<1x128xf32>
      %505 = vector.broadcast %504 : vector<1x128xf32> to vector<16x128xf32>
      %506 = arith.mulf %501, %505 : vector<16x128xf32>
      %507 = arith.addf %499, %506 : vector<16x128xf32>
      %c7_201 = arith.constant 7 : index
      %c2_202 = arith.constant 2 : index
      %c0_203 = arith.constant 0 : index
      %508 = vector.load %arg8[%c7_201, %c2_202, %c0_203] : memref<18x18x128xf32, #tpu.memory_space<vmem>>, vector<1x16x128xf32>
      %509 = vector.shape_cast %508 : vector<1x16x128xf32> to vector<16x128xf32>
      %510 = vector.extract_strided_slice %22 {offsets = [1, 2, 0], sizes = [1, 1, 128], strides = [1, 1, 1]} : vector<3x3x128xf32> to vector<1x1x128xf32>
      %511 = vector.shape_cast %510 : vector<1x1x128xf32> to vector<128xf32>
      %512 = vector.shape_cast %511 : vector<128xf32> to vector<1x128xf32>
      %513 = vector.broadcast %512 : vector<1x128xf32> to vector<16x128xf32>
      %514 = arith.mulf %509, %513 : vector<16x128xf32>
      %515 = arith.addf %507, %514 : vector<16x128xf32>
      %c8 = arith.constant 8 : index
      %c0_204 = arith.constant 0 : index
      %c0_205 = arith.constant 0 : index
      %516 = vector.load %arg8[%c8, %c0_204, %c0_205] : memref<18x18x128xf32, #tpu.memory_space<vmem>>, vector<1x16x128xf32>
      %517 = vector.shape_cast %516 : vector<1x16x128xf32> to vector<16x128xf32>
      %518 = vector.extract_strided_slice %22 {offsets = [2, 0, 0], sizes = [1, 1, 128], strides = [1, 1, 1]} : vector<3x3x128xf32> to vector<1x1x128xf32>
      %519 = vector.shape_cast %518 : vector<1x1x128xf32> to vector<128xf32>
      %520 = vector.shape_cast %519 : vector<128xf32> to vector<1x128xf32>
      %521 = vector.broadcast %520 : vector<1x128xf32> to vector<16x128xf32>
      %522 = arith.mulf %517, %521 : vector<16x128xf32>
      %523 = arith.addf %515, %522 : vector<16x128xf32>
      %c8_206 = arith.constant 8 : index
      %c1_207 = arith.constant 1 : index
      %c0_208 = arith.constant 0 : index
      %524 = vector.load %arg8[%c8_206, %c1_207, %c0_208] : memref<18x18x128xf32, #tpu.memory_space<vmem>>, vector<1x16x128xf32>
      %525 = vector.shape_cast %524 : vector<1x16x128xf32> to vector<16x128xf32>
      %526 = vector.extract_strided_slice %22 {offsets = [2, 1, 0], sizes = [1, 1, 128], strides = [1, 1, 1]} : vector<3x3x128xf32> to vector<1x1x128xf32>
      %527 = vector.shape_cast %526 : vector<1x1x128xf32> to vector<128xf32>
      %528 = vector.shape_cast %527 : vector<128xf32> to vector<1x128xf32>
      %529 = vector.broadcast %528 : vector<1x128xf32> to vector<16x128xf32>
      %530 = arith.mulf %525, %529 : vector<16x128xf32>
      %531 = arith.addf %523, %530 : vector<16x128xf32>
      %c8_209 = arith.constant 8 : index
      %c2_210 = arith.constant 2 : index
      %c0_211 = arith.constant 0 : index
      %532 = vector.load %arg8[%c8_209, %c2_210, %c0_211] : memref<18x18x128xf32, #tpu.memory_space<vmem>>, vector<1x16x128xf32>
      %533 = vector.shape_cast %532 : vector<1x16x128xf32> to vector<16x128xf32>
      %534 = vector.extract_strided_slice %22 {offsets = [2, 2, 0], sizes = [1, 1, 128], strides = [1, 1, 1]} : vector<3x3x128xf32> to vector<1x1x128xf32>
      %535 = vector.shape_cast %534 : vector<1x1x128xf32> to vector<128xf32>
      %536 = vector.shape_cast %535 : vector<128xf32> to vector<1x128xf32>
      %537 = vector.broadcast %536 : vector<1x128xf32> to vector<16x128xf32>
      %538 = arith.mulf %533, %537 : vector<16x128xf32>
      %539 = arith.addf %531, %538 : vector<16x128xf32>
      %c96 = arith.constant 96 : index
      %c0_212 = arith.constant 0 : index
      %540 = vector.load %arg9[%c96, %c0_212] : memref<256x128xf32, #tpu.memory_space<vmem>>, vector<16x128xf32>
      tpu.vector_store %arg9[%c96, %c0_212], %539 {strides = array<i32>} : memref<256x128xf32, #tpu.memory_space<vmem>>, vector<16x128xf32>,
      %cst_213 = arith.constant 0.000000e+00 : f32
      %541 = vector.broadcast %cst_213 : f32 to vector<16x128xf32>
      %c7_214 = arith.constant 7 : index
      %c0_215 = arith.constant 0 : index
      %c0_216 = arith.constant 0 : index
      %542 = vector.load %arg8[%c7_214, %c0_215, %c0_216] : memref<18x18x128xf32, #tpu.memory_space<vmem>>, vector<1x16x128xf32>
      %543 = vector.shape_cast %542 : vector<1x16x128xf32> to vector<16x128xf32>
      %544 = vector.extract_strided_slice %22 {offsets = [0, 0, 0], sizes = [1, 1, 128], strides = [1, 1, 1]} : vector<3x3x128xf32> to vector<1x1x128xf32>
      %545 = vector.shape_cast %544 : vector<1x1x128xf32> to vector<128xf32>
      %546 = vector.shape_cast %545 : vector<128xf32> to vector<1x128xf32>
      %547 = vector.broadcast %546 : vector<1x128xf32> to vector<16x128xf32>
      %548 = arith.mulf %543, %547 : vector<16x128xf32>
      %549 = arith.addf %541, %548 : vector<16x128xf32>
      %c7_217 = arith.constant 7 : index
      %c1_218 = arith.constant 1 : index
      %c0_219 = arith.constant 0 : index
      %550 = vector.load %arg8[%c7_217, %c1_218, %c0_219] : memref<18x18x128xf32, #tpu.memory_space<vmem>>, vector<1x16x128xf32>
      %551 = vector.shape_cast %550 : vector<1x16x128xf32> to vector<16x128xf32>
      %552 = vector.extract_strided_slice %22 {offsets = [0, 1, 0], sizes = [1, 1, 128], strides = [1, 1, 1]} : vector<3x3x128xf32> to vector<1x1x128xf32>
      %553 = vector.shape_cast %552 : vector<1x1x128xf32> to vector<128xf32>
      %554 = vector.shape_cast %553 : vector<128xf32> to vector<1x128xf32>
      %555 = vector.broadcast %554 : vector<1x128xf32> to vector<16x128xf32>
      %556 = arith.mulf %551, %555 : vector<16x128xf32>
      %557 = arith.addf %549, %556 : vector<16x128xf32>
      %c7_220 = arith.constant 7 : index
      %c2_221 = arith.constant 2 : index
      %c0_222 = arith.constant 0 : index
      %558 = vector.load %arg8[%c7_220, %c2_221, %c0_222] : memref<18x18x128xf32, #tpu.memory_space<vmem>>, vector<1x16x128xf32>
      %559 = vector.shape_cast %558 : vector<1x16x128xf32> to vector<16x128xf32>
      %560 = vector.extract_strided_slice %22 {offsets = [0, 2, 0], sizes = [1, 1, 128], strides = [1, 1, 1]} : vector<3x3x128xf32> to vector<1x1x128xf32>
      %561 = vector.shape_cast %560 : vector<1x1x128xf32> to vector<128xf32>
      %562 = vector.shape_cast %561 : vector<128xf32> to vector<1x128xf32>
      %563 = vector.broadcast %562 : vector<1x128xf32> to vector<16x128xf32>
      %564 = arith.mulf %559, %563 : vector<16x128xf32>
      %565 = arith.addf %557, %564 : vector<16x128xf32>
      %c8_223 = arith.constant 8 : index
      %c0_224 = arith.constant 0 : index
      %c0_225 = arith.constant 0 : index
      %566 = vector.load %arg8[%c8_223, %c0_224, %c0_225] : memref<18x18x128xf32, #tpu.memory_space<vmem>>, vector<1x16x128xf32>
      %567 = vector.shape_cast %566 : vector<1x16x128xf32> to vector<16x128xf32>
      %568 = vector.extract_strided_slice %22 {offsets = [1, 0, 0], sizes = [1, 1, 128], strides = [1, 1, 1]} : vector<3x3x128xf32> to vector<1x1x128xf32>
      %569 = vector.shape_cast %568 : vector<1x1x128xf32> to vector<128xf32>
      %570 = vector.shape_cast %569 : vector<128xf32> to vector<1x128xf32>
      %571 = vector.broadcast %570 : vector<1x128xf32> to vector<16x128xf32>
      %572 = arith.mulf %567, %571 : vector<16x128xf32>
      %573 = arith.addf %565, %572 : vector<16x128xf32>
      %c8_226 = arith.constant 8 : index
      %c1_227 = arith.constant 1 : index
      %c0_228 = arith.constant 0 : index
      %574 = vector.load %arg8[%c8_226, %c1_227, %c0_228] : memref<18x18x128xf32, #tpu.memory_space<vmem>>, vector<1x16x128xf32>
      %575 = vector.shape_cast %574 : vector<1x16x128xf32> to vector<16x128xf32>
      %576 = vector.extract_strided_slice %22 {offsets = [1, 1, 0], sizes = [1, 1, 128], strides = [1, 1, 1]} : vector<3x3x128xf32> to vector<1x1x128xf32>
      %577 = vector.shape_cast %576 : vector<1x1x128xf32> to vector<128xf32>
      %578 = vector.shape_cast %577 : vector<128xf32> to vector<1x128xf32>
      %579 = vector.broadcast %578 : vector<1x128xf32> to vector<16x128xf32>
      %580 = arith.mulf %575, %579 : vector<16x128xf32>
      %581 = arith.addf %573, %580 : vector<16x128xf32>
      %c8_229 = arith.constant 8 : index
      %c2_230 = arith.constant 2 : index
      %c0_231 = arith.constant 0 : index
      %582 = vector.load %arg8[%c8_229, %c2_230, %c0_231] : memref<18x18x128xf32, #tpu.memory_space<vmem>>, vector<1x16x128xf32>
      %583 = vector.shape_cast %582 : vector<1x16x128xf32> to vector<16x128xf32>
      %584 = vector.extract_strided_slice %22 {offsets = [1, 2, 0], sizes = [1, 1, 128], strides = [1, 1, 1]} : vector<3x3x128xf32> to vector<1x1x128xf32>
      %585 = vector.shape_cast %584 : vector<1x1x128xf32> to vector<128xf32>
      %586 = vector.shape_cast %585 : vector<128xf32> to vector<1x128xf32>
      %587 = vector.broadcast %586 : vector<1x128xf32> to vector<16x128xf32>
      %588 = arith.mulf %583, %587 : vector<16x128xf32>
      %589 = arith.addf %581, %588 : vector<16x128xf32>
      %c9 = arith.constant 9 : index
      %c0_232 = arith.constant 0 : index
      %c0_233 = arith.constant 0 : index
      %590 = vector.load %arg8[%c9, %c0_232, %c0_233] : memref<18x18x128xf32, #tpu.memory_space<vmem>>, vector<1x16x128xf32>
      %591 = vector.shape_cast %590 : vector<1x16x128xf32> to vector<16x128xf32>
      %592 = vector.extract_strided_slice %22 {offsets = [2, 0, 0], sizes = [1, 1, 128], strides = [1, 1, 1]} : vector<3x3x128xf32> to vector<1x1x128xf32>
      %593 = vector.shape_cast %592 : vector<1x1x128xf32> to vector<128xf32>
      %594 = vector.shape_cast %593 : vector<128xf32> to vector<1x128xf32>
      %595 = vector.broadcast %594 : vector<1x128xf32> to vector<16x128xf32>
      %596 = arith.mulf %591, %595 : vector<16x128xf32>
      %597 = arith.addf %589, %596 : vector<16x128xf32>
      %c9_234 = arith.constant 9 : index
      %c1_235 = arith.constant 1 : index
      %c0_236 = arith.constant 0 : index
      %598 = vector.load %arg8[%c9_234, %c1_235, %c0_236] : memref<18x18x128xf32, #tpu.memory_space<vmem>>, vector<1x16x128xf32>
      %599 = vector.shape_cast %598 : vector<1x16x128xf32> to vector<16x128xf32>
      %600 = vector.extract_strided_slice %22 {offsets = [2, 1, 0], sizes = [1, 1, 128], strides = [1, 1, 1]} : vector<3x3x128xf32> to vector<1x1x128xf32>
      %601 = vector.shape_cast %600 : vector<1x1x128xf32> to vector<128xf32>
      %602 = vector.shape_cast %601 : vector<128xf32> to vector<1x128xf32>
      %603 = vector.broadcast %602 : vector<1x128xf32> to vector<16x128xf32>
      %604 = arith.mulf %599, %603 : vector<16x128xf32>
      %605 = arith.addf %597, %604 : vector<16x128xf32>
      %c9_237 = arith.constant 9 : index
      %c2_238 = arith.constant 2 : index
      %c0_239 = arith.constant 0 : index
      %606 = vector.load %arg8[%c9_237, %c2_238, %c0_239] : memref<18x18x128xf32, #tpu.memory_space<vmem>>, vector<1x16x128xf32>
      %607 = vector.shape_cast %606 : vector<1x16x128xf32> to vector<16x128xf32>
      %608 = vector.extract_strided_slice %22 {offsets = [2, 2, 0], sizes = [1, 1, 128], strides = [1, 1, 1]} : vector<3x3x128xf32> to vector<1x1x128xf32>
      %609 = vector.shape_cast %608 : vector<1x1x128xf32> to vector<128xf32>
      %610 = vector.shape_cast %609 : vector<128xf32> to vector<1x128xf32>
      %611 = vector.broadcast %610 : vector<1x128xf32> to vector<16x128xf32>
      %612 = arith.mulf %607, %611 : vector<16x128xf32>
      %613 = arith.addf %605, %612 : vector<16x128xf32>
      %c112 = arith.constant 112 : index
      %c0_240 = arith.constant 0 : index
      %614 = vector.load %arg9[%c112, %c0_240] : memref<256x128xf32, #tpu.memory_space<vmem>>, vector<16x128xf32>
      tpu.vector_store %arg9[%c112, %c0_240], %613 {strides = array<i32>} : memref<256x128xf32, #tpu.memory_space<vmem>>, vector<16x128xf32>,
      %cst_241 = arith.constant 0.000000e+00 : f32
      %615 = vector.broadcast %cst_241 : f32 to vector<16x128xf32>
      %c8_242 = arith.constant 8 : index
      %c0_243 = arith.constant 0 : index
      %c0_244 = arith.constant 0 : index
      %616 = vector.load %arg8[%c8_242, %c0_243, %c0_244] : memref<18x18x128xf32, #tpu.memory_space<vmem>>, vector<1x16x128xf32>
      %617 = vector.shape_cast %616 : vector<1x16x128xf32> to vector<16x128xf32>
      %618 = vector.extract_strided_slice %22 {offsets = [0, 0, 0], sizes = [1, 1, 128], strides = [1, 1, 1]} : vector<3x3x128xf32> to vector<1x1x128xf32>
      %619 = vector.shape_cast %618 : vector<1x1x128xf32> to vector<128xf32>
      %620 = vector.shape_cast %619 : vector<128xf32> to vector<1x128xf32>
      %621 = vector.broadcast %620 : vector<1x128xf32> to vector<16x128xf32>
      %622 = arith.mulf %617, %621 : vector<16x128xf32>
      %623 = arith.addf %615, %622 : vector<16x128xf32>
      %c8_245 = arith.constant 8 : index
      %c1_246 = arith.constant 1 : index
      %c0_247 = arith.constant 0 : index
      %624 = vector.load %arg8[%c8_245, %c1_246, %c0_247] : memref<18x18x128xf32, #tpu.memory_space<vmem>>, vector<1x16x128xf32>
      %625 = vector.shape_cast %624 : vector<1x16x128xf32> to vector<16x128xf32>
      %626 = vector.extract_strided_slice %22 {offsets = [0, 1, 0], sizes = [1, 1, 128], strides = [1, 1, 1]} : vector<3x3x128xf32> to vector<1x1x128xf32>
      %627 = vector.shape_cast %626 : vector<1x1x128xf32> to vector<128xf32>
      %628 = vector.shape_cast %627 : vector<128xf32> to vector<1x128xf32>
      %629 = vector.broadcast %628 : vector<1x128xf32> to vector<16x128xf32>
      %630 = arith.mulf %625, %629 : vector<16x128xf32>
      %631 = arith.addf %623, %630 : vector<16x128xf32>
      %c8_248 = arith.constant 8 : index
      %c2_249 = arith.constant 2 : index
      %c0_250 = arith.constant 0 : index
      %632 = vector.load %arg8[%c8_248, %c2_249, %c0_250] : memref<18x18x128xf32, #tpu.memory_space<vmem>>, vector<1x16x128xf32>
      %633 = vector.shape_cast %632 : vector<1x16x128xf32> to vector<16x128xf32>
      %634 = vector.extract_strided_slice %22 {offsets = [0, 2, 0], sizes = [1, 1, 128], strides = [1, 1, 1]} : vector<3x3x128xf32> to vector<1x1x128xf32>
      %635 = vector.shape_cast %634 : vector<1x1x128xf32> to vector<128xf32>
      %636 = vector.shape_cast %635 : vector<128xf32> to vector<1x128xf32>
      %637 = vector.broadcast %636 : vector<1x128xf32> to vector<16x128xf32>
      %638 = arith.mulf %633, %637 : vector<16x128xf32>
      %639 = arith.addf %631, %638 : vector<16x128xf32>
      %c9_251 = arith.constant 9 : index
      %c0_252 = arith.constant 0 : index
      %c0_253 = arith.constant 0 : index
      %640 = vector.load %arg8[%c9_251, %c0_252, %c0_253] : memref<18x18x128xf32, #tpu.memory_space<vmem>>, vector<1x16x128xf32>
      %641 = vector.shape_cast %640 : vector<1x16x128xf32> to vector<16x128xf32>
      %642 = vector.extract_strided_slice %22 {offsets = [1, 0, 0], sizes = [1, 1, 128], strides = [1, 1, 1]} : vector<3x3x128xf32> to vector<1x1x128xf32>
      %643 = vector.shape_cast %642 : vector<1x1x128xf32> to vector<128xf32>
      %644 = vector.shape_cast %643 : vector<128xf32> to vector<1x128xf32>
      %645 = vector.broadcast %644 : vector<1x128xf32> to vector<16x128xf32>
      %646 = arith.mulf %641, %645 : vector<16x128xf32>
      %647 = arith.addf %639, %646 : vector<16x128xf32>
      %c9_254 = arith.constant 9 : index
      %c1_255 = arith.constant 1 : index
      %c0_256 = arith.constant 0 : index
      %648 = vector.load %arg8[%c9_254, %c1_255, %c0_256] : memref<18x18x128xf32, #tpu.memory_space<vmem>>, vector<1x16x128xf32>
      %649 = vector.shape_cast %648 : vector<1x16x128xf32> to vector<16x128xf32>
      %650 = vector.extract_strided_slice %22 {offsets = [1, 1, 0], sizes = [1, 1, 128], strides = [1, 1, 1]} : vector<3x3x128xf32> to vector<1x1x128xf32>
      %651 = vector.shape_cast %650 : vector<1x1x128xf32> to vector<128xf32>
      %652 = vector.shape_cast %651 : vector<128xf32> to vector<1x128xf32>
      %653 = vector.broadcast %652 : vector<1x128xf32> to vector<16x128xf32>
      %654 = arith.mulf %649, %653 : vector<16x128xf32>
      %655 = arith.addf %647, %654 : vector<16x128xf32>
      %c9_257 = arith.constant 9 : index
      %c2_258 = arith.constant 2 : index
      %c0_259 = arith.constant 0 : index
      %656 = vector.load %arg8[%c9_257, %c2_258, %c0_259] : memref<18x18x128xf32, #tpu.memory_space<vmem>>, vector<1x16x128xf32>
      %657 = vector.shape_cast %656 : vector<1x16x128xf32> to vector<16x128xf32>
      %658 = vector.extract_strided_slice %22 {offsets = [1, 2, 0], sizes = [1, 1, 128], strides = [1, 1, 1]} : vector<3x3x128xf32> to vector<1x1x128xf32>
      %659 = vector.shape_cast %658 : vector<1x1x128xf32> to vector<128xf32>
      %660 = vector.shape_cast %659 : vector<128xf32> to vector<1x128xf32>
      %661 = vector.broadcast %660 : vector<1x128xf32> to vector<16x128xf32>
      %662 = arith.mulf %657, %661 : vector<16x128xf32>
      %663 = arith.addf %655, %662 : vector<16x128xf32>
      %c10 = arith.constant 10 : index
      %c0_260 = arith.constant 0 : index
      %c0_261 = arith.constant 0 : index
      %664 = vector.load %arg8[%c10, %c0_260, %c0_261] : memref<18x18x128xf32, #tpu.memory_space<vmem>>, vector<1x16x128xf32>
      %665 = vector.shape_cast %664 : vector<1x16x128xf32> to vector<16x128xf32>
      %666 = vector.extract_strided_slice %22 {offsets = [2, 0, 0], sizes = [1, 1, 128], strides = [1, 1, 1]} : vector<3x3x128xf32> to vector<1x1x128xf32>
      %667 = vector.shape_cast %666 : vector<1x1x128xf32> to vector<128xf32>
      %668 = vector.shape_cast %667 : vector<128xf32> to vector<1x128xf32>
      %669 = vector.broadcast %668 : vector<1x128xf32> to vector<16x128xf32>
      %670 = arith.mulf %665, %669 : vector<16x128xf32>
      %671 = arith.addf %663, %670 : vector<16x128xf32>
      %c10_262 = arith.constant 10 : index
      %c1_263 = arith.constant 1 : index
      %c0_264 = arith.constant 0 : index
      %672 = vector.load %arg8[%c10_262, %c1_263, %c0_264] : memref<18x18x128xf32, #tpu.memory_space<vmem>>, vector<1x16x128xf32>
      %673 = vector.shape_cast %672 : vector<1x16x128xf32> to vector<16x128xf32>
      %674 = vector.extract_strided_slice %22 {offsets = [2, 1, 0], sizes = [1, 1, 128], strides = [1, 1, 1]} : vector<3x3x128xf32> to vector<1x1x128xf32>
      %675 = vector.shape_cast %674 : vector<1x1x128xf32> to vector<128xf32>
      %676 = vector.shape_cast %675 : vector<128xf32> to vector<1x128xf32>
      %677 = vector.broadcast %676 : vector<1x128xf32> to vector<16x128xf32>
      %678 = arith.mulf %673, %677 : vector<16x128xf32>
      %679 = arith.addf %671, %678 : vector<16x128xf32>
      %c10_265 = arith.constant 10 : index
      %c2_266 = arith.constant 2 : index
      %c0_267 = arith.constant 0 : index
      %680 = vector.load %arg8[%c10_265, %c2_266, %c0_267] : memref<18x18x128xf32, #tpu.memory_space<vmem>>, vector<1x16x128xf32>
      %681 = vector.shape_cast %680 : vector<1x16x128xf32> to vector<16x128xf32>
      %682 = vector.extract_strided_slice %22 {offsets = [2, 2, 0], sizes = [1, 1, 128], strides = [1, 1, 1]} : vector<3x3x128xf32> to vector<1x1x128xf32>
      %683 = vector.shape_cast %682 : vector<1x1x128xf32> to vector<128xf32>
      %684 = vector.shape_cast %683 : vector<128xf32> to vector<1x128xf32>
      %685 = vector.broadcast %684 : vector<1x128xf32> to vector<16x128xf32>
      %686 = arith.mulf %681, %685 : vector<16x128xf32>
      %687 = arith.addf %679, %686 : vector<16x128xf32>
      %c128 = arith.constant 128 : index
      %c0_268 = arith.constant 0 : index
      %688 = vector.load %arg9[%c128, %c0_268] : memref<256x128xf32, #tpu.memory_space<vmem>>, vector<16x128xf32>
      tpu.vector_store %arg9[%c128, %c0_268], %687 {strides = array<i32>} : memref<256x128xf32, #tpu.memory_space<vmem>>, vector<16x128xf32>,
      %cst_269 = arith.constant 0.000000e+00 : f32
      %689 = vector.broadcast %cst_269 : f32 to vector<16x128xf32>
      %c9_270 = arith.constant 9 : index
      %c0_271 = arith.constant 0 : index
      %c0_272 = arith.constant 0 : index
      %690 = vector.load %arg8[%c9_270, %c0_271, %c0_272] : memref<18x18x128xf32, #tpu.memory_space<vmem>>, vector<1x16x128xf32>
      %691 = vector.shape_cast %690 : vector<1x16x128xf32> to vector<16x128xf32>
      %692 = vector.extract_strided_slice %22 {offsets = [0, 0, 0], sizes = [1, 1, 128], strides = [1, 1, 1]} : vector<3x3x128xf32> to vector<1x1x128xf32>
      %693 = vector.shape_cast %692 : vector<1x1x128xf32> to vector<128xf32>
      %694 = vector.shape_cast %693 : vector<128xf32> to vector<1x128xf32>
      %695 = vector.broadcast %694 : vector<1x128xf32> to vector<16x128xf32>
      %696 = arith.mulf %691, %695 : vector<16x128xf32>
      %697 = arith.addf %689, %696 : vector<16x128xf32>
      %c9_273 = arith.constant 9 : index
      %c1_274 = arith.constant 1 : index
      %c0_275 = arith.constant 0 : index
      %698 = vector.load %arg8[%c9_273, %c1_274, %c0_275] : memref<18x18x128xf32, #tpu.memory_space<vmem>>, vector<1x16x128xf32>
      %699 = vector.shape_cast %698 : vector<1x16x128xf32> to vector<16x128xf32>
      %700 = vector.extract_strided_slice %22 {offsets = [0, 1, 0], sizes = [1, 1, 128], strides = [1, 1, 1]} : vector<3x3x128xf32> to vector<1x1x128xf32>
      %701 = vector.shape_cast %700 : vector<1x1x128xf32> to vector<128xf32>
      %702 = vector.shape_cast %701 : vector<128xf32> to vector<1x128xf32>
      %703 = vector.broadcast %702 : vector<1x128xf32> to vector<16x128xf32>
      %704 = arith.mulf %699, %703 : vector<16x128xf32>
      %705 = arith.addf %697, %704 : vector<16x128xf32>
      %c9_276 = arith.constant 9 : index
      %c2_277 = arith.constant 2 : index
      %c0_278 = arith.constant 0 : index
      %706 = vector.load %arg8[%c9_276, %c2_277, %c0_278] : memref<18x18x128xf32, #tpu.memory_space<vmem>>, vector<1x16x128xf32>
      %707 = vector.shape_cast %706 : vector<1x16x128xf32> to vector<16x128xf32>
      %708 = vector.extract_strided_slice %22 {offsets = [0, 2, 0], sizes = [1, 1, 128], strides = [1, 1, 1]} : vector<3x3x128xf32> to vector<1x1x128xf32>
      %709 = vector.shape_cast %708 : vector<1x1x128xf32> to vector<128xf32>
      %710 = vector.shape_cast %709 : vector<128xf32> to vector<1x128xf32>
      %711 = vector.broadcast %710 : vector<1x128xf32> to vector<16x128xf32>
      %712 = arith.mulf %707, %711 : vector<16x128xf32>
      %713 = arith.addf %705, %712 : vector<16x128xf32>
      %c10_279 = arith.constant 10 : index
      %c0_280 = arith.constant 0 : index
      %c0_281 = arith.constant 0 : index
      %714 = vector.load %arg8[%c10_279, %c0_280, %c0_281] : memref<18x18x128xf32, #tpu.memory_space<vmem>>, vector<1x16x128xf32>
      %715 = vector.shape_cast %714 : vector<1x16x128xf32> to vector<16x128xf32>
      %716 = vector.extract_strided_slice %22 {offsets = [1, 0, 0], sizes = [1, 1, 128], strides = [1, 1, 1]} : vector<3x3x128xf32> to vector<1x1x128xf32>
      %717 = vector.shape_cast %716 : vector<1x1x128xf32> to vector<128xf32>
      %718 = vector.shape_cast %717 : vector<128xf32> to vector<1x128xf32>
      %719 = vector.broadcast %718 : vector<1x128xf32> to vector<16x128xf32>
      %720 = arith.mulf %715, %719 : vector<16x128xf32>
      %721 = arith.addf %713, %720 : vector<16x128xf32>
      %c10_282 = arith.constant 10 : index
      %c1_283 = arith.constant 1 : index
      %c0_284 = arith.constant 0 : index
      %722 = vector.load %arg8[%c10_282, %c1_283, %c0_284] : memref<18x18x128xf32, #tpu.memory_space<vmem>>, vector<1x16x128xf32>
      %723 = vector.shape_cast %722 : vector<1x16x128xf32> to vector<16x128xf32>
      %724 = vector.extract_strided_slice %22 {offsets = [1, 1, 0], sizes = [1, 1, 128], strides = [1, 1, 1]} : vector<3x3x128xf32> to vector<1x1x128xf32>
      %725 = vector.shape_cast %724 : vector<1x1x128xf32> to vector<128xf32>
      %726 = vector.shape_cast %725 : vector<128xf32> to vector<1x128xf32>
      %727 = vector.broadcast %726 : vector<1x128xf32> to vector<16x128xf32>
      %728 = arith.mulf %723, %727 : vector<16x128xf32>
      %729 = arith.addf %721, %728 : vector<16x128xf32>
      %c10_285 = arith.constant 10 : index
      %c2_286 = arith.constant 2 : index
      %c0_287 = arith.constant 0 : index
      %730 = vector.load %arg8[%c10_285, %c2_286, %c0_287] : memref<18x18x128xf32, #tpu.memory_space<vmem>>, vector<1x16x128xf32>
      %731 = vector.shape_cast %730 : vector<1x16x128xf32> to vector<16x128xf32>
      %732 = vector.extract_strided_slice %22 {offsets = [1, 2, 0], sizes = [1, 1, 128], strides = [1, 1, 1]} : vector<3x3x128xf32> to vector<1x1x128xf32>
      %733 = vector.shape_cast %732 : vector<1x1x128xf32> to vector<128xf32>
      %734 = vector.shape_cast %733 : vector<128xf32> to vector<1x128xf32>
      %735 = vector.broadcast %734 : vector<1x128xf32> to vector<16x128xf32>
      %736 = arith.mulf %731, %735 : vector<16x128xf32>
      %737 = arith.addf %729, %736 : vector<16x128xf32>
      %c11 = arith.constant 11 : index
      %c0_288 = arith.constant 0 : index
      %c0_289 = arith.constant 0 : index
      %738 = vector.load %arg8[%c11, %c0_288, %c0_289] : memref<18x18x128xf32, #tpu.memory_space<vmem>>, vector<1x16x128xf32>
      %739 = vector.shape_cast %738 : vector<1x16x128xf32> to vector<16x128xf32>
      %740 = vector.extract_strided_slice %22 {offsets = [2, 0, 0], sizes = [1, 1, 128], strides = [1, 1, 1]} : vector<3x3x128xf32> to vector<1x1x128xf32>
      %741 = vector.shape_cast %740 : vector<1x1x128xf32> to vector<128xf32>
      %742 = vector.shape_cast %741 : vector<128xf32> to vector<1x128xf32>
      %743 = vector.broadcast %742 : vector<1x128xf32> to vector<16x128xf32>
      %744 = arith.mulf %739, %743 : vector<16x128xf32>
      %745 = arith.addf %737, %744 : vector<16x128xf32>
      %c11_290 = arith.constant 11 : index
      %c1_291 = arith.constant 1 : index
      %c0_292 = arith.constant 0 : index
      %746 = vector.load %arg8[%c11_290, %c1_291, %c0_292] : memref<18x18x128xf32, #tpu.memory_space<vmem>>, vector<1x16x128xf32>
      %747 = vector.shape_cast %746 : vector<1x16x128xf32> to vector<16x128xf32>
      %748 = vector.extract_strided_slice %22 {offsets = [2, 1, 0], sizes = [1, 1, 128], strides = [1, 1, 1]} : vector<3x3x128xf32> to vector<1x1x128xf32>
      %749 = vector.shape_cast %748 : vector<1x1x128xf32> to vector<128xf32>
      %750 = vector.shape_cast %749 : vector<128xf32> to vector<1x128xf32>
      %751 = vector.broadcast %750 : vector<1x128xf32> to vector<16x128xf32>
      %752 = arith.mulf %747, %751 : vector<16x128xf32>
      %753 = arith.addf %745, %752 : vector<16x128xf32>
      %c11_293 = arith.constant 11 : index
      %c2_294 = arith.constant 2 : index
      %c0_295 = arith.constant 0 : index
      %754 = vector.load %arg8[%c11_293, %c2_294, %c0_295] : memref<18x18x128xf32, #tpu.memory_space<vmem>>, vector<1x16x128xf32>
      %755 = vector.shape_cast %754 : vector<1x16x128xf32> to vector<16x128xf32>
      %756 = vector.extract_strided_slice %22 {offsets = [2, 2, 0], sizes = [1, 1, 128], strides = [1, 1, 1]} : vector<3x3x128xf32> to vector<1x1x128xf32>
      %757 = vector.shape_cast %756 : vector<1x1x128xf32> to vector<128xf32>
      %758 = vector.shape_cast %757 : vector<128xf32> to vector<1x128xf32>
      %759 = vector.broadcast %758 : vector<1x128xf32> to vector<16x128xf32>
      %760 = arith.mulf %755, %759 : vector<16x128xf32>
      %761 = arith.addf %753, %760 : vector<16x128xf32>
      %c144 = arith.constant 144 : index
      %c0_296 = arith.constant 0 : index
      %762 = vector.load %arg9[%c144, %c0_296] : memref<256x128xf32, #tpu.memory_space<vmem>>, vector<16x128xf32>
      tpu.vector_store %arg9[%c144, %c0_296], %761 {strides = array<i32>} : memref<256x128xf32, #tpu.memory_space<vmem>>, vector<16x128xf32>,
      %cst_297 = arith.constant 0.000000e+00 : f32
      %763 = vector.broadcast %cst_297 : f32 to vector<16x128xf32>
      %c10_298 = arith.constant 10 : index
      %c0_299 = arith.constant 0 : index
      %c0_300 = arith.constant 0 : index
      %764 = vector.load %arg8[%c10_298, %c0_299, %c0_300] : memref<18x18x128xf32, #tpu.memory_space<vmem>>, vector<1x16x128xf32>
      %765 = vector.shape_cast %764 : vector<1x16x128xf32> to vector<16x128xf32>
      %766 = vector.extract_strided_slice %22 {offsets = [0, 0, 0], sizes = [1, 1, 128], strides = [1, 1, 1]} : vector<3x3x128xf32> to vector<1x1x128xf32>
      %767 = vector.shape_cast %766 : vector<1x1x128xf32> to vector<128xf32>
      %768 = vector.shape_cast %767 : vector<128xf32> to vector<1x128xf32>
      %769 = vector.broadcast %768 : vector<1x128xf32> to vector<16x128xf32>
      %770 = arith.mulf %765, %769 : vector<16x128xf32>
      %771 = arith.addf %763, %770 : vector<16x128xf32>
      %c10_301 = arith.constant 10 : index
      %c1_302 = arith.constant 1 : index
      %c0_303 = arith.constant 0 : index
      %772 = vector.load %arg8[%c10_301, %c1_302, %c0_303] : memref<18x18x128xf32, #tpu.memory_space<vmem>>, vector<1x16x128xf32>
      %773 = vector.shape_cast %772 : vector<1x16x128xf32> to vector<16x128xf32>
      %774 = vector.extract_strided_slice %22 {offsets = [0, 1, 0], sizes = [1, 1, 128], strides = [1, 1, 1]} : vector<3x3x128xf32> to vector<1x1x128xf32>
      %775 = vector.shape_cast %774 : vector<1x1x128xf32> to vector<128xf32>
      %776 = vector.shape_cast %775 : vector<128xf32> to vector<1x128xf32>
      %777 = vector.broadcast %776 : vector<1x128xf32> to vector<16x128xf32>
      %778 = arith.mulf %773, %777 : vector<16x128xf32>
      %779 = arith.addf %771, %778 : vector<16x128xf32>
      %c10_304 = arith.constant 10 : index
      %c2_305 = arith.constant 2 : index
      %c0_306 = arith.constant 0 : index
      %780 = vector.load %arg8[%c10_304, %c2_305, %c0_306] : memref<18x18x128xf32, #tpu.memory_space<vmem>>, vector<1x16x128xf32>
      %781 = vector.shape_cast %780 : vector<1x16x128xf32> to vector<16x128xf32>
      %782 = vector.extract_strided_slice %22 {offsets = [0, 2, 0], sizes = [1, 1, 128], strides = [1, 1, 1]} : vector<3x3x128xf32> to vector<1x1x128xf32>
      %783 = vector.shape_cast %782 : vector<1x1x128xf32> to vector<128xf32>
      %784 = vector.shape_cast %783 : vector<128xf32> to vector<1x128xf32>
      %785 = vector.broadcast %784 : vector<1x128xf32> to vector<16x128xf32>
      %786 = arith.mulf %781, %785 : vector<16x128xf32>
      %787 = arith.addf %779, %786 : vector<16x128xf32>
      %c11_307 = arith.constant 11 : index
      %c0_308 = arith.constant 0 : index
      %c0_309 = arith.constant 0 : index
      %788 = vector.load %arg8[%c11_307, %c0_308, %c0_309] : memref<18x18x128xf32, #tpu.memory_space<vmem>>, vector<1x16x128xf32>
      %789 = vector.shape_cast %788 : vector<1x16x128xf32> to vector<16x128xf32>
      %790 = vector.extract_strided_slice %22 {offsets = [1, 0, 0], sizes = [1, 1, 128], strides = [1, 1, 1]} : vector<3x3x128xf32> to vector<1x1x128xf32>
      %791 = vector.shape_cast %790 : vector<1x1x128xf32> to vector<128xf32>
      %792 = vector.shape_cast %791 : vector<128xf32> to vector<1x128xf32>
      %793 = vector.broadcast %792 : vector<1x128xf32> to vector<16x128xf32>
      %794 = arith.mulf %789, %793 : vector<16x128xf32>
      %795 = arith.addf %787, %794 : vector<16x128xf32>
      %c11_310 = arith.constant 11 : index
      %c1_311 = arith.constant 1 : index
      %c0_312 = arith.constant 0 : index
      %796 = vector.load %arg8[%c11_310, %c1_311, %c0_312] : memref<18x18x128xf32, #tpu.memory_space<vmem>>, vector<1x16x128xf32>
      %797 = vector.shape_cast %796 : vector<1x16x128xf32> to vector<16x128xf32>
      %798 = vector.extract_strided_slice %22 {offsets = [1, 1, 0], sizes = [1, 1, 128], strides = [1, 1, 1]} : vector<3x3x128xf32> to vector<1x1x128xf32>
      %799 = vector.shape_cast %798 : vector<1x1x128xf32> to vector<128xf32>
      %800 = vector.shape_cast %799 : vector<128xf32> to vector<1x128xf32>
      %801 = vector.broadcast %800 : vector<1x128xf32> to vector<16x128xf32>
      %802 = arith.mulf %797, %801 : vector<16x128xf32>
      %803 = arith.addf %795, %802 : vector<16x128xf32>
      %c11_313 = arith.constant 11 : index
      %c2_314 = arith.constant 2 : index
      %c0_315 = arith.constant 0 : index
      %804 = vector.load %arg8[%c11_313, %c2_314, %c0_315] : memref<18x18x128xf32, #tpu.memory_space<vmem>>, vector<1x16x128xf32>
      %805 = vector.shape_cast %804 : vector<1x16x128xf32> to vector<16x128xf32>
      %806 = vector.extract_strided_slice %22 {offsets = [1, 2, 0], sizes = [1, 1, 128], strides = [1, 1, 1]} : vector<3x3x128xf32> to vector<1x1x128xf32>
      %807 = vector.shape_cast %806 : vector<1x1x128xf32> to vector<128xf32>
      %808 = vector.shape_cast %807 : vector<128xf32> to vector<1x128xf32>
      %809 = vector.broadcast %808 : vector<1x128xf32> to vector<16x128xf32>
      %810 = arith.mulf %805, %809 : vector<16x128xf32>
      %811 = arith.addf %803, %810 : vector<16x128xf32>
      %c12 = arith.constant 12 : index
      %c0_316 = arith.constant 0 : index
      %c0_317 = arith.constant 0 : index
      %812 = vector.load %arg8[%c12, %c0_316, %c0_317] : memref<18x18x128xf32, #tpu.memory_space<vmem>>, vector<1x16x128xf32>
      %813 = vector.shape_cast %812 : vector<1x16x128xf32> to vector<16x128xf32>
      %814 = vector.extract_strided_slice %22 {offsets = [2, 0, 0], sizes = [1, 1, 128], strides = [1, 1, 1]} : vector<3x3x128xf32> to vector<1x1x128xf32>
      %815 = vector.shape_cast %814 : vector<1x1x128xf32> to vector<128xf32>
      %816 = vector.shape_cast %815 : vector<128xf32> to vector<1x128xf32>
      %817 = vector.broadcast %816 : vector<1x128xf32> to vector<16x128xf32>
      %818 = arith.mulf %813, %817 : vector<16x128xf32>
      %819 = arith.addf %811, %818 : vector<16x128xf32>
      %c12_318 = arith.constant 12 : index
      %c1_319 = arith.constant 1 : index
      %c0_320 = arith.constant 0 : index
      %820 = vector.load %arg8[%c12_318, %c1_319, %c0_320] : memref<18x18x128xf32, #tpu.memory_space<vmem>>, vector<1x16x128xf32>
      %821 = vector.shape_cast %820 : vector<1x16x128xf32> to vector<16x128xf32>
      %822 = vector.extract_strided_slice %22 {offsets = [2, 1, 0], sizes = [1, 1, 128], strides = [1, 1, 1]} : vector<3x3x128xf32> to vector<1x1x128xf32>
      %823 = vector.shape_cast %822 : vector<1x1x128xf32> to vector<128xf32>
      %824 = vector.shape_cast %823 : vector<128xf32> to vector<1x128xf32>
      %825 = vector.broadcast %824 : vector<1x128xf32> to vector<16x128xf32>
      %826 = arith.mulf %821, %825 : vector<16x128xf32>
      %827 = arith.addf %819, %826 : vector<16x128xf32>
      %c12_321 = arith.constant 12 : index
      %c2_322 = arith.constant 2 : index
      %c0_323 = arith.constant 0 : index
      %828 = vector.load %arg8[%c12_321, %c2_322, %c0_323] : memref<18x18x128xf32, #tpu.memory_space<vmem>>, vector<1x16x128xf32>
      %829 = vector.shape_cast %828 : vector<1x16x128xf32> to vector<16x128xf32>
      %830 = vector.extract_strided_slice %22 {offsets = [2, 2, 0], sizes = [1, 1, 128], strides = [1, 1, 1]} : vector<3x3x128xf32> to vector<1x1x128xf32>
      %831 = vector.shape_cast %830 : vector<1x1x128xf32> to vector<128xf32>
      %832 = vector.shape_cast %831 : vector<128xf32> to vector<1x128xf32>
      %833 = vector.broadcast %832 : vector<1x128xf32> to vector<16x128xf32>
      %834 = arith.mulf %829, %833 : vector<16x128xf32>
      %835 = arith.addf %827, %834 : vector<16x128xf32>
      %c160 = arith.constant 160 : index
      %c0_324 = arith.constant 0 : index
      %836 = vector.load %arg9[%c160, %c0_324] : memref<256x128xf32, #tpu.memory_space<vmem>>, vector<16x128xf32>
      tpu.vector_store %arg9[%c160, %c0_324], %835 {strides = array<i32>} : memref<256x128xf32, #tpu.memory_space<vmem>>, vector<16x128xf32>,
      %cst_325 = arith.constant 0.000000e+00 : f32
      %837 = vector.broadcast %cst_325 : f32 to vector<16x128xf32>
      %c11_326 = arith.constant 11 : index
      %c0_327 = arith.constant 0 : index
      %c0_328 = arith.constant 0 : index
      %838 = vector.load %arg8[%c11_326, %c0_327, %c0_328] : memref<18x18x128xf32, #tpu.memory_space<vmem>>, vector<1x16x128xf32>
      %839 = vector.shape_cast %838 : vector<1x16x128xf32> to vector<16x128xf32>
      %840 = vector.extract_strided_slice %22 {offsets = [0, 0, 0], sizes = [1, 1, 128], strides = [1, 1, 1]} : vector<3x3x128xf32> to vector<1x1x128xf32>
      %841 = vector.shape_cast %840 : vector<1x1x128xf32> to vector<128xf32>
      %842 = vector.shape_cast %841 : vector<128xf32> to vector<1x128xf32>
      %843 = vector.broadcast %842 : vector<1x128xf32> to vector<16x128xf32>
      %844 = arith.mulf %839, %843 : vector<16x128xf32>
      %845 = arith.addf %837, %844 : vector<16x128xf32>
      %c11_329 = arith.constant 11 : index
      %c1_330 = arith.constant 1 : index
      %c0_331 = arith.constant 0 : index
      %846 = vector.load %arg8[%c11_329, %c1_330, %c0_331] : memref<18x18x128xf32, #tpu.memory_space<vmem>>, vector<1x16x128xf32>
      %847 = vector.shape_cast %846 : vector<1x16x128xf32> to vector<16x128xf32>
      %848 = vector.extract_strided_slice %22 {offsets = [0, 1, 0], sizes = [1, 1, 128], strides = [1, 1, 1]} : vector<3x3x128xf32> to vector<1x1x128xf32>
      %849 = vector.shape_cast %848 : vector<1x1x128xf32> to vector<128xf32>
      %850 = vector.shape_cast %849 : vector<128xf32> to vector<1x128xf32>
      %851 = vector.broadcast %850 : vector<1x128xf32> to vector<16x128xf32>
      %852 = arith.mulf %847, %851 : vector<16x128xf32>
      %853 = arith.addf %845, %852 : vector<16x128xf32>
      %c11_332 = arith.constant 11 : index
      %c2_333 = arith.constant 2 : index
      %c0_334 = arith.constant 0 : index
      %854 = vector.load %arg8[%c11_332, %c2_333, %c0_334] : memref<18x18x128xf32, #tpu.memory_space<vmem>>, vector<1x16x128xf32>
      %855 = vector.shape_cast %854 : vector<1x16x128xf32> to vector<16x128xf32>
      %856 = vector.extract_strided_slice %22 {offsets = [0, 2, 0], sizes = [1, 1, 128], strides = [1, 1, 1]} : vector<3x3x128xf32> to vector<1x1x128xf32>
      %857 = vector.shape_cast %856 : vector<1x1x128xf32> to vector<128xf32>
      %858 = vector.shape_cast %857 : vector<128xf32> to vector<1x128xf32>
      %859 = vector.broadcast %858 : vector<1x128xf32> to vector<16x128xf32>
      %860 = arith.mulf %855, %859 : vector<16x128xf32>
      %861 = arith.addf %853, %860 : vector<16x128xf32>
      %c12_335 = arith.constant 12 : index
      %c0_336 = arith.constant 0 : index
      %c0_337 = arith.constant 0 : index
      %862 = vector.load %arg8[%c12_335, %c0_336, %c0_337] : memref<18x18x128xf32, #tpu.memory_space<vmem>>, vector<1x16x128xf32>
      %863 = vector.shape_cast %862 : vector<1x16x128xf32> to vector<16x128xf32>
      %864 = vector.extract_strided_slice %22 {offsets = [1, 0, 0], sizes = [1, 1, 128], strides = [1, 1, 1]} : vector<3x3x128xf32> to vector<1x1x128xf32>
      %865 = vector.shape_cast %864 : vector<1x1x128xf32> to vector<128xf32>
      %866 = vector.shape_cast %865 : vector<128xf32> to vector<1x128xf32>
      %867 = vector.broadcast %866 : vector<1x128xf32> to vector<16x128xf32>
      %868 = arith.mulf %863, %867 : vector<16x128xf32>
      %869 = arith.addf %861, %868 : vector<16x128xf32>
      %c12_338 = arith.constant 12 : index
      %c1_339 = arith.constant 1 : index
      %c0_340 = arith.constant 0 : index
      %870 = vector.load %arg8[%c12_338, %c1_339, %c0_340] : memref<18x18x128xf32, #tpu.memory_space<vmem>>, vector<1x16x128xf32>
      %871 = vector.shape_cast %870 : vector<1x16x128xf32> to vector<16x128xf32>
      %872 = vector.extract_strided_slice %22 {offsets = [1, 1, 0], sizes = [1, 1, 128], strides = [1, 1, 1]} : vector<3x3x128xf32> to vector<1x1x128xf32>
      %873 = vector.shape_cast %872 : vector<1x1x128xf32> to vector<128xf32>
      %874 = vector.shape_cast %873 : vector<128xf32> to vector<1x128xf32>
      %875 = vector.broadcast %874 : vector<1x128xf32> to vector<16x128xf32>
      %876 = arith.mulf %871, %875 : vector<16x128xf32>
      %877 = arith.addf %869, %876 : vector<16x128xf32>
      %c12_341 = arith.constant 12 : index
      %c2_342 = arith.constant 2 : index
      %c0_343 = arith.constant 0 : index
      %878 = vector.load %arg8[%c12_341, %c2_342, %c0_343] : memref<18x18x128xf32, #tpu.memory_space<vmem>>, vector<1x16x128xf32>
      %879 = vector.shape_cast %878 : vector<1x16x128xf32> to vector<16x128xf32>
      %880 = vector.extract_strided_slice %22 {offsets = [1, 2, 0], sizes = [1, 1, 128], strides = [1, 1, 1]} : vector<3x3x128xf32> to vector<1x1x128xf32>
      %881 = vector.shape_cast %880 : vector<1x1x128xf32> to vector<128xf32>
      %882 = vector.shape_cast %881 : vector<128xf32> to vector<1x128xf32>
      %883 = vector.broadcast %882 : vector<1x128xf32> to vector<16x128xf32>
      %884 = arith.mulf %879, %883 : vector<16x128xf32>
      %885 = arith.addf %877, %884 : vector<16x128xf32>
      %c13 = arith.constant 13 : index
      %c0_344 = arith.constant 0 : index
      %c0_345 = arith.constant 0 : index
      %886 = vector.load %arg8[%c13, %c0_344, %c0_345] : memref<18x18x128xf32, #tpu.memory_space<vmem>>, vector<1x16x128xf32>
      %887 = vector.shape_cast %886 : vector<1x16x128xf32> to vector<16x128xf32>
      %888 = vector.extract_strided_slice %22 {offsets = [2, 0, 0], sizes = [1, 1, 128], strides = [1, 1, 1]} : vector<3x3x128xf32> to vector<1x1x128xf32>
      %889 = vector.shape_cast %888 : vector<1x1x128xf32> to vector<128xf32>
      %890 = vector.shape_cast %889 : vector<128xf32> to vector<1x128xf32>
      %891 = vector.broadcast %890 : vector<1x128xf32> to vector<16x128xf32>
      %892 = arith.mulf %887, %891 : vector<16x128xf32>
      %893 = arith.addf %885, %892 : vector<16x128xf32>
      %c13_346 = arith.constant 13 : index
      %c1_347 = arith.constant 1 : index
      %c0_348 = arith.constant 0 : index
      %894 = vector.load %arg8[%c13_346, %c1_347, %c0_348] : memref<18x18x128xf32, #tpu.memory_space<vmem>>, vector<1x16x128xf32>
      %895 = vector.shape_cast %894 : vector<1x16x128xf32> to vector<16x128xf32>
      %896 = vector.extract_strided_slice %22 {offsets = [2, 1, 0], sizes = [1, 1, 128], strides = [1, 1, 1]} : vector<3x3x128xf32> to vector<1x1x128xf32>
      %897 = vector.shape_cast %896 : vector<1x1x128xf32> to vector<128xf32>
      %898 = vector.shape_cast %897 : vector<128xf32> to vector<1x128xf32>
      %899 = vector.broadcast %898 : vector<1x128xf32> to vector<16x128xf32>
      %900 = arith.mulf %895, %899 : vector<16x128xf32>
      %901 = arith.addf %893, %900 : vector<16x128xf32>
      %c13_349 = arith.constant 13 : index
      %c2_350 = arith.constant 2 : index
      %c0_351 = arith.constant 0 : index
      %902 = vector.load %arg8[%c13_349, %c2_350, %c0_351] : memref<18x18x128xf32, #tpu.memory_space<vmem>>, vector<1x16x128xf32>
      %903 = vector.shape_cast %902 : vector<1x16x128xf32> to vector<16x128xf32>
      %904 = vector.extract_strided_slice %22 {offsets = [2, 2, 0], sizes = [1, 1, 128], strides = [1, 1, 1]} : vector<3x3x128xf32> to vector<1x1x128xf32>
      %905 = vector.shape_cast %904 : vector<1x1x128xf32> to vector<128xf32>
      %906 = vector.shape_cast %905 : vector<128xf32> to vector<1x128xf32>
      %907 = vector.broadcast %906 : vector<1x128xf32> to vector<16x128xf32>
      %908 = arith.mulf %903, %907 : vector<16x128xf32>
      %909 = arith.addf %901, %908 : vector<16x128xf32>
      %c176 = arith.constant 176 : index
      %c0_352 = arith.constant 0 : index
      %910 = vector.load %arg9[%c176, %c0_352] : memref<256x128xf32, #tpu.memory_space<vmem>>, vector<16x128xf32>
      tpu.vector_store %arg9[%c176, %c0_352], %909 {strides = array<i32>} : memref<256x128xf32, #tpu.memory_space<vmem>>, vector<16x128xf32>,
      %cst_353 = arith.constant 0.000000e+00 : f32
      %911 = vector.broadcast %cst_353 : f32 to vector<16x128xf32>
      %c12_354 = arith.constant 12 : index
      %c0_355 = arith.constant 0 : index
      %c0_356 = arith.constant 0 : index
      %912 = vector.load %arg8[%c12_354, %c0_355, %c0_356] : memref<18x18x128xf32, #tpu.memory_space<vmem>>, vector<1x16x128xf32>
      %913 = vector.shape_cast %912 : vector<1x16x128xf32> to vector<16x128xf32>
      %914 = vector.extract_strided_slice %22 {offsets = [0, 0, 0], sizes = [1, 1, 128], strides = [1, 1, 1]} : vector<3x3x128xf32> to vector<1x1x128xf32>
      %915 = vector.shape_cast %914 : vector<1x1x128xf32> to vector<128xf32>
      %916 = vector.shape_cast %915 : vector<128xf32> to vector<1x128xf32>
      %917 = vector.broadcast %916 : vector<1x128xf32> to vector<16x128xf32>
      %918 = arith.mulf %913, %917 : vector<16x128xf32>
      %919 = arith.addf %911, %918 : vector<16x128xf32>
      %c12_357 = arith.constant 12 : index
      %c1_358 = arith.constant 1 : index
      %c0_359 = arith.constant 0 : index
      %920 = vector.load %arg8[%c12_357, %c1_358, %c0_359] : memref<18x18x128xf32, #tpu.memory_space<vmem>>, vector<1x16x128xf32>
      %921 = vector.shape_cast %920 : vector<1x16x128xf32> to vector<16x128xf32>
      %922 = vector.extract_strided_slice %22 {offsets = [0, 1, 0], sizes = [1, 1, 128], strides = [1, 1, 1]} : vector<3x3x128xf32> to vector<1x1x128xf32>
      %923 = vector.shape_cast %922 : vector<1x1x128xf32> to vector<128xf32>
      %924 = vector.shape_cast %923 : vector<128xf32> to vector<1x128xf32>
      %925 = vector.broadcast %924 : vector<1x128xf32> to vector<16x128xf32>
      %926 = arith.mulf %921, %925 : vector<16x128xf32>
      %927 = arith.addf %919, %926 : vector<16x128xf32>
      %c12_360 = arith.constant 12 : index
      %c2_361 = arith.constant 2 : index
      %c0_362 = arith.constant 0 : index
      %928 = vector.load %arg8[%c12_360, %c2_361, %c0_362] : memref<18x18x128xf32, #tpu.memory_space<vmem>>, vector<1x16x128xf32>
      %929 = vector.shape_cast %928 : vector<1x16x128xf32> to vector<16x128xf32>
      %930 = vector.extract_strided_slice %22 {offsets = [0, 2, 0], sizes = [1, 1, 128], strides = [1, 1, 1]} : vector<3x3x128xf32> to vector<1x1x128xf32>
      %931 = vector.shape_cast %930 : vector<1x1x128xf32> to vector<128xf32>
      %932 = vector.shape_cast %931 : vector<128xf32> to vector<1x128xf32>
      %933 = vector.broadcast %932 : vector<1x128xf32> to vector<16x128xf32>
      %934 = arith.mulf %929, %933 : vector<16x128xf32>
      %935 = arith.addf %927, %934 : vector<16x128xf32>
      %c13_363 = arith.constant 13 : index
      %c0_364 = arith.constant 0 : index
      %c0_365 = arith.constant 0 : index
      %936 = vector.load %arg8[%c13_363, %c0_364, %c0_365] : memref<18x18x128xf32, #tpu.memory_space<vmem>>, vector<1x16x128xf32>
      %937 = vector.shape_cast %936 : vector<1x16x128xf32> to vector<16x128xf32>
      %938 = vector.extract_strided_slice %22 {offsets = [1, 0, 0], sizes = [1, 1, 128], strides = [1, 1, 1]} : vector<3x3x128xf32> to vector<1x1x128xf32>
      %939 = vector.shape_cast %938 : vector<1x1x128xf32> to vector<128xf32>
      %940 = vector.shape_cast %939 : vector<128xf32> to vector<1x128xf32>
      %941 = vector.broadcast %940 : vector<1x128xf32> to vector<16x128xf32>
      %942 = arith.mulf %937, %941 : vector<16x128xf32>
      %943 = arith.addf %935, %942 : vector<16x128xf32>
      %c13_366 = arith.constant 13 : index
      %c1_367 = arith.constant 1 : index
      %c0_368 = arith.constant 0 : index
      %944 = vector.load %arg8[%c13_366, %c1_367, %c0_368] : memref<18x18x128xf32, #tpu.memory_space<vmem>>, vector<1x16x128xf32>
      %945 = vector.shape_cast %944 : vector<1x16x128xf32> to vector<16x128xf32>
      %946 = vector.extract_strided_slice %22 {offsets = [1, 1, 0], sizes = [1, 1, 128], strides = [1, 1, 1]} : vector<3x3x128xf32> to vector<1x1x128xf32>
      %947 = vector.shape_cast %946 : vector<1x1x128xf32> to vector<128xf32>
      %948 = vector.shape_cast %947 : vector<128xf32> to vector<1x128xf32>
      %949 = vector.broadcast %948 : vector<1x128xf32> to vector<16x128xf32>
      %950 = arith.mulf %945, %949 : vector<16x128xf32>
      %951 = arith.addf %943, %950 : vector<16x128xf32>
      %c13_369 = arith.constant 13 : index
      %c2_370 = arith.constant 2 : index
      %c0_371 = arith.constant 0 : index
      %952 = vector.load %arg8[%c13_369, %c2_370, %c0_371] : memref<18x18x128xf32, #tpu.memory_space<vmem>>, vector<1x16x128xf32>
      %953 = vector.shape_cast %952 : vector<1x16x128xf32> to vector<16x128xf32>
      %954 = vector.extract_strided_slice %22 {offsets = [1, 2, 0], sizes = [1, 1, 128], strides = [1, 1, 1]} : vector<3x3x128xf32> to vector<1x1x128xf32>
      %955 = vector.shape_cast %954 : vector<1x1x128xf32> to vector<128xf32>
      %956 = vector.shape_cast %955 : vector<128xf32> to vector<1x128xf32>
      %957 = vector.broadcast %956 : vector<1x128xf32> to vector<16x128xf32>
      %958 = arith.mulf %953, %957 : vector<16x128xf32>
      %959 = arith.addf %951, %958 : vector<16x128xf32>
      %c14 = arith.constant 14 : index
      %c0_372 = arith.constant 0 : index
      %c0_373 = arith.constant 0 : index
      %960 = vector.load %arg8[%c14, %c0_372, %c0_373] : memref<18x18x128xf32, #tpu.memory_space<vmem>>, vector<1x16x128xf32>
      %961 = vector.shape_cast %960 : vector<1x16x128xf32> to vector<16x128xf32>
      %962 = vector.extract_strided_slice %22 {offsets = [2, 0, 0], sizes = [1, 1, 128], strides = [1, 1, 1]} : vector<3x3x128xf32> to vector<1x1x128xf32>
      %963 = vector.shape_cast %962 : vector<1x1x128xf32> to vector<128xf32>
      %964 = vector.shape_cast %963 : vector<128xf32> to vector<1x128xf32>
      %965 = vector.broadcast %964 : vector<1x128xf32> to vector<16x128xf32>
      %966 = arith.mulf %961, %965 : vector<16x128xf32>
      %967 = arith.addf %959, %966 : vector<16x128xf32>
      %c14_374 = arith.constant 14 : index
      %c1_375 = arith.constant 1 : index
      %c0_376 = arith.constant 0 : index
      %968 = vector.load %arg8[%c14_374, %c1_375, %c0_376] : memref<18x18x128xf32, #tpu.memory_space<vmem>>, vector<1x16x128xf32>
      %969 = vector.shape_cast %968 : vector<1x16x128xf32> to vector<16x128xf32>
      %970 = vector.extract_strided_slice %22 {offsets = [2, 1, 0], sizes = [1, 1, 128], strides = [1, 1, 1]} : vector<3x3x128xf32> to vector<1x1x128xf32>
      %971 = vector.shape_cast %970 : vector<1x1x128xf32> to vector<128xf32>
      %972 = vector.shape_cast %971 : vector<128xf32> to vector<1x128xf32>
      %973 = vector.broadcast %972 : vector<1x128xf32> to vector<16x128xf32>
      %974 = arith.mulf %969, %973 : vector<16x128xf32>
      %975 = arith.addf %967, %974 : vector<16x128xf32>
      %c14_377 = arith.constant 14 : index
      %c2_378 = arith.constant 2 : index
      %c0_379 = arith.constant 0 : index
      %976 = vector.load %arg8[%c14_377, %c2_378, %c0_379] : memref<18x18x128xf32, #tpu.memory_space<vmem>>, vector<1x16x128xf32>
      %977 = vector.shape_cast %976 : vector<1x16x128xf32> to vector<16x128xf32>
      %978 = vector.extract_strided_slice %22 {offsets = [2, 2, 0], sizes = [1, 1, 128], strides = [1, 1, 1]} : vector<3x3x128xf32> to vector<1x1x128xf32>
      %979 = vector.shape_cast %978 : vector<1x1x128xf32> to vector<128xf32>
      %980 = vector.shape_cast %979 : vector<128xf32> to vector<1x128xf32>
      %981 = vector.broadcast %980 : vector<1x128xf32> to vector<16x128xf32>
      %982 = arith.mulf %977, %981 : vector<16x128xf32>
      %983 = arith.addf %975, %982 : vector<16x128xf32>
      %c192 = arith.constant 192 : index
      %c0_380 = arith.constant 0 : index
      %984 = vector.load %arg9[%c192, %c0_380] : memref<256x128xf32, #tpu.memory_space<vmem>>, vector<16x128xf32>
      tpu.vector_store %arg9[%c192, %c0_380], %983 {strides = array<i32>} : memref<256x128xf32, #tpu.memory_space<vmem>>, vector<16x128xf32>,
      %cst_381 = arith.constant 0.000000e+00 : f32
      %985 = vector.broadcast %cst_381 : f32 to vector<16x128xf32>
      %c13_382 = arith.constant 13 : index
      %c0_383 = arith.constant 0 : index
      %c0_384 = arith.constant 0 : index
      %986 = vector.load %arg8[%c13_382, %c0_383, %c0_384] : memref<18x18x128xf32, #tpu.memory_space<vmem>>, vector<1x16x128xf32>
      %987 = vector.shape_cast %986 : vector<1x16x128xf32> to vector<16x128xf32>
      %988 = vector.extract_strided_slice %22 {offsets = [0, 0, 0], sizes = [1, 1, 128], strides = [1, 1, 1]} : vector<3x3x128xf32> to vector<1x1x128xf32>
      %989 = vector.shape_cast %988 : vector<1x1x128xf32> to vector<128xf32>
      %990 = vector.shape_cast %989 : vector<128xf32> to vector<1x128xf32>
      %991 = vector.broadcast %990 : vector<1x128xf32> to vector<16x128xf32>
      %992 = arith.mulf %987, %991 : vector<16x128xf32>
      %993 = arith.addf %985, %992 : vector<16x128xf32>
      %c13_385 = arith.constant 13 : index
      %c1_386 = arith.constant 1 : index
      %c0_387 = arith.constant 0 : index
      %994 = vector.load %arg8[%c13_385, %c1_386, %c0_387] : memref<18x18x128xf32, #tpu.memory_space<vmem>>, vector<1x16x128xf32>
      %995 = vector.shape_cast %994 : vector<1x16x128xf32> to vector<16x128xf32>
      %996 = vector.extract_strided_slice %22 {offsets = [0, 1, 0], sizes = [1, 1, 128], strides = [1, 1, 1]} : vector<3x3x128xf32> to vector<1x1x128xf32>
      %997 = vector.shape_cast %996 : vector<1x1x128xf32> to vector<128xf32>
      %998 = vector.shape_cast %997 : vector<128xf32> to vector<1x128xf32>
      %999 = vector.broadcast %998 : vector<1x128xf32> to vector<16x128xf32>
      %1000 = arith.mulf %995, %999 : vector<16x128xf32>
      %1001 = arith.addf %993, %1000 : vector<16x128xf32>
      %c13_388 = arith.constant 13 : index
      %c2_389 = arith.constant 2 : index
      %c0_390 = arith.constant 0 : index
      %1002 = vector.load %arg8[%c13_388, %c2_389, %c0_390] : memref<18x18x128xf32, #tpu.memory_space<vmem>>, vector<1x16x128xf32>
      %1003 = vector.shape_cast %1002 : vector<1x16x128xf32> to vector<16x128xf32>
      %1004 = vector.extract_strided_slice %22 {offsets = [0, 2, 0], sizes = [1, 1, 128], strides = [1, 1, 1]} : vector<3x3x128xf32> to vector<1x1x128xf32>
      %1005 = vector.shape_cast %1004 : vector<1x1x128xf32> to vector<128xf32>
      %1006 = vector.shape_cast %1005 : vector<128xf32> to vector<1x128xf32>
      %1007 = vector.broadcast %1006 : vector<1x128xf32> to vector<16x128xf32>
      %1008 = arith.mulf %1003, %1007 : vector<16x128xf32>
      %1009 = arith.addf %1001, %1008 : vector<16x128xf32>
      %c14_391 = arith.constant 14 : index
      %c0_392 = arith.constant 0 : index
      %c0_393 = arith.constant 0 : index
      %1010 = vector.load %arg8[%c14_391, %c0_392, %c0_393] : memref<18x18x128xf32, #tpu.memory_space<vmem>>, vector<1x16x128xf32>
      %1011 = vector.shape_cast %1010 : vector<1x16x128xf32> to vector<16x128xf32>
      %1012 = vector.extract_strided_slice %22 {offsets = [1, 0, 0], sizes = [1, 1, 128], strides = [1, 1, 1]} : vector<3x3x128xf32> to vector<1x1x128xf32>
      %1013 = vector.shape_cast %1012 : vector<1x1x128xf32> to vector<128xf32>
      %1014 = vector.shape_cast %1013 : vector<128xf32> to vector<1x128xf32>
      %1015 = vector.broadcast %1014 : vector<1x128xf32> to vector<16x128xf32>
      %1016 = arith.mulf %1011, %1015 : vector<16x128xf32>
      %1017 = arith.addf %1009, %1016 : vector<16x128xf32>
      %c14_394 = arith.constant 14 : index
      %c1_395 = arith.constant 1 : index
      %c0_396 = arith.constant 0 : index
      %1018 = vector.load %arg8[%c14_394, %c1_395, %c0_396] : memref<18x18x128xf32, #tpu.memory_space<vmem>>, vector<1x16x128xf32>
      %1019 = vector.shape_cast %1018 : vector<1x16x128xf32> to vector<16x128xf32>
      %1020 = vector.extract_strided_slice %22 {offsets = [1, 1, 0], sizes = [1, 1, 128], strides = [1, 1, 1]} : vector<3x3x128xf32> to vector<1x1x128xf32>
      %1021 = vector.shape_cast %1020 : vector<1x1x128xf32> to vector<128xf32>
      %1022 = vector.shape_cast %1021 : vector<128xf32> to vector<1x128xf32>
      %1023 = vector.broadcast %1022 : vector<1x128xf32> to vector<16x128xf32>
      %1024 = arith.mulf %1019, %1023 : vector<16x128xf32>
      %1025 = arith.addf %1017, %1024 : vector<16x128xf32>
      %c14_397 = arith.constant 14 : index
      %c2_398 = arith.constant 2 : index
      %c0_399 = arith.constant 0 : index
      %1026 = vector.load %arg8[%c14_397, %c2_398, %c0_399] : memref<18x18x128xf32, #tpu.memory_space<vmem>>, vector<1x16x128xf32>
      %1027 = vector.shape_cast %1026 : vector<1x16x128xf32> to vector<16x128xf32>
      %1028 = vector.extract_strided_slice %22 {offsets = [1, 2, 0], sizes = [1, 1, 128], strides = [1, 1, 1]} : vector<3x3x128xf32> to vector<1x1x128xf32>
      %1029 = vector.shape_cast %1028 : vector<1x1x128xf32> to vector<128xf32>
      %1030 = vector.shape_cast %1029 : vector<128xf32> to vector<1x128xf32>
      %1031 = vector.broadcast %1030 : vector<1x128xf32> to vector<16x128xf32>
      %1032 = arith.mulf %1027, %1031 : vector<16x128xf32>
      %1033 = arith.addf %1025, %1032 : vector<16x128xf32>
      %c15 = arith.constant 15 : index
      %c0_400 = arith.constant 0 : index
      %c0_401 = arith.constant 0 : index
      %1034 = vector.load %arg8[%c15, %c0_400, %c0_401] : memref<18x18x128xf32, #tpu.memory_space<vmem>>, vector<1x16x128xf32>
      %1035 = vector.shape_cast %1034 : vector<1x16x128xf32> to vector<16x128xf32>
      %1036 = vector.extract_strided_slice %22 {offsets = [2, 0, 0], sizes = [1, 1, 128], strides = [1, 1, 1]} : vector<3x3x128xf32> to vector<1x1x128xf32>
      %1037 = vector.shape_cast %1036 : vector<1x1x128xf32> to vector<128xf32>
      %1038 = vector.shape_cast %1037 : vector<128xf32> to vector<1x128xf32>
      %1039 = vector.broadcast %1038 : vector<1x128xf32> to vector<16x128xf32>
      %1040 = arith.mulf %1035, %1039 : vector<16x128xf32>
      %1041 = arith.addf %1033, %1040 : vector<16x128xf32>
      %c15_402 = arith.constant 15 : index
      %c1_403 = arith.constant 1 : index
      %c0_404 = arith.constant 0 : index
      %1042 = vector.load %arg8[%c15_402, %c1_403, %c0_404] : memref<18x18x128xf32, #tpu.memory_space<vmem>>, vector<1x16x128xf32>
      %1043 = vector.shape_cast %1042 : vector<1x16x128xf32> to vector<16x128xf32>
      %1044 = vector.extract_strided_slice %22 {offsets = [2, 1, 0], sizes = [1, 1, 128], strides = [1, 1, 1]} : vector<3x3x128xf32> to vector<1x1x128xf32>
      %1045 = vector.shape_cast %1044 : vector<1x1x128xf32> to vector<128xf32>
      %1046 = vector.shape_cast %1045 : vector<128xf32> to vector<1x128xf32>
      %1047 = vector.broadcast %1046 : vector<1x128xf32> to vector<16x128xf32>
      %1048 = arith.mulf %1043, %1047 : vector<16x128xf32>
      %1049 = arith.addf %1041, %1048 : vector<16x128xf32>
      %c15_405 = arith.constant 15 : index
      %c2_406 = arith.constant 2 : index
      %c0_407 = arith.constant 0 : index
      %1050 = vector.load %arg8[%c15_405, %c2_406, %c0_407] : memref<18x18x128xf32, #tpu.memory_space<vmem>>, vector<1x16x128xf32>
      %1051 = vector.shape_cast %1050 : vector<1x16x128xf32> to vector<16x128xf32>
      %1052 = vector.extract_strided_slice %22 {offsets = [2, 2, 0], sizes = [1, 1, 128], strides = [1, 1, 1]} : vector<3x3x128xf32> to vector<1x1x128xf32>
      %1053 = vector.shape_cast %1052 : vector<1x1x128xf32> to vector<128xf32>
      %1054 = vector.shape_cast %1053 : vector<128xf32> to vector<1x128xf32>
      %1055 = vector.broadcast %1054 : vector<1x128xf32> to vector<16x128xf32>
      %1056 = arith.mulf %1051, %1055 : vector<16x128xf32>
      %1057 = arith.addf %1049, %1056 : vector<16x128xf32>
      %c208 = arith.constant 208 : index
      %c0_408 = arith.constant 0 : index
      %1058 = vector.load %arg9[%c208, %c0_408] : memref<256x128xf32, #tpu.memory_space<vmem>>, vector<16x128xf32>
      tpu.vector_store %arg9[%c208, %c0_408], %1057 {strides = array<i32>} : memref<256x128xf32, #tpu.memory_space<vmem>>, vector<16x128xf32>,
      %cst_409 = arith.constant 0.000000e+00 : f32
      %1059 = vector.broadcast %cst_409 : f32 to vector<16x128xf32>
      %c14_410 = arith.constant 14 : index
      %c0_411 = arith.constant 0 : index
      %c0_412 = arith.constant 0 : index
      %1060 = vector.load %arg8[%c14_410, %c0_411, %c0_412] : memref<18x18x128xf32, #tpu.memory_space<vmem>>, vector<1x16x128xf32>
      %1061 = vector.shape_cast %1060 : vector<1x16x128xf32> to vector<16x128xf32>
      %1062 = vector.extract_strided_slice %22 {offsets = [0, 0, 0], sizes = [1, 1, 128], strides = [1, 1, 1]} : vector<3x3x128xf32> to vector<1x1x128xf32>
      %1063 = vector.shape_cast %1062 : vector<1x1x128xf32> to vector<128xf32>
      %1064 = vector.shape_cast %1063 : vector<128xf32> to vector<1x128xf32>
      %1065 = vector.broadcast %1064 : vector<1x128xf32> to vector<16x128xf32>
      %1066 = arith.mulf %1061, %1065 : vector<16x128xf32>
      %1067 = arith.addf %1059, %1066 : vector<16x128xf32>
      %c14_413 = arith.constant 14 : index
      %c1_414 = arith.constant 1 : index
      %c0_415 = arith.constant 0 : index
      %1068 = vector.load %arg8[%c14_413, %c1_414, %c0_415] : memref<18x18x128xf32, #tpu.memory_space<vmem>>, vector<1x16x128xf32>
      %1069 = vector.shape_cast %1068 : vector<1x16x128xf32> to vector<16x128xf32>
      %1070 = vector.extract_strided_slice %22 {offsets = [0, 1, 0], sizes = [1, 1, 128], strides = [1, 1, 1]} : vector<3x3x128xf32> to vector<1x1x128xf32>
      %1071 = vector.shape_cast %1070 : vector<1x1x128xf32> to vector<128xf32>
      %1072 = vector.shape_cast %1071 : vector<128xf32> to vector<1x128xf32>
      %1073 = vector.broadcast %1072 : vector<1x128xf32> to vector<16x128xf32>
      %1074 = arith.mulf %1069, %1073 : vector<16x128xf32>
      %1075 = arith.addf %1067, %1074 : vector<16x128xf32>
      %c14_416 = arith.constant 14 : index
      %c2_417 = arith.constant 2 : index
      %c0_418 = arith.constant 0 : index
      %1076 = vector.load %arg8[%c14_416, %c2_417, %c0_418] : memref<18x18x128xf32, #tpu.memory_space<vmem>>, vector<1x16x128xf32>
      %1077 = vector.shape_cast %1076 : vector<1x16x128xf32> to vector<16x128xf32>
      %1078 = vector.extract_strided_slice %22 {offsets = [0, 2, 0], sizes = [1, 1, 128], strides = [1, 1, 1]} : vector<3x3x128xf32> to vector<1x1x128xf32>
      %1079 = vector.shape_cast %1078 : vector<1x1x128xf32> to vector<128xf32>
      %1080 = vector.shape_cast %1079 : vector<128xf32> to vector<1x128xf32>
      %1081 = vector.broadcast %1080 : vector<1x128xf32> to vector<16x128xf32>
      %1082 = arith.mulf %1077, %1081 : vector<16x128xf32>
      %1083 = arith.addf %1075, %1082 : vector<16x128xf32>
      %c15_419 = arith.constant 15 : index
      %c0_420 = arith.constant 0 : index
      %c0_421 = arith.constant 0 : index
      %1084 = vector.load %arg8[%c15_419, %c0_420, %c0_421] : memref<18x18x128xf32, #tpu.memory_space<vmem>>, vector<1x16x128xf32>
      %1085 = vector.shape_cast %1084 : vector<1x16x128xf32> to vector<16x128xf32>
      %1086 = vector.extract_strided_slice %22 {offsets = [1, 0, 0], sizes = [1, 1, 128], strides = [1, 1, 1]} : vector<3x3x128xf32> to vector<1x1x128xf32>
      %1087 = vector.shape_cast %1086 : vector<1x1x128xf32> to vector<128xf32>
      %1088 = vector.shape_cast %1087 : vector<128xf32> to vector<1x128xf32>
      %1089 = vector.broadcast %1088 : vector<1x128xf32> to vector<16x128xf32>
      %1090 = arith.mulf %1085, %1089 : vector<16x128xf32>
      %1091 = arith.addf %1083, %1090 : vector<16x128xf32>
      %c15_422 = arith.constant 15 : index
      %c1_423 = arith.constant 1 : index
      %c0_424 = arith.constant 0 : index
      %1092 = vector.load %arg8[%c15_422, %c1_423, %c0_424] : memref<18x18x128xf32, #tpu.memory_space<vmem>>, vector<1x16x128xf32>
      %1093 = vector.shape_cast %1092 : vector<1x16x128xf32> to vector<16x128xf32>
      %1094 = vector.extract_strided_slice %22 {offsets = [1, 1, 0], sizes = [1, 1, 128], strides = [1, 1, 1]} : vector<3x3x128xf32> to vector<1x1x128xf32>
      %1095 = vector.shape_cast %1094 : vector<1x1x128xf32> to vector<128xf32>
      %1096 = vector.shape_cast %1095 : vector<128xf32> to vector<1x128xf32>
      %1097 = vector.broadcast %1096 : vector<1x128xf32> to vector<16x128xf32>
      %1098 = arith.mulf %1093, %1097 : vector<16x128xf32>
      %1099 = arith.addf %1091, %1098 : vector<16x128xf32>
      %c15_425 = arith.constant 15 : index
      %c2_426 = arith.constant 2 : index
      %c0_427 = arith.constant 0 : index
      %1100 = vector.load %arg8[%c15_425, %c2_426, %c0_427] : memref<18x18x128xf32, #tpu.memory_space<vmem>>, vector<1x16x128xf32>
      %1101 = vector.shape_cast %1100 : vector<1x16x128xf32> to vector<16x128xf32>
      %1102 = vector.extract_strided_slice %22 {offsets = [1, 2, 0], sizes = [1, 1, 128], strides = [1, 1, 1]} : vector<3x3x128xf32> to vector<1x1x128xf32>
      %1103 = vector.shape_cast %1102 : vector<1x1x128xf32> to vector<128xf32>
      %1104 = vector.shape_cast %1103 : vector<128xf32> to vector<1x128xf32>
      %1105 = vector.broadcast %1104 : vector<1x128xf32> to vector<16x128xf32>
      %1106 = arith.mulf %1101, %1105 : vector<16x128xf32>
      %1107 = arith.addf %1099, %1106 : vector<16x128xf32>
      %c16_428 = arith.constant 16 : index
      %c0_429 = arith.constant 0 : index
      %c0_430 = arith.constant 0 : index
      %1108 = vector.load %arg8[%c16_428, %c0_429, %c0_430] : memref<18x18x128xf32, #tpu.memory_space<vmem>>, vector<1x16x128xf32>
      %1109 = vector.shape_cast %1108 : vector<1x16x128xf32> to vector<16x128xf32>
      %1110 = vector.extract_strided_slice %22 {offsets = [2, 0, 0], sizes = [1, 1, 128], strides = [1, 1, 1]} : vector<3x3x128xf32> to vector<1x1x128xf32>
      %1111 = vector.shape_cast %1110 : vector<1x1x128xf32> to vector<128xf32>
      %1112 = vector.shape_cast %1111 : vector<128xf32> to vector<1x128xf32>
      %1113 = vector.broadcast %1112 : vector<1x128xf32> to vector<16x128xf32>
      %1114 = arith.mulf %1109, %1113 : vector<16x128xf32>
      %1115 = arith.addf %1107, %1114 : vector<16x128xf32>
      %c16_431 = arith.constant 16 : index
      %c1_432 = arith.constant 1 : index
      %c0_433 = arith.constant 0 : index
      %1116 = vector.load %arg8[%c16_431, %c1_432, %c0_433] : memref<18x18x128xf32, #tpu.memory_space<vmem>>, vector<1x16x128xf32>
      %1117 = vector.shape_cast %1116 : vector<1x16x128xf32> to vector<16x128xf32>
      %1118 = vector.extract_strided_slice %22 {offsets = [2, 1, 0], sizes = [1, 1, 128], strides = [1, 1, 1]} : vector<3x3x128xf32> to vector<1x1x128xf32>
      %1119 = vector.shape_cast %1118 : vector<1x1x128xf32> to vector<128xf32>
      %1120 = vector.shape_cast %1119 : vector<128xf32> to vector<1x128xf32>
      %1121 = vector.broadcast %1120 : vector<1x128xf32> to vector<16x128xf32>
      %1122 = arith.mulf %1117, %1121 : vector<16x128xf32>
      %1123 = arith.addf %1115, %1122 : vector<16x128xf32>
      %c16_434 = arith.constant 16 : index
      %c2_435 = arith.constant 2 : index
      %c0_436 = arith.constant 0 : index
      %1124 = vector.load %arg8[%c16_434, %c2_435, %c0_436] : memref<18x18x128xf32, #tpu.memory_space<vmem>>, vector<1x16x128xf32>
      %1125 = vector.shape_cast %1124 : vector<1x16x128xf32> to vector<16x128xf32>
      %1126 = vector.extract_strided_slice %22 {offsets = [2, 2, 0], sizes = [1, 1, 128], strides = [1, 1, 1]} : vector<3x3x128xf32> to vector<1x1x128xf32>
      %1127 = vector.shape_cast %1126 : vector<1x1x128xf32> to vector<128xf32>
      %1128 = vector.shape_cast %1127 : vector<128xf32> to vector<1x128xf32>
      %1129 = vector.broadcast %1128 : vector<1x128xf32> to vector<16x128xf32>
      %1130 = arith.mulf %1125, %1129 : vector<16x128xf32>
      %1131 = arith.addf %1123, %1130 : vector<16x128xf32>
      %c224 = arith.constant 224 : index
      %c0_437 = arith.constant 0 : index
      %1132 = vector.load %arg9[%c224, %c0_437] : memref<256x128xf32, #tpu.memory_space<vmem>>, vector<16x128xf32>
      tpu.vector_store %arg9[%c224, %c0_437], %1131 {strides = array<i32>} : memref<256x128xf32, #tpu.memory_space<vmem>>, vector<16x128xf32>,
      %cst_438 = arith.constant 0.000000e+00 : f32
      %1133 = vector.broadcast %cst_438 : f32 to vector<16x128xf32>
      %c15_439 = arith.constant 15 : index
      %c0_440 = arith.constant 0 : index
      %c0_441 = arith.constant 0 : index
      %1134 = vector.load %arg8[%c15_439, %c0_440, %c0_441] : memref<18x18x128xf32, #tpu.memory_space<vmem>>, vector<1x16x128xf32>
      %1135 = vector.shape_cast %1134 : vector<1x16x128xf32> to vector<16x128xf32>
      %1136 = vector.extract_strided_slice %22 {offsets = [0, 0, 0], sizes = [1, 1, 128], strides = [1, 1, 1]} : vector<3x3x128xf32> to vector<1x1x128xf32>
      %1137 = vector.shape_cast %1136 : vector<1x1x128xf32> to vector<128xf32>
      %1138 = vector.shape_cast %1137 : vector<128xf32> to vector<1x128xf32>
      %1139 = vector.broadcast %1138 : vector<1x128xf32> to vector<16x128xf32>
      %1140 = arith.mulf %1135, %1139 : vector<16x128xf32>
      %1141 = arith.addf %1133, %1140 : vector<16x128xf32>
      %c15_442 = arith.constant 15 : index
      %c1_443 = arith.constant 1 : index
      %c0_444 = arith.constant 0 : index
      %1142 = vector.load %arg8[%c15_442, %c1_443, %c0_444] : memref<18x18x128xf32, #tpu.memory_space<vmem>>, vector<1x16x128xf32>
      %1143 = vector.shape_cast %1142 : vector<1x16x128xf32> to vector<16x128xf32>
      %1144 = vector.extract_strided_slice %22 {offsets = [0, 1, 0], sizes = [1, 1, 128], strides = [1, 1, 1]} : vector<3x3x128xf32> to vector<1x1x128xf32>
      %1145 = vector.shape_cast %1144 : vector<1x1x128xf32> to vector<128xf32>
      %1146 = vector.shape_cast %1145 : vector<128xf32> to vector<1x128xf32>
      %1147 = vector.broadcast %1146 : vector<1x128xf32> to vector<16x128xf32>
      %1148 = arith.mulf %1143, %1147 : vector<16x128xf32>
      %1149 = arith.addf %1141, %1148 : vector<16x128xf32>
      %c15_445 = arith.constant 15 : index
      %c2_446 = arith.constant 2 : index
      %c0_447 = arith.constant 0 : index
      %1150 = vector.load %arg8[%c15_445, %c2_446, %c0_447] : memref<18x18x128xf32, #tpu.memory_space<vmem>>, vector<1x16x128xf32>
      %1151 = vector.shape_cast %1150 : vector<1x16x128xf32> to vector<16x128xf32>
      %1152 = vector.extract_strided_slice %22 {offsets = [0, 2, 0], sizes = [1, 1, 128], strides = [1, 1, 1]} : vector<3x3x128xf32> to vector<1x1x128xf32>
      %1153 = vector.shape_cast %1152 : vector<1x1x128xf32> to vector<128xf32>
      %1154 = vector.shape_cast %1153 : vector<128xf32> to vector<1x128xf32>
      %1155 = vector.broadcast %1154 : vector<1x128xf32> to vector<16x128xf32>
      %1156 = arith.mulf %1151, %1155 : vector<16x128xf32>
      %1157 = arith.addf %1149, %1156 : vector<16x128xf32>
      %c16_448 = arith.constant 16 : index
      %c0_449 = arith.constant 0 : index
      %c0_450 = arith.constant 0 : index
      %1158 = vector.load %arg8[%c16_448, %c0_449, %c0_450] : memref<18x18x128xf32, #tpu.memory_space<vmem>>, vector<1x16x128xf32>
      %1159 = vector.shape_cast %1158 : vector<1x16x128xf32> to vector<16x128xf32>
      %1160 = vector.extract_strided_slice %22 {offsets = [1, 0, 0], sizes = [1, 1, 128], strides = [1, 1, 1]} : vector<3x3x128xf32> to vector<1x1x128xf32>
      %1161 = vector.shape_cast %1160 : vector<1x1x128xf32> to vector<128xf32>
      %1162 = vector.shape_cast %1161 : vector<128xf32> to vector<1x128xf32>
      %1163 = vector.broadcast %1162 : vector<1x128xf32> to vector<16x128xf32>
      %1164 = arith.mulf %1159, %1163 : vector<16x128xf32>
      %1165 = arith.addf %1157, %1164 : vector<16x128xf32>
      %c16_451 = arith.constant 16 : index
      %c1_452 = arith.constant 1 : index
      %c0_453 = arith.constant 0 : index
      %1166 = vector.load %arg8[%c16_451, %c1_452, %c0_453] : memref<18x18x128xf32, #tpu.memory_space<vmem>>, vector<1x16x128xf32>
      %1167 = vector.shape_cast %1166 : vector<1x16x128xf32> to vector<16x128xf32>
      %1168 = vector.extract_strided_slice %22 {offsets = [1, 1, 0], sizes = [1, 1, 128], strides = [1, 1, 1]} : vector<3x3x128xf32> to vector<1x1x128xf32>
      %1169 = vector.shape_cast %1168 : vector<1x1x128xf32> to vector<128xf32>
      %1170 = vector.shape_cast %1169 : vector<128xf32> to vector<1x128xf32>
      %1171 = vector.broadcast %1170 : vector<1x128xf32> to vector<16x128xf32>
      %1172 = arith.mulf %1167, %1171 : vector<16x128xf32>
      %1173 = arith.addf %1165, %1172 : vector<16x128xf32>
      %c16_454 = arith.constant 16 : index
      %c2_455 = arith.constant 2 : index
      %c0_456 = arith.constant 0 : index
      %1174 = vector.load %arg8[%c16_454, %c2_455, %c0_456] : memref<18x18x128xf32, #tpu.memory_space<vmem>>, vector<1x16x128xf32>
      %1175 = vector.shape_cast %1174 : vector<1x16x128xf32> to vector<16x128xf32>
      %1176 = vector.extract_strided_slice %22 {offsets = [1, 2, 0], sizes = [1, 1, 128], strides = [1, 1, 1]} : vector<3x3x128xf32> to vector<1x1x128xf32>
      %1177 = vector.shape_cast %1176 : vector<1x1x128xf32> to vector<128xf32>
      %1178 = vector.shape_cast %1177 : vector<128xf32> to vector<1x128xf32>
      %1179 = vector.broadcast %1178 : vector<1x128xf32> to vector<16x128xf32>
      %1180 = arith.mulf %1175, %1179 : vector<16x128xf32>
      %1181 = arith.addf %1173, %1180 : vector<16x128xf32>
      %c17 = arith.constant 17 : index
      %c0_457 = arith.constant 0 : index
      %c0_458 = arith.constant 0 : index
      %1182 = vector.load %arg8[%c17, %c0_457, %c0_458] : memref<18x18x128xf32, #tpu.memory_space<vmem>>, vector<1x16x128xf32>
      %1183 = vector.shape_cast %1182 : vector<1x16x128xf32> to vector<16x128xf32>
      %1184 = vector.extract_strided_slice %22 {offsets = [2, 0, 0], sizes = [1, 1, 128], strides = [1, 1, 1]} : vector<3x3x128xf32> to vector<1x1x128xf32>
      %1185 = vector.shape_cast %1184 : vector<1x1x128xf32> to vector<128xf32>
      %1186 = vector.shape_cast %1185 : vector<128xf32> to vector<1x128xf32>
      %1187 = vector.broadcast %1186 : vector<1x128xf32> to vector<16x128xf32>
      %1188 = arith.mulf %1183, %1187 : vector<16x128xf32>
      %1189 = arith.addf %1181, %1188 : vector<16x128xf32>
      %c17_459 = arith.constant 17 : index
      %c1_460 = arith.constant 1 : index
      %c0_461 = arith.constant 0 : index
      %1190 = vector.load %arg8[%c17_459, %c1_460, %c0_461] : memref<18x18x128xf32, #tpu.memory_space<vmem>>, vector<1x16x128xf32>
      %1191 = vector.shape_cast %1190 : vector<1x16x128xf32> to vector<16x128xf32>
      %1192 = vector.extract_strided_slice %22 {offsets = [2, 1, 0], sizes = [1, 1, 128], strides = [1, 1, 1]} : vector<3x3x128xf32> to vector<1x1x128xf32>
      %1193 = vector.shape_cast %1192 : vector<1x1x128xf32> to vector<128xf32>
      %1194 = vector.shape_cast %1193 : vector<128xf32> to vector<1x128xf32>
      %1195 = vector.broadcast %1194 : vector<1x128xf32> to vector<16x128xf32>
      %1196 = arith.mulf %1191, %1195 : vector<16x128xf32>
      %1197 = arith.addf %1189, %1196 : vector<16x128xf32>
      %c17_462 = arith.constant 17 : index
      %c2_463 = arith.constant 2 : index
      %c0_464 = arith.constant 0 : index
      %1198 = vector.load %arg8[%c17_462, %c2_463, %c0_464] : memref<18x18x128xf32, #tpu.memory_space<vmem>>, vector<1x16x128xf32>
      %1199 = vector.shape_cast %1198 : vector<1x16x128xf32> to vector<16x128xf32>
      %1200 = vector.extract_strided_slice %22 {offsets = [2, 2, 0], sizes = [1, 1, 128], strides = [1, 1, 1]} : vector<3x3x128xf32> to vector<1x1x128xf32>
      %1201 = vector.shape_cast %1200 : vector<1x1x128xf32> to vector<128xf32>
      %1202 = vector.shape_cast %1201 : vector<128xf32> to vector<1x128xf32>
      %1203 = vector.broadcast %1202 : vector<1x128xf32> to vector<16x128xf32>
      %1204 = arith.mulf %1199, %1203 : vector<16x128xf32>
      %1205 = arith.addf %1197, %1204 : vector<16x128xf32>
      %c240 = arith.constant 240 : index
      %c0_465 = arith.constant 0 : index
      %1206 = vector.load %arg9[%c240, %c0_465] : memref<256x128xf32, #tpu.memory_space<vmem>>, vector<16x128xf32>
      tpu.vector_store %arg9[%c240, %c0_465], %1205 {strides = array<i32>} : memref<256x128xf32, #tpu.memory_space<vmem>>, vector<16x128xf32>,
    } else {
    }
    %3 = arith.index_cast %arg2 : i32 to index
    %c0 = arith.constant 0 : index
    %c0_1 = arith.constant 0 : index
    %4 = vector.load %arg5[%3, %c0, %c0_1] : memref<1x128x128xf32, #tpu.memory_space<vmem>>, vector<1x128x128xf32>
    %5 = vector.shape_cast %4 : vector<1x128x128xf32> to vector<128x128xf32>
    %6 = arith.index_cast %arg2 : i32 to index
    %c0_2 = arith.constant 0 : index
    %c0_3 = arith.constant 0 : index
    %7 = vector.load %arg6[%6, %c0_2, %c0_3] : memref<1x1x128xf32, #tpu.memory_space<vmem>>, vector<1x1x128xf32>
    %8 = vector.shape_cast %7 : vector<1x1x128xf32> to vector<1x128xf32>
    %c0_4 = arith.constant 0 : index
    %c0_5 = arith.constant 0 : index
    %9 = vector.load %arg9[%c0_4, %c0_5] : memref<256x128xf32, #tpu.memory_space<vmem>>, vector<256x128xf32>
    %cst = arith.constant dense<0.000000e+00> : vector<256x128xf32>
    %10 = tpu.matmul %9, %5, %cst {dimension_numbers = #tpu.dot_dimension_numbers<[1], [0], [0], [1], [0, 0, 1, 1], [], []>} : vector<256x128xf32>, vector<128x128xf32>, vector<256x128xf32> -> vector<256x128xf32>
    %11 = vector.broadcast %8 : vector<1x128xf32> to vector<256x128xf32>
    %12 = arith.addf %10, %11 : vector<256x128xf32>
    %13 = vector.shape_cast %12 : vector<256x128xf32> to vector<16x16x128xf32>
    %c0_6 = arith.constant 0 : index
    %c0_7 = arith.constant 0 : index
    %c0_8 = arith.constant 0 : index
    %c0_9 = arith.constant 0 : index
    %14 = vector.load %arg7[%c0_6, %c0_7, %c0_8, %c0_9] : memref<1x16x16x128xf32, #tpu.memory_space<vmem>>, vector<1x16x16x128xf32>
    %15 = vector.shape_cast %14 : vector<1x16x16x128xf32> to vector<16x16x128xf32>
    %16 = vector.shape_cast %13 : vector<16x16x128xf32> to vector<1x16x16x128xf32>
    tpu.vector_store %arg7[%c0_6, %c0_7, %c0_8, %c0_9], %16 {strides = array<i32>} : memref<1x16x16x128xf32, #tpu.memory_space<vmem>>, vector<1x16x16x128xf32>,
    return
  }
  func.func @transform_1(%arg0: i32, %arg1: i32, %arg2: i32) -> (i32, i32, i32) {
    %c0_i32 = arith.constant 0 : i32
    %c0_i32_0 = arith.constant 0 : i32
    %c0_i32_1 = arith.constant 0 : i32
    %c0_i32_2 = arith.constant 0 : i32
    return %c0_i32, %c0_i32_0, %c0_i32_1 : i32, i32, i32
  }
  func.func @transform_2(%arg0: i32, %arg1: i32, %arg2: i32) -> (i32, i32, i32) {
    %c0_i32 = arith.constant 0 : i32
    %c0_i32_0 = arith.constant 0 : i32
    %c0_i32_1 = arith.constant 0 : i32
    %c0_i32_2 = arith.constant 0 : i32
    return %c0_i32, %c0_i32_0, %c0_i32_1 : i32, i32, i32
  }
  func.func @transform_3(%arg0: i32, %arg1: i32, %arg2: i32) -> (i32, i32, i32) {
    %c0_i32 = arith.constant 0 : i32
    %c0_i32_0 = arith.constant 0 : i32
    %c0_i32_1 = arith.constant 0 : i32
    %c0_i32_2 = arith.constant 0 : i32
    return %c0_i32, %c0_i32_0, %c0_i32_1 : i32, i32, i32
  }
  func.func @transform_4(%arg0: i32, %arg1: i32, %arg2: i32) -> (i32, i32, i32, i32) {
    %c0_i32 = arith.constant 0 : i32
    %c0_i32_0 = arith.constant 0 : i32
    return %arg0, %arg1, %c0_i32, %arg2 : i32, i32, i32, i32
  }
}

</mosaic_0001>

<bundles_post_ra>
// kernel: tpu_custom_call.1
= control target key start
LH: loop header
LB: loop body
LE: loop exit
PB: predicated region body
PF: predicated region fallthrough
CT: control target
= control target key end

     0   :  { %9 = vsyncpa [#allocation6], 0  ;;  %s3216_s0 = inlined_call_operand.vmem [shape: f32[2,18,18,128], index: 0, kind: input, shape index: {}]   ;;  %s3217_s1 = inlined_call_operand.vmem [shape: f32[3,3,128], index: 1, kind: input, shape index: {}]   ;;  %s3218_s2 = inlined_call_operand.vmem [shape: f32[1,128,128], index: 2, kind: input, shape index: {}]   ;;  %s3219_s3 = inlined_call_operand.vmem [shape: f32[1,1,128], index: 3, kind: input, shape index: {}]   ;;  %s3220_s4 = inlined_call_operand.hbm [shape: f32[2,16,16,128], index: 4, kind: output, shape index: {}]  }
   0x1   :  { %11 = vsyncpa [#allocation6 + $0x1], 0  ;;  %s2130_s15 = smov 0   ;;  %s2132_s16 = smov 0  }
   0x2   :  { %s2134_s17 = smov 0   ;;  %s2136_s18 = smov 0  }
   0x3   :  { %s2138_s19 = smov 0   ;;  %s2140_s20 = smov 0  }
   0x4 LB: > { %s1756_s21 = sadd.s32 4294967295, %s2100_s20   ;;  %s1757_s22 = sadd.s32 4294967294, %s2100_s20   ;;  %s2100_s20 = sphi %s2140_s20, %s17_s20   ;;  %s2096_s19 = sphi %s2138_s19, %s3227_s19   ;;  %s2092_s18 = sphi %s2136_s18, %s3226_s18   ;;  %s2088_s17 = sphi %s2134_s17, %s3225_s17   ;;  %s2084_s16 = sphi %s2132_s16, %s3224_s16   ;;  %s2080_s15 = sphi %s2130_s15, %s3223_s15  }
   0x5   : > { %s36_s23 = sadd.s32 1, %s2096_s19  ;;  %s110_s24 = sadd.s32 1, %s2088_s17 }
   0x6   : > { %p38_p0 = scmp.ge.s32.totalorder %s36_s23, 2  ;;  %p120_p1 = scmp.ne.s32.totalorder %s2088_s17, %s2084_s16 }
   0x7   : > { %p121_p2 = scmp.eq.s32.totalorder %s1756_s21, 1  ;;  %p126_p3 = scmp.ne.s32.totalorder %s2084_s16, %s2080_s15 }
   0x8   : > { %s3229_s23 = smov (%p38_p0, %s36_s23), 0  ;;  %p127_p5 = scmp.eq.s32.totalorder %s1757_s22, 1 }
   0x9   : > { %p2170_p4 = por %p121_p2, %p120_p1  ;;  %s103_s26 = ssub.s32 %s2096_s19, %s3229_s23 }
   0xa   : > { %p1759_p6 = scmp.ge.s32.totalorder %s2100_s20, 1  ;;  %p108_p7 = scmp.eq.s32.totalorder %s103_s26, 0 }
   0xb   : > { %p2177_p8 = por %p127_p5, %p126_p3  ;;  %p154_p9 = scmp.lt.s32.totalorder %s2100_s20, 3 }
   0xc   : > { %s2183_s28 = scalar_select %p108_p7, %s2088_s17, %s110_s24  }
   0xd   : > { %p155_p10 = pnand %p1759_p6, %p154_p9 }
   0xe   : > { %s170_s29 = sand.u32 (!%p155_p10), 1, %s2084_s16   ;;  %s180_s30 = smul.u32 (!%p155_p10), 432, %s2092_s18 }
   0xf   : > { %158 = sbr.rel (%p155_p10) target bundleno = 437 (0x1b5), region = 32  ;;  %s2189_s5 = sshll.u32 (!%p155_p10), %s170_s29, 8 }
  0x10   : > { %s2194_s8 = scalar_lea.vmem (!%p155_p10), %s3216_s0, %s180_s30  ;;  %s2251_s9 = scalar_lea.vmem (!%p155_p10), [#allocation5], %s2189_s5 }
  0x11   : > { %v254_v0 = vld [vmem:[%s2194_s8] sm:$0xff] (!%p155_p10)  ;;  %v256_v1 = vld [vmem:[%s2194_s8 + $0x8] sm:$0xff] (!%p155_p10)  ;;  %v258_v2 = vld [vmem:[%s2194_s8 + $0x18] sm:$0xff] (!%p155_p10) }
  0x12   : > { %255 = vst [vmem:[#allocation2] sm:$0xff] (!%p155_p10), %v254_v0  ;;  %257 = vst [vmem:[#allocation2 + $0x8] sm:$0xff] (!%p155_p10), %v256_v1  ;;  %v260_v3 = vld [vmem:[%s2194_s8 + $0x20] sm:$0xff] (!%p155_p10)  ;;  %v262_v4 = vld [vmem:[%s2194_s8 + $0x30] sm:$0xff] (!%p155_p10) }
  0x13   : > { %259 = vst [vmem:[#allocation2 + $0x18] sm:$0xff] (!%p155_p10), %v258_v2  ;;  %v264_v5 = vld [vmem:[%s2194_s8 + $0x38] sm:$0xff] (!%p155_p10)  ;;  %261 = vst [vmem:[#allocation2 + $0x20] sm:$0xff] (!%p155_p10), %v260_v3  ;;  %v266_v6 = vld [vmem:[%s2194_s8 + $0x48] sm:$0xff] (!%p155_p10) }
  0x14   : > { %263 = vst [vmem:[#allocation2 + $0x30] sm:$0xff] (!%p155_p10), %v262_v4  ;;  %265 = vst [vmem:[#allocation2 + $0x38] sm:$0xff] (!%p155_p10), %v264_v5  ;;  %v268_v7 = vld [vmem:[%s2194_s8 + $0x50] sm:$0xff] (!%p155_p10)  ;;  %v270_v8 = vld [vmem:[%s2194_s8 + $0x60] sm:$0xff] (!%p155_p10) }
  0x15   : > { %267 = vst [vmem:[#allocation2 + $0x48] sm:$0xff] (!%p155_p10), %v266_v6  ;;  %269 = vst [vmem:[#allocation2 + $0x50] sm:$0xff] (!%p155_p10), %v268_v7  ;;  %v272_v9 = vld [vmem:[%s2194_s8 + $0x68] sm:$0xff] (!%p155_p10)  ;;  %v274_v10 = vld [vmem:[%s2194_s8 + $0x78] sm:$0xff] (!%p155_p10) }
  0x16   : > { %271 = vst [vmem:[#allocation2 + $0x60] sm:$0xff] %v270_v8  ;;  %v276_v11 = vld [vmem:[%s2194_s8 + $0x80] sm:$0xff]  ;;  %273 = vst [vmem:[#allocation2 + $0x68] sm:$0xff] %v272_v9  ;;  %v278_v12 = vld [vmem:[%s2194_s8 + $0x90] sm:$0xff] }
  0x17   : > { %275 = vst [vmem:[#allocation2 + $0x78] sm:$0xff] %v274_v10  ;;  %277 = vst [vmem:[#allocation2 + $0x80] sm:$0xff] %v276_v11  ;;  %v280_v13 = vld [vmem:[%s2194_s8 + $0x98] sm:$0xff]  ;;  %v282_v14 = vld [vmem:[%s2194_s8 + $0xa8] sm:$0xff] }
  0x18   : > { %279 = vst [vmem:[#allocation2 + $0x90] sm:$0xff] %v278_v12  ;;  %281 = vst [vmem:[#allocation2 + $0x98] sm:$0xff] %v280_v13  ;;  %v284_v15 = vld [vmem:[%s2194_s8 + $0xb0] sm:$0xff]  ;;  %v286_v16 = vld [vmem:[%s2194_s8 + $0xc0] sm:$0xff] }
  0x19   : > { %283 = vst [vmem:[#allocation2 + $0xa8] sm:$0xff] %v282_v14  ;;  %v288_v17 = vld [vmem:[%s2194_s8 + $0xc8] sm:$0xff]  ;;  %285 = vst [vmem:[#allocation2 + $0xb0] sm:$0xff] %v284_v15  ;;  %v290_v18 = vld [vmem:[%s2194_s8 + $0xd8] sm:$0xff] }
  0x1a   : > { %287 = vst [vmem:[#allocation2 + $0xc0] sm:$0xff] %v286_v16  ;;  %289 = vst [vmem:[#allocation2 + $0xc8] sm:$0xff] %v288_v17  ;;  %v292_v19 = vld [vmem:[%s2194_s8 + $0xe0] sm:$0xff]  ;;  %v294_v20 = vld [vmem:[%s2194_s8 + $0xf0] sm:$0xff] }
  0x1b   : > { %291 = vst [vmem:[#allocation2 + $0xd8] sm:$0xff] %v290_v18  ;;  %293 = vst [vmem:[#allocation2 + $0xe0] sm:$0xff] %v292_v19  ;;  %v296_v21 = vld [vmem:[%s2194_s8 + $0xf8] sm:$0xff]  ;;  %v298_v22 = vld [vmem:[%s2194_s8 + $0x108] sm:$0xff] }
  0x1c   : > { %295 = vst [vmem:[#allocation2 + $0xf0] sm:$0xff] %v294_v20  ;;  %v300_v23 = vld [vmem:[%s2194_s8 + $0x110] sm:$0xff]  ;;  %297 = vst [vmem:[#allocation2 + $0xf8] sm:$0xff] %v296_v21  ;;  %v302_v24 = vld [vmem:[%s2194_s8 + $0x120] sm:$0xff] }
  0x1d   : > { %299 = vst [vmem:[#allocation2 + $0x108] sm:$0xff] %v298_v22  ;;  %301 = vst [vmem:[#allocation2 + $0x110] sm:$0xff] %v300_v23  ;;  %v304_v25 = vld [vmem:[%s2194_s8 + $0x128] sm:$0xff]  ;;  %v306_v26 = vld [vmem:[%s2194_s8 + $0x138] sm:$0xff] }
  0x1e   : > { %303 = vst [vmem:[#allocation2 + $0x120] sm:$0xff] %v302_v24  ;;  %305 = vst [vmem:[#allocation2 + $0x128] sm:$0xff] %v304_v25  ;;  %v308_v27 = vld [vmem:[%s2194_s8 + $0x140] sm:$0xff]  ;;  %v310_v28 = vld [vmem:[%s2194_s8 + $0x150] sm:$0xff] }
  0x1f   : > { %307 = vst [vmem:[#allocation2 + $0x138] sm:$0xff] %v306_v26  ;;  %v312_v29 = vld [vmem:[%s2194_s8 + $0x158] sm:$0xff]  ;;  %309 = vst [vmem:[#allocation2 + $0x140] sm:$0xff] %v308_v27  ;;  %v314_v30 = vld [vmem:[%s2194_s8 + $0x168] sm:$0xff] }
  0x20   : > { %311 = vst [vmem:[#allocation2 + $0x150] sm:$0xff] %v310_v28  ;;  %313 = vst [vmem:[#allocation2 + $0x158] sm:$0xff] %v312_v29  ;;  %v316_v31 = vld [vmem:[%s2194_s8 + $0x170] sm:$0xff]  ;;  %v318_v32 = vld [vmem:[%s2194_s8 + $0x180] sm:$0xff] }
  0x21   : > { %315 = vst [vmem:[#allocation2 + $0x168] sm:$0xff] %v314_v30  ;;  %317 = vst [vmem:[#allocation2 + $0x170] sm:$0xff] %v316_v31  ;;  %v320_v33 = vld [vmem:[%s2194_s8 + $0x188] sm:$0xff]  ;;  %v322_v34 = vld [vmem:[%s2194_s8 + $0x198] sm:$0xff] }
  0x22   : > { %319 = vst [vmem:[#allocation2 + $0x180] sm:$0xff] %v318_v32  ;;  %v324_v35 = vld [vmem:[%s2194_s8 + $0x1a0] sm:$0xff]  ;;  %321 = vst [vmem:[#allocation2 + $0x188] sm:$0xff] %v320_v33  ;;  %v1761_v36 = vld [vmem:[%s2194_s8 + $0x10] sm:$0x3] }
  0x23   : > { %323 = vst [vmem:[#allocation2 + $0x198] sm:$0xff] %v322_v34  ;;  %325 = vst [vmem:[#allocation2 + $0x1a0] sm:$0xff] %v324_v35  ;;  %v1762_v37 = vld [vmem:[%s2194_s8 + $0x28] sm:$0x3]  ;;  %v1763_v38 = vld [vmem:[%s2194_s8 + $0x40] sm:$0x3] }
  0x24   : > { %336 = vst [vmem:[#allocation2 + $0x10] sm:$0x3] %v1761_v36  ;;  %338 = vst [vmem:[#allocation2 + $0x28] sm:$0x3] %v1762_v37  ;;  %v1764_v39 = vld [vmem:[%s2194_s8 + $0x58] sm:$0x3] }
  0x25   : > { %340 = vst [vmem:[#allocation2 + $0x40] sm:$0x3] %v1763_v38  ;;  %v1765_v40 = vld [vmem:[%s2194_s8 + $0x70] sm:$0x3]  ;;  %v1766_v41 = vld [vmem:[%s2194_s8 + $0x88] sm:$0x3] }
  0x26   : > { %342 = vst [vmem:[#allocation2 + $0x58] sm:$0x3] %v1764_v39  ;;  %344 = vst [vmem:[#allocation2 + $0x70] sm:$0x3] %v1765_v40  ;;  %v1767_v42 = vld [vmem:[%s2194_s8 + $0xa0] sm:$0x3] }
  0x27   : > { %346 = vst [vmem:[#allocation2 + $0x88] sm:$0x3] %v1766_v41  ;;  %v1768_v43 = vld [vmem:[%s2194_s8 + $0xb8] sm:$0x3]  ;;  %v1769_v44 = vld [vmem:[%s2194_s8 + $0xd0] sm:$0x3] }
  0x28   : > { %348 = vst [vmem:[#allocation2 + $0xa0] sm:$0x3] %v1767_v42  ;;  %350 = vst [vmem:[#allocation2 + $0xb8] sm:$0x3] %v1768_v43  ;;  %v1770_v45 = vld [vmem:[%s2194_s8 + $0xe8] sm:$0x3] }
  0x29   : > { %352 = vst [vmem:[#allocation2 + $0xd0] sm:$0x3] %v1769_v44  ;;  %v1771_v46 = vld [vmem:[%s2194_s8 + $0x100] sm:$0x3]  ;;  %v1772_v47 = vld [vmem:[%s2194_s8 + $0x118] sm:$0x3] }
  0x2a   : > { %354 = vst [vmem:[#allocation2 + $0xe8] sm:$0x3] %v1770_v45  ;;  %356 = vst [vmem:[#allocation2 + $0x100] sm:$0x3] %v1771_v46  ;;  %v1773_v48 = vld [vmem:[%s2194_s8 + $0x130] sm:$0x3] }
  0x2b   : > { %358 = vst [vmem:[#allocation2 + $0x118] sm:$0x3] %v1772_v47  ;;  %v1774_v49 = vld [vmem:[%s2194_s8 + $0x148] sm:$0x3]  ;;  %v1775_v50 = vld [vmem:[%s2194_s8 + $0x160] sm:$0x3] }
  0x2c   : > { %360 = vst [vmem:[#allocation2 + $0x130] sm:$0x3] %v1773_v48  ;;  %362 = vst [vmem:[#allocation2 + $0x148] sm:$0x3] %v1774_v49  ;;  %v1776_v51 = vld [vmem:[%s2194_s8 + $0x178] sm:$0x3] }
  0x2d   : > { %364 = vst [vmem:[#allocation2 + $0x160] sm:$0x3] %v1775_v50  ;;  %v1777_v52 = vld [vmem:[%s2194_s8 + $0x190] sm:$0x3]  ;;  %v1778_v53 = vld [vmem:[%s2194_s8 + $0x1a8] sm:$0x3] }
  0x2e   : > { %366 = vst [vmem:[#allocation2 + $0x178] sm:$0x3] %v1776_v51  ;;  %368 = vst [vmem:[#allocation2 + $0x190] sm:$0x3] %v1777_v52 }
  0x2f   : > { %370 = vst [vmem:[#allocation2 + $0x1a8] sm:$0x3] %v1778_v53 }
  0x30   : > { %374 = vsyncadd [#allocation4], 5184 }
  0x31   : > { %2072 = dma.done.wait [#allocation4], 5184 }
  0x32   : > { %2073 = vsyncadd [#allocation4], 4294962112  ;;  %v384_v54 = vlaneseq  ;;  %v1333_v56 = vld [vmem:[%s3218_s2] sm:$0xff]  ;;  %v1334_v57 = vld [vmem:[%s3218_s2 + $0x8] sm:$0xff]  ;;  %s1786_s7 = sshll.u32 %s2092_s18, 12  ;;  %s1664_s8 = sshll.u32 %s2251_s9, 4  ;;  %s3163_s8 = int_to_ptr.vmem [resolvable:$true] %s1664_s8 }
  0x33   : > { %v1335_v58 = vld [vmem:[%s3218_s2 + $0x10] sm:$0xff]  ;;  %v1915_v59 = vpack.c.bf16 %v1334_v57, %v1333_v56  ;;  %v1336_v60 = vld [vmem:[%s3218_s2 + $0x18] sm:$0xff]  ;;  %v1337_v62 = vld [vmem:[%s3218_s2 + $0x20] sm:$0xff]  ;;  %s3161_s12 = scalar_lea.hbm %s3220_s4, %s1786_s7  ;;  %s3170_s18 = scalar_lea.sflag [#allocation6], %s170_s29 }
  0x34   : > { %v385_v55 = vshrl.u32 %v384_v54, 7  ;;  %v1919_v61 = vpack.c.bf16 %v1336_v60, %v1335_v58  ;;  %v1338_v63 = vld [vmem:[%s3218_s2 + $0x28] sm:$0xff]  ;;  %v1339_v0 = vld [vmem:[%s3218_s2 + $0x30] sm:$0xff]  ;;  %v1340_v4 = vld [vmem:[%s3218_s2 + $0x38] sm:$0xff]  ;;  %s2020_s13 = scalar_lea.vmem %s3163_s8, 4096  ;;  %s2102_s14 = smov [#allocation5]  }
  0x35   : > { %1916 = vmatprep.subr.bf16.mxu0 %v1915_v59  ;;  %1947 = vmatprep.subr.bf16.mxu1 %v1915_v59  ;;  %v1341_v5 = vld [vmem:[%s3218_s2 + $0x40] sm:$0xff]  ;;  %v1342_v6 = vld [vmem:[%s3218_s2 + $0x48] sm:$0xff]  ;;  %v1343_v7 = vld [vmem:[%s3218_s2 + $0x50] sm:$0xff]  ;;  %v1923_v10 = vpack.c.bf16 %v1338_v63, %v1337_v62  ;;  %v2301_v14 = vpack.c.bf16 %v1340_v4, %v1339_v0  ;;  %p2021_p11 = scmp.ne.s32.totalorder %s3163_s8, %s2020_s13  ;;  %s2024_s21 = sshll.u32 %s2102_s14, 4  ;;  %s2025_s21 = int_to_ptr.vmem [resolvable:$false] %s2024_s21 }
  0x36   : > { %v386_v1 = vsub.s32 0, %v385_v55  ;;  %v396_v2 = vsub.s32 1, %v385_v55  ;;  %v406_v3 = vsub.s32 2, %v385_v55  ;;  %1918 = vmatpush3.bf16.msra.mxu0 %v1915_v59  ;;  %1955 = vmatpush3.bf16.msra.mxu1 %v1915_v59  ;;  %v1344_v8 = vld [vmem:[%s3218_s2 + $0x58] sm:$0xff]  ;;  %v1345_v9 = vld [vmem:[%s3218_s2 + $0x60] sm:$0xff]  ;;  %v1346_v11 = vld [vmem:[%s3218_s2 + $0x68] sm:$0xff]  ;;  %v2312_v21 = vpack.c.bf16 %v1342_v6, %v1341_v5  ;;  %p2027_p0 = scmp.lt.s32.totalorder %s3163_s8, %s2025_s21 }
  0x37   : > { %1920 = vmatprep.subr.bf16.mxu0 %v1919_v61  ;;  %1948 = vmatprep.subr.bf16.mxu1 %v1919_v61  ;;  %v379_v12 = vld [vmem:[%s3217_s1] sm:$0x7]  ;;  %v380_v13 = vld [vmem:[%s3217_s1 + $0x4] sm:$0x7]  ;;  %v381_v15 = vld [vmem:[%s3217_s1 + $0x8] sm:$0x7]  ;;  %v2331_v32 = vpack.c.bf16 %v1344_v8, %v1343_v7  ;;  %v2333_v33 = vpack.c.bf16 %v1346_v11, %v1345_v9  ;;  %p2022_p12 = pnand %p2021_p11, %p2170_p4 }
  0x38   : > { %v382_v16 = vld [vmem:[#allocation2] sm:$0xff]  ;;  %v2306_v17 = vrot.slane %v379_v12, %v386_v1  ;;  %v2308_v19 = vrot.slane %v379_v12, %v396_v2  ;;  %v2310_v20 = vrot.slane %v379_v12, %v406_v3  ;;  %v2314_v23 = vld [vmem:[#allocation2 + $0x18] sm:$0xff]  ;;  %v2316_v24 = vrot.slane %v380_v13, %v386_v1  ;;  %v1347_v27 = vld [vmem:[%s3218_s2 + $0x70] sm:$0xff]  ;;  %s2026_s22 = scalar_lea.vmem %s2025_s21, 8192 }
  0x39   : > { %v392_v18 = vld [vmem:[#allocation2 + $0x1] sm:$0xff]  ;;  %v2318_v25 = vrot.slane %v380_v13, %v396_v2  ;;  %v2320_v26 = vrot.slane %v380_v13, %v406_v3  ;;  %v1348_v28 = vld [vmem:[%s3218_s2 + $0x78] sm:$0xff]  ;;  %v2335_v34 = vrot.slane %v381_v15, %v386_v1  ;;  %v2339_v39 = vrot.slane %v381_v15, %v396_v2  ;;  %v2351_v46 = vld [vmem:[#allocation2 + $0x30] sm:$0xff]  ;;  %p2023_p13 = pneg %p2022_p12  ;;  %p2028_p1 = scmp.lt.s32.totalorder %s2026_s22, %s2020_s13 }
  0x3a   : > { %v402_v22 = vld [vmem:[#allocation2 + $0x2] sm:$0xff]  ;;  %1922 = vmatpush3.bf16.msra.mxu0 %v1919_v61  ;;  %1956 = vmatpush3.bf16.msra.mxu1 %v1919_v61  ;;  %v388_v29 = vmul.f32 %v2306_v17, %v382_v16  ;;  %v398_v30 = vmul.f32 %v2308_v19, %v392_v18  ;;  %v419_v38 = vmul.f32 %v2316_v24, %v2314_v23  ;;  %v2343_v42 = vld [vmem:[#allocation2 + $0xd8] sm:$0xff]  ;;  %v403_v61 = vld [vmem:[#allocation2 + $0xa] sm:$0xff] }
  0x3b   : > { %v408_v31 = vmul.f32 %v2310_v20, %v402_v22  ;;  %1924 = vmatprep.subr.bf16.mxu0 %v1923_v10  ;;  %1949 = vmatprep.subr.bf16.mxu1 %v1923_v10  ;;  %v875_v35 = vld [vmem:[#allocation2 + $0xc0] sm:$0xff]  ;;  %v2341_v40 = vrot.slane %v381_v15, %v406_v3  ;;  %v2345_v43 = vpack.c.bf16 %v1348_v28, %v1347_v27  ;;  %v2360_v53 = vld [vmem:[#allocation2 + $0x31] sm:$0xff]  ;;  %v383_v54 = vld [vmem:[#allocation2 + $0x8] sm:$0xff]  ;;  %p2029_p2 = por %p2028_p1, %p2027_p0 }
  0x3c   : > { %v881_v36 = vld [vmem:[#allocation2 + $0xc1] sm:$0xff]  ;;  %v400_v37 = vadd.f32 %v398_v30, %v388_v29  ;;  %v2347_v44 = vld [vmem:[#allocation2 + $0x19] sm:$0xff]  ;;  %v877_v47 = vmul.f32 %v875_v35, %v2306_v17  ;;  %v393_v55 = vld [vmem:[#allocation2 + $0x9] sm:$0xff]  ;;  %v450_v56 = vmul.f32 %v2335_v34, %v2351_v46  ;;  %v895_v59 = vmul.f32 %v2343_v42, %v2316_v24 }
  0x3d   : > { %v887_v41 = vld [vmem:[#allocation2 + $0xc2] sm:$0xff]  ;;  %v2349_v45 = vld [vmem:[#allocation2 + $0x1a] sm:$0xff]  ;;  %v883_v48 = vmul.f32 %v881_v36, %v2308_v19  ;;  %v429_v51 = vmul.f32 %v2318_v25, %v2347_v44  ;;  %v2366_v57 = vld [vmem:[#allocation2 + $0x32] sm:$0xff]  ;;  %v460_v63 = vmul.f32 %v2339_v39, %v2360_v53  ;;  %v389_v7 = vmul.f32 %v2306_v17, %v383_v54  ;;  %p2030_p3 = pnand %p2029_p2, %p2023_p13 }
  0x3e   : > { %v889_v49 = vmul.f32 %v887_v41, %v2310_v20  ;;  %1926 = vmatpush3.bf16.msra.mxu0 %v1923_v10  ;;  %1957 = vmatpush3.bf16.msra.mxu1 %v1923_v10  ;;  %v410_v50 = vadd.f32 %v408_v31, %v400_v37  ;;  %v439_v52 = vmul.f32 %v2320_v26, %v2349_v45  ;;  %v2370_v60 = vld [vmem:[#allocation2 + $0xd9] sm:$0xff]  ;;  %v2382_v5 = vld [vmem:[#allocation2 + $0xf0] sm:$0xff]  ;;  %v2395_v13 = vld [vmem:[#allocation2 + $0x21] sm:$0xff] }
  0x3f   : > { %1928 = vmatprep.subr.bf16.mxu0 %v2301_v14  ;;  %1950 = vmatprep.subr.bf16.mxu1 %v2301_v14  ;;  %v885_v58 = vadd.f32 %v883_v48, %v877_v47  ;;  %v470_v0 = vmul.f32 %v2341_v40, %v2366_v57  ;;  %v901_v1 = vmul.f32 %v2370_v60, %v2318_v25  ;;  %v2378_v2 = vld [vmem:[#allocation2 + $0x20] sm:$0xff]  ;;  %v2384_v6 = vld [vmem:[#allocation2 + $0xf1] sm:$0xff]  ;;  %v876_v15 = vld [vmem:[#allocation2 + $0xc8] sm:$0xff] }
  0x40   : > { %v421_v62 = vadd.f32 %v419_v38, %v410_v50  ;;  %v2380_v4 = vld [vmem:[#allocation2 + $0xda] sm:$0xff]  ;;  %v399_v8 = vmul.f32 %v2308_v19, %v393_v55  ;;  %v409_v9 = vmul.f32 %v2310_v20, %v403_v61  ;;  %v914_v12 = vmul.f32 %v2382_v5, %v2335_v34  ;;  %v882_v16 = vld [vmem:[#allocation2 + $0xc9] sm:$0xff] }
  0x41   : > { %v891_v3 = vadd.f32 %v889_v49, %v885_v58  ;;  %v907_v11 = vmul.f32 %v2380_v4, %v2320_v26  ;;  %v2401_v27 = vld [vmem:[#allocation2 + $0x22] sm:$0xff]  ;;  %v888_v28 = vld [vmem:[#allocation2 + $0xca] sm:$0xff]  ;;  %v920_v31 = vmul.f32 %v2384_v6, %v2339_v39  ;;  %v430_v35 = vmul.f32 %v2318_v25, %v2395_v13  ;;  %v2422_v55 = vld [vmem:[#allocation2 + $0x38] sm:$0xff] }
  0x42   : > { %1930 = vmatpush3.bf16.msra.mxu0 %v2301_v14  ;;  %1958 = vmatpush3.bf16.msra.mxu1 %v2301_v14  ;;  %v431_v10 = vadd.f32 %v429_v51, %v421_v62  ;;  %v401_v22 = vadd.f32 %v399_v8, %v389_v7  ;;  %v420_v14 = vmul.f32 %v2316_v24, %v2378_v2  ;;  %v2403_v29 = vld [vmem:[#allocation2 + $0xe0] sm:$0xff] }
  0x43   : > { %1932 = vmatprep.subr.bf16.mxu0 %v2312_v21  ;;  %1951 = vmatprep.subr.bf16.mxu1 %v2312_v21  ;;  %v897_v18 = vadd.f32 %v895_v59, %v891_v3  ;;  %v440_v36 = vmul.f32 %v2320_v26, %v2401_v27  ;;  %v878_v41 = vmul.f32 %v876_v15, %v2306_v17  ;;  %v2424_v58 = vld [vmem:[#allocation2 + $0x39] sm:$0xff] }
  0x44   : > { %v441_v30 = vadd.f32 %v439_v52, %v431_v10  ;;  %v411_v38 = vadd.f32 %v409_v9, %v401_v22  ;;  %v884_v47 = vmul.f32 %v882_v16, %v2308_v19  ;;  %v890_v49 = vmul.f32 %v888_v28, %v2310_v20  ;;  %v2420_v52 = vld [vmem:[#allocation2 + $0xf2] sm:$0xff]  ;;  %v2436_v10 = vld [vmem:[#allocation2 + $0xe2] sm:$0xff] }
  0x45   : > { %v903_v37 = vadd.f32 %v901_v1, %v897_v18  ;;  %v896_v50 = vmul.f32 %v2403_v29, %v2316_v24  ;;  %v451_v61 = vmul.f32 %v2335_v34, %v2422_v55  ;;  %v461_v62 = vmul.f32 %v2339_v39, %v2424_v58  ;;  %v2432_v1 = vld [vmem:[#allocation2 + $0xe1] sm:$0xff] }
  0x46   : > { %1934 = vmatpush3.bf16.msra.mxu0 %v2312_v21  ;;  %1959 = vmatpush3.bf16.msra.mxu1 %v2312_v21  ;;  %v452_v48 = vadd.f32 %v450_v56, %v441_v30  ;;  %v422_v54 = vadd.f32 %v420_v14, %v411_v38  ;;  %v886_v59 = vadd.f32 %v884_v47, %v878_v41  ;;  %v2446_v18 = vld [vmem:[#allocation2 + $0x3a] sm:$0xff] }
  0x47   : > { %1936 = vmatprep.subr.bf16.mxu0 %v2331_v32  ;;  %1952 = vmatprep.subr.bf16.mxu1 %v2331_v32  ;;  %v909_v51 = vadd.f32 %v907_v11, %v903_v37  ;;  %v926_v56 = vmul.f32 %v2420_v52, %v2341_v40  ;;  %v902_v9 = vmul.f32 %v2432_v1, %v2318_v25 }
  0x48   : > { %v462_v21 = vadd.f32 %v460_v63, %v452_v48  ;;  %v432_v7 = vadd.f32 %v430_v35, %v422_v54  ;;  %v892_v8 = vadd.f32 %v890_v49, %v886_v59  ;;  %v908_v11 = vmul.f32 %v2436_v10, %v2320_v26  ;;  %v2470_v48 = vld [vmem:[#allocation2 + $0xfa] sm:$0xff] }
  0x49   : > { %v916_v3 = vadd.f32 %v914_v12, %v909_v51  ;;  %v478_v15 = vmul.f32 %v2314_v23, %v2306_v17  ;;  %v484_v14 = vmul.f32 %v2347_v44, %v2308_v19  ;;  %v490_v23 = vmul.f32 %v2349_v45, %v2310_v20 }
  0x4a   : > { %1938 = vmatpush3.bf16.msra.mxu0 %v2331_v32  ;;  %1960 = vmatpush3.bf16.msra.mxu1 %v2331_v32  ;;  %v472_v63 = vadd.f32 %v470_v0, %v462_v21  ;;  %v442_v16 = vadd.f32 %v440_v36, %v432_v7  ;;  %v898_v22 = vadd.f32 %v896_v50, %v892_v8  ;;  %v2450_v0 = vld [vmem:[#allocation2 + $0xf8] sm:$0xff] }
  0x4b   : > { %1940 = vmatprep.subr.bf16.mxu0 %v2333_v33  ;;  %1953 = vmatprep.subr.bf16.mxu1 %v2333_v33  ;;  %v922_v12 = vadd.f32 %v920_v31, %v916_v3  ;;  %v471_v32 = vmul.f32 %v2341_v40, %v2446_v18  ;;  %v915_v31 = vmul.f32 %v2450_v0, %v2335_v34  ;;  %v2458_v36 = vld [vmem:[#allocation2 + $0xf9] sm:$0xff] }
  0x4c   : > { %1867 = vmatprep.mubr.f32.mxu0 %v472_v63  ;;  %v453_v30 = vadd.f32 %v451_v61, %v442_v16  ;;  %v904_v35 = vadd.f32 %v902_v9, %v898_v22  ;;  %v921_v37 = vmul.f32 %v2458_v36, %v2339_v39  ;;  %v486_v38 = vadd.f32 %v484_v14, %v478_v15  ;;  %v2492_v9 = vld [vmem:[#allocation2 + $0x49] sm:$0xff] }
  0x4d   : > { %v928_v28 = vadd.f32 %v926_v56, %v922_v12  ;;  %v496_v44 = vmul.f32 %v2351_v46, %v2316_v24  ;;  %v502_v47 = vmul.f32 %v2360_v53, %v2318_v25  ;;  %v934_v49 = vmul.f32 %v2343_v42, %v2306_v17  ;;  %v2484_v42 = vld [vmem:[#allocation2 + $0x48] sm:$0xff] }
  0x4e   : > { %1942 = vmatpush3.bf16.msra.mxu0 %v2333_v33  ;;  %1961 = vmatpush3.bf16.msra.mxu1 %v2333_v33  ;;  %v463_v45 = vadd.f32 %v461_v62, %v453_v30  ;;  %v910_v41 = vadd.f32 %v908_v11, %v904_v35  ;;  %v492_v33 = vadd.f32 %v490_v23, %v486_v38  ;;  %v2504_v14 = vld [vmem:[#allocation2 + $0x4a] sm:$0xff] }
  0x4f   : > { %1944 = vmatprep.subr.bf16.mxu0 %v2345_v43  ;;  %1954 = vmatprep.subr.bf16.mxu1 %v2345_v43  ;;  %v940_v50 = vmul.f32 %v2370_v60, %v2308_v19  ;;  %v946_v51 = vmul.f32 %v2380_v4, %v2310_v20  ;;  %v927_v21 = vmul.f32 %v2470_v48, %v2341_v40 }
  0x50   : > { %1891 = vmatprep.mubr.f32.mxu1 %v928_v28  ;;  %v473_v54 = vadd.f32 %v471_v32, %v463_v45  ;;  %v917_v59 = vadd.f32 %v915_v31, %v910_v41  ;;  %v508_v56 = vmul.f32 %v2366_v57, %v2320_v26  ;;  %v498_v61 = vadd.f32 %v496_v44, %v492_v33  ;;  %v2506_v28 = vld [vmem:[#allocation2 + $0x108] sm:$0xff] }
  0x51   : > { %v942_v62 = vadd.f32 %v940_v50, %v934_v49  ;;  %v952_v60 = vmul.f32 %v2382_v5, %v2316_v24  ;;  %v515_v3 = vmul.f32 %v2484_v42, %v2335_v34  ;;  %v958_v7 = vmul.f32 %v2384_v6, %v2318_v25  ;;  %v2518_v44 = vld [vmem:[#allocation2 + $0x109] sm:$0xff] }
  0x52   : > { %1946 = vmatpush3.bf16.msra.mxu0 %v2345_v43  ;;  %1962 = vmatpush3.bf16.msra.mxu1 %v2345_v43  ;;  %v923_v4 = vadd.f32 %v921_v37, %v917_v59  ;;  %v504_v8 = vadd.f32 %v502_v47, %v498_v61  ;;  %v479_v43 = vmul.f32 %v2378_v2, %v2306_v17 }
  0x53   : > { %v948_v63 = vadd.f32 %v946_v51, %v942_v62  ;;  %v485_v11 = vmul.f32 %v2395_v13, %v2308_v19  ;;  %v521_v12 = vmul.f32 %v2492_v9, %v2339_v39  ;;  %v964_v16 = vmul.f32 %v2420_v52, %v2320_v26 }
  0x54   : > { %v929_v15 = vadd.f32 %v927_v21, %v923_v4  ;;  %v491_v22 = vmul.f32 %v2401_v27, %v2310_v20  ;;  %v510_v32 = vadd.f32 %v508_v56, %v504_v8  ;;  %v497_v13 = vmul.f32 %v2422_v55, %v2316_v24  ;;  %v2532_v21 = vld [vmem:[#allocation2 + $0x50] sm:$0xff] }
  0x55   : > { %1868 = vmatmul.mubr.f32.vlgmr.msra.gmra.mrb[0].mxu0 %v473_v54  ;;  %v954_v23 = vadd.f32 %v952_v60, %v948_v63  ;;  %v487_v2 = vadd.f32 %v485_v11, %v479_v43  ;;  %v527_v30 = vmul.f32 %v2504_v14, %v2341_v40  ;;  %v971_v35 = vmul.f32 %v2506_v28, %v2335_v34  ;;  %v2530_v54 = vld [vmem:[#allocation2 + $0x10a] sm:$0xff]  ;;  %v2544_v8 = vld [vmem:[#allocation2 + $0x52] sm:$0xff] }
  0x56   : > { %1892 = vmatmul.mubr.f32.vlgmr.msra.gmra.mrb[0].mxu1 %v929_v15  ;;  %v503_v27 = vmul.f32 %v2424_v58, %v2318_v25  ;;  %v935_v31 = vmul.f32 %v2403_v29, %v2306_v17  ;;  %v517_v37 = vadd.f32 %v515_v3, %v510_v32  ;;  %v941_v41 = vmul.f32 %v2432_v1, %v2308_v19 }
  0x57   : > { %v960_v38 = vadd.f32 %v958_v7, %v954_v23  ;;  %v493_v45 = vadd.f32 %v491_v22, %v487_v2  ;;  %v977_v47 = vmul.f32 %v2518_v44, %v2339_v39  ;;  %v509_v33 = vmul.f32 %v2446_v18, %v2320_v26  ;;  %v2542_v7 = vld [vmem:[#allocation2 + $0x51] sm:$0xff] }
  0x58   : > { %v947_v49 = vmul.f32 %v2436_v10, %v2310_v20  ;;  %v953_v29 = vmul.f32 %v2450_v0, %v2316_v24  ;;  %v523_v50 = vadd.f32 %v521_v12, %v517_v37  ;;  %v943_v1 = vadd.f32 %v941_v41, %v935_v31  ;;  %v2556_v23 = vld [vmem:[#allocation2 + $0x110] sm:$0xff] }
  0x59   : > { %v966_v51 = vadd.f32 %v964_v16, %v960_v38  ;;  %v499_v59 = vadd.f32 %v497_v13, %v493_v45  ;;  %v983_v56 = vmul.f32 %v2530_v54, %v2341_v40  ;;  %v516_v61 = vmul.f32 %v2532_v21, %v2335_v34  ;;  %v2558_v2 = vld [vmem:[#allocation2 + $0x111] sm:$0xff] }
  0x5a   : > { %v959_v10 = vmul.f32 %v2458_v36, %v2318_v25  ;;  %v535_v62 = vmul.f32 %v2351_v46, %v2306_v17  ;;  %v529_v60 = vadd.f32 %v527_v30, %v523_v50  ;;  %v949_v63 = vadd.f32 %v947_v49, %v943_v1  ;;  %v2568_v38 = vld [vmem:[#allocation2 + $0x112] sm:$0xff] }
  0x5b   : > { %v973_v4 = vadd.f32 %v971_v35, %v966_v51  ;;  %v505_v3 = vadd.f32 %v503_v27, %v499_v59  ;;  %v522_v43 = vmul.f32 %v2542_v7, %v2339_v39  ;;  %v528_v11 = vmul.f32 %v2544_v8, %v2341_v40  ;;  %v2580_v51 = vld [vmem:[#allocation2 + $0x60] sm:$0xff] }
  0x5c   : > { %v541_v15 = vmul.f32 %v2360_v53, %v2308_v19  ;;  %v547_v46 = vmul.f32 %v2366_v57, %v2310_v20  ;;  %1870 = vmatprep.mubr.f32.mxu0 %v529_v60  ;;  %v955_v22 = vadd.f32 %v953_v29, %v949_v63  ;;  %v965_v32 = vmul.f32 %v2470_v48, %v2320_v26 }
  0x5d   : > { %v979_v12 = vadd.f32 %v977_v47, %v973_v4  ;;  %v511_v16 = vadd.f32 %v509_v33, %v505_v3  ;;  %v972_v13 = vmul.f32 %v2556_v23, %v2335_v34  ;;  %v978_v53 = vmul.f32 %v2558_v2, %v2339_v39  ;;  %v2590_v4 = vld [vmem:[#allocation2 + $0x61] sm:$0xff] }
  0x5e   : > { %v543_v30 = vadd.f32 %v541_v15, %v535_v62  ;;  %v553_v57 = vmul.f32 %v2484_v42, %v2316_v24  ;;  %v961_v31 = vadd.f32 %v959_v10, %v955_v22  ;;  %v991_v37 = vmul.f32 %v2382_v5, %v2306_v17  ;;  %v2592_v3 = vld [vmem:[#allocation2 + $0x62] sm:$0xff] }
  0x5f   : > { %v985_v35 = vadd.f32 %v983_v56, %v979_v12  ;;  %v518_v27 = vadd.f32 %v516_v61, %v511_v16  ;;  %v559_v41 = vmul.f32 %v2492_v9, %v2318_v25  ;;  %v997_v47 = vmul.f32 %v2384_v6, %v2308_v19 }
  0x60   : > { %v549_v45 = vadd.f32 %v547_v46, %v543_v30  ;;  %v1003_v33 = vmul.f32 %v2420_v52, %v2310_v20  ;;  %v967_v29 = vadd.f32 %v965_v32, %v961_v31  ;;  %v984_v50 = vmul.f32 %v2568_v38, %v2341_v40  ;;  %v2604_v32 = vld [vmem:[#allocation2 + $0x120] sm:$0xff] }
  0x61   : > { %1894 = vmatprep.mubr.f32.mxu1 %v985_v35  ;;  %v524_v49 = vadd.f32 %v522_v43, %v518_v27  ;;  %v565_v5 = vmul.f32 %v2504_v14, %v2320_v26  ;;  %v572_v1 = vmul.f32 %v2580_v51, %v2335_v34  ;;  %v999_v56 = vadd.f32 %v997_v47, %v991_v37  ;;  %v2614_v31 = vld [vmem:[#allocation2 + $0x121] sm:$0xff] }
  0x62   : > { %v555_v59 = vadd.f32 %v553_v57, %v549_v45  ;;  %v1009_v6 = vmul.f32 %v2506_v28, %v2316_v24  ;;  %v974_v61 = vadd.f32 %v972_v13, %v967_v29  ;;  %v1015_v10 = vmul.f32 %v2518_v44, %v2318_v25 }
  0x63   : > { %v530_v52 = vadd.f32 %v528_v11, %v524_v49  ;;  %v536_v62 = vmul.f32 %v2422_v55, %v2306_v17  ;;  %v1005_v63 = vadd.f32 %v1003_v33, %v999_v56  ;;  %v542_v43 = vmul.f32 %v2424_v58, %v2308_v19 }
  0x64   : > { %v561_v60 = vadd.f32 %v559_v41, %v555_v59  ;;  %v548_v15 = vmul.f32 %v2446_v18, %v2310_v20  ;;  %v980_v11 = vadd.f32 %v978_v53, %v974_v61  ;;  %v578_v46 = vmul.f32 %v2590_v4, %v2339_v39  ;;  %v2628_v59 = vld [vmem:[#allocation2 + $0x68] sm:$0xff] }
  0x65   : > { %1871 = vmatmul.mubr.f32.gmra.mrb[2].mxu0 %v530_v52  ;;  %v584_v55 = vmul.f32 %v2592_v3, %v2341_v40  ;;  %v1021_v12 = vmul.f32 %v2530_v54, %v2320_v26  ;;  %v1011_v22 = vadd.f32 %v1009_v6, %v1005_v63  ;;  %v544_v13 = vadd.f32 %v542_v43, %v536_v62  ;;  %v2638_v62 = vld [vmem:[#allocation2 + $0x69] sm:$0xff] }
  0x66   : > { %v567_v16 = vadd.f32 %v565_v5, %v561_v60  ;;  %v554_v58 = vmul.f32 %v2532_v21, %v2316_v24  ;;  %v986_v18 = vadd.f32 %v984_v50, %v980_v11  ;;  %v1028_v53 = vmul.f32 %v2604_v32, %v2335_v34  ;;  %v2626_v50 = vld [vmem:[#allocation2 + $0x122] sm:$0xff]  ;;  %v2640_v60 = vld [vmem:[#allocation2 + $0x6a] sm:$0xff] }
  0x67   : > { %v560_v30 = vmul.f32 %v2542_v7, %v2318_v25  ;;  %v992_v57 = vmul.f32 %v2450_v0, %v2306_v17  ;;  %v1017_v27 = vadd.f32 %v1015_v10, %v1011_v22  ;;  %v550_v37 = vadd.f32 %v548_v15, %v544_v13  ;;  %v2652_v22 = vld [vmem:[#allocation2 + $0x128] sm:$0xff] }
  0x68   : > { %v574_v35 = vadd.f32 %v572_v1, %v567_v16  ;;  %v998_v45 = vmul.f32 %v2458_v36, %v2308_v19  ;;  %1895 = vmatmul.mubr.f32.gmra.mrb[2].mxu1 %v986_v18  ;;  %v1034_v41 = vmul.f32 %v2614_v31, %v2339_v39  ;;  %v566_v47 = vmul.f32 %v2544_v8, %v2320_v26  ;;  %v2654_v13 = vld [vmem:[#allocation2 + $0x129] sm:$0xff] }
  0x69   : > { %v1004_v33 = vmul.f32 %v2470_v48, %v2310_v20  ;;  %v1010_v0 = vmul.f32 %v2556_v23, %v2316_v24  ;;  %v1023_v29 = vadd.f32 %v1021_v12, %v1017_v27  ;;  %v556_v5 = vadd.f32 %v554_v58, %v550_v37  ;;  %v2664_v27 = vld [vmem:[#allocation2 + $0x12a] sm:$0xff] }
  0x6a   : > { %v580_v49 = vadd.f32 %v578_v46, %v574_v35  ;;  %v1000_v36 = vadd.f32 %v998_v45, %v992_v57  ;;  %v1040_v1 = vmul.f32 %v2626_v50, %v2341_v40  ;;  %v573_v56 = vmul.f32 %v2628_v59, %v2335_v34 }
  0x6b   : > { %v1016_v48 = vmul.f32 %v2558_v2, %v2318_v25  ;;  %v592_v6 = vmul.f32 %v2484_v42, %v2306_v17  ;;  %v1030_v61 = vadd.f32 %v1028_v53, %v1023_v29  ;;  %v562_v10 = vadd.f32 %v560_v30, %v556_v5  ;;  %v2676_v29 = vld [vmem:[#allocation2 + $0x78] sm:$0xff] }
  0x6c   : > { %v586_v52 = vadd.f32 %v584_v55, %v580_v49  ;;  %v1006_v63 = vadd.f32 %v1004_v33, %v1000_v36  ;;  %v579_v43 = vmul.f32 %v2638_v62, %v2339_v39  ;;  %v585_v15 = vmul.f32 %v2640_v60, %v2341_v40 }
  0x6d   : > { %v598_v11 = vmul.f32 %v2492_v9, %v2308_v19  ;;  %v604_v42 = vmul.f32 %v2504_v14, %v2310_v20  ;;  %v1036_v46 = vadd.f32 %v1034_v41, %v1030_v61  ;;  %v568_v55 = vadd.f32 %v566_v47, %v562_v10  ;;  %v2686_v61 = vld [vmem:[#allocation2 + $0x79] sm:$0xff] }
  0x6e   : > { %1873 = vmatprep.mubr.f32.mxu0 %v586_v52  ;;  %v1012_v12 = vadd.f32 %v1010_v0, %v1006_v63  ;;  %v1022_v16 = vmul.f32 %v2568_v38, %v2320_v26  ;;  %v1029_v58 = vmul.f32 %v2652_v22, %v2335_v34  ;;  %v1035_v9 = vmul.f32 %v2654_v13, %v2339_v39  ;;  %v2688_v10 = vld [vmem:[#allocation2 + $0x7a] sm:$0xff] }
  0x6f   : > { %v600_v18 = vadd.f32 %v598_v11, %v592_v6  ;;  %v610_v14 = vmul.f32 %v2580_v51, %v2316_v24  ;;  %v1042_v53 = vadd.f32 %v1040_v1, %v1036_v46  ;;  %v575_v30 = vadd.f32 %v573_v56, %v568_v55 }
  0x70   : > { %v1018_v57 = vadd.f32 %v1016_v48, %v1012_v12  ;;  %v1048_v35 = vmul.f32 %v2506_v28, %v2306_v17  ;;  %v616_v45 = vmul.f32 %v2590_v4, %v2318_v25  ;;  %v1054_v41 = vmul.f32 %v2518_v44, %v2308_v19 }
  0x71   : > { %v606_v37 = vadd.f32 %v604_v42, %v600_v18  ;;  %v1060_v47 = vmul.f32 %v2530_v54, %v2310_v20  ;;  %1897 = vmatprep.mubr.f32.mxu1 %v1042_v53  ;;  %v581_v33 = vadd.f32 %v579_v43, %v575_v30  ;;  %v1041_v49 = vmul.f32 %v2664_v27, %v2341_v40 }
  0x72   : > { %v1024_v0 = vadd.f32 %v1022_v16, %v1018_v57  ;;  %v622_v28 = vmul.f32 %v2592_v3, %v2320_v26  ;;  %v629_v36 = vmul.f32 %v2676_v29, %v2335_v34  ;;  %v1056_v1 = vadd.f32 %v1054_v41, %v1048_v35  ;;  %v2700_v16 = vld [vmem:[#allocation2 + $0x138] sm:$0xff] }
  0x73   : > { %v612_v5 = vadd.f32 %v610_v14, %v606_v37  ;;  %v1066_v44 = vmul.f32 %v2604_v32, %v2316_v24  ;;  %v587_v54 = vadd.f32 %v585_v15, %v581_v33  ;;  %v1072_v48 = vmul.f32 %v2614_v31, %v2318_v25  ;;  %v2710_v57 = vld [vmem:[#allocation2 + $0x139] sm:$0xff] }
  0x74   : > { %v1031_v56 = vadd.f32 %v1029_v58, %v1024_v0  ;;  %v593_v6 = vmul.f32 %v2532_v21, %v2306_v17  ;;  %v1062_v63 = vadd.f32 %v1060_v47, %v1056_v1  ;;  %v599_v43 = vmul.f32 %v2542_v7, %v2308_v19 }
  0x75   : > { %v618_v52 = vadd.f32 %v616_v45, %v612_v5  ;;  %v605_v11 = vmul.f32 %v2544_v8, %v2310_v20  ;;  %1874 = vmatmul.mubr.f32.gmra.mrb[4].mxu0 %v587_v54  ;;  %v635_v42 = vmul.f32 %v2686_v61, %v2339_v39  ;;  %v641_v21 = vmul.f32 %v2688_v10, %v2341_v40  ;;  %v2724_v5 = vld [vmem:[#allocation2 + $0x80] sm:$0xff] }
  0x76   : > { %v1037_v15 = vadd.f32 %v1035_v9, %v1031_v56  ;;  %v1078_v46 = vmul.f32 %v2626_v50, %v2320_v26  ;;  %v1068_v12 = vadd.f32 %v1066_v44, %v1062_v63  ;;  %v601_v58 = vadd.f32 %v599_v43, %v593_v6  ;;  %v2734_v6 = vld [vmem:[#allocation2 + $0x81] sm:$0xff] }
  0x77   : > { %v624_v55 = vadd.f32 %v622_v28, %v618_v52  ;;  %v611_v7 = vmul.f32 %v2628_v59, %v2316_v24  ;;  %v1085_v9 = vmul.f32 %v2700_v16, %v2335_v34  ;;  %v617_v18 = vmul.f32 %v2638_v62, %v2318_v25  ;;  %v2736_v52 = vld [vmem:[#allocation2 + $0x82] sm:$0xff] }
  0x78   : > { %v1043_v8 = vadd.f32 %v1041_v49, %v1037_v15  ;;  %v1049_v14 = vmul.f32 %v2556_v23, %v2306_v17  ;;  %v1074_v30 = vadd.f32 %v1072_v48, %v1068_v12  ;;  %v607_v35 = vadd.f32 %v605_v11, %v601_v58  ;;  %v2722_v49 = vld [vmem:[#allocation2 + $0x13a] sm:$0xff] }
  0x79   : > { %v631_v53 = vadd.f32 %v629_v36, %v624_v55  ;;  %v1055_v37 = vmul.f32 %v2558_v2, %v2308_v19  ;;  %v1091_v45 = vmul.f32 %v2710_v57, %v2339_v39  ;;  %v623_v41 = vmul.f32 %v2640_v60, %v2320_v26  ;;  %v2748_v12 = vld [vmem:[#allocation2 + $0x140] sm:$0xff] }
  0x7a   : > { %1898 = vmatmul.mubr.f32.gmra.mrb[4].mxu1 %v1043_v8  ;;  %v1061_v47 = vmul.f32 %v2568_v38, %v2310_v20  ;;  %v1067_v23 = vmul.f32 %v2652_v22, %v2316_v24  ;;  %v1080_v0 = vadd.f32 %v1078_v46, %v1074_v30  ;;  %v613_v28 = vadd.f32 %v611_v7, %v607_v35  ;;  %v2750_v58 = vld [vmem:[#allocation2 + $0x141] sm:$0xff] }
  0x7b   : > { %v637_v33 = vadd.f32 %v635_v42, %v631_v53  ;;  %v1057_v2 = vadd.f32 %v1055_v37, %v1049_v14  ;;  %v1097_v36 = vmul.f32 %v2722_v49, %v2341_v40  ;;  %v630_v1 = vmul.f32 %v2724_v5, %v2335_v34  ;;  %v2760_v30 = vld [vmem:[#allocation2 + $0x142] sm:$0xff] }
  0x7c   : > { %v1073_v38 = vmul.f32 %v2654_v13, %v2318_v25  ;;  %v649_v44 = vmul.f32 %v2580_v51, %v2306_v17  ;;  %v1087_v56 = vadd.f32 %v1085_v9, %v1080_v0  ;;  %v619_v48 = vadd.f32 %v617_v18, %v613_v28  ;;  %v2772_v0 = vld [vmem:[#allocation2 + $0x90] sm:$0xff] }
  0x7d   : > { %v643_v54 = vadd.f32 %v641_v21, %v637_v33  ;;  %v1063_v63 = vadd.f32 %v1061_v47, %v1057_v2  ;;  %v636_v43 = vmul.f32 %v2734_v6, %v2339_v39  ;;  %v642_v11 = vmul.f32 %v2736_v52, %v2341_v40 }
  0x7e   : > { %v655_v15 = vmul.f32 %v2590_v4, %v2308_v19  ;;  %v661_v51 = vmul.f32 %v2592_v3, %v2310_v20  ;;  %v1093_v42 = vadd.f32 %v1091_v45, %v1087_v56  ;;  %v625_v21 = vadd.f32 %v623_v41, %v619_v48  ;;  %v2782_v56 = vld [vmem:[#allocation2 + $0x91] sm:$0xff] }
  0x7f   : > { %1876 = vmatprep.mubr.f32.mxu0 %v643_v54  ;;  %v1069_v46 = vadd.f32 %v1067_v23, %v1063_v63  ;;  %v1079_v55 = vmul.f32 %v2664_v27, %v2320_v26  ;;  %v1086_v7 = vmul.f32 %v2748_v12, %v2335_v34  ;;  %v1092_v4 = vmul.f32 %v2750_v58, %v2339_v39  ;;  %v2784_v48 = vld [vmem:[#allocation2 + $0x92] sm:$0xff] }
  0x80   : > { %v657_v8 = vadd.f32 %v655_v15, %v649_v44  ;;  %v667_v3 = vmul.f32 %v2676_v29, %v2316_v24  ;;  %v1099_v9 = vadd.f32 %v1097_v36, %v1093_v42  ;;  %v632_v18 = vadd.f32 %v630_v1, %v625_v21 }
  0x81   : > { %v1075_v14 = vadd.f32 %v1073_v38, %v1069_v46  ;;  %v1105_v53 = vmul.f32 %v2604_v32, %v2306_v17  ;;  %v673_v37 = vmul.f32 %v2686_v61, %v2318_v25  ;;  %v1111_v45 = vmul.f32 %v2614_v31, %v2308_v19 }
  0x82   : > { %v663_v35 = vadd.f32 %v661_v51, %v657_v8  ;;  %v1117_v41 = vmul.f32 %v2626_v50, %v2310_v20  ;;  %1900 = vmatprep.mubr.f32.mxu1 %v1099_v9  ;;  %v638_v47 = vadd.f32 %v636_v43, %v632_v18  ;;  %v1098_v33 = vmul.f32 %v2760_v30, %v2341_v40 }
  0x83   : > { %v1081_v23 = vadd.f32 %v1079_v55, %v1075_v14  ;;  %v679_v32 = vmul.f32 %v2688_v10, %v2320_v26  ;;  %v686_v2 = vmul.f32 %v2772_v0, %v2335_v34  ;;  %v1113_v36 = vadd.f32 %v1111_v45, %v1105_v53  ;;  %v2796_v55 = vld [vmem:[#allocation2 + $0x150] sm:$0xff] }
  0x84   : > { %v669_v28 = vadd.f32 %v667_v3, %v663_v35  ;;  %v1123_v31 = vmul.f32 %v2700_v16, %v2316_v24  ;;  %v644_v50 = vadd.f32 %v642_v11, %v638_v47  ;;  %v1129_v38 = vmul.f32 %v2710_v57, %v2318_v25  ;;  %v2806_v14 = vld [vmem:[#allocation2 + $0x151] sm:$0xff] }
  0x85   : > { %v1088_v1 = vadd.f32 %v1086_v7, %v1081_v23  ;;  %v650_v44 = vmul.f32 %v2628_v59, %v2306_v17  ;;  %v1119_v63 = vadd.f32 %v1117_v41, %v1113_v36  ;;  %v656_v43 = vmul.f32 %v2638_v62, %v2308_v19 }
  0x86   : > { %v675_v54 = vadd.f32 %v673_v37, %v669_v28  ;;  %v662_v15 = vmul.f32 %v2640_v60, %v2310_v20  ;;  %1877 = vmatmul.mubr.f32.gmra.mrb[6].mxu0 %v644_v50  ;;  %v692_v51 = vmul.f32 %v2782_v56, %v2339_v39  ;;  %v698_v59 = vmul.f32 %v2784_v48, %v2341_v40  ;;  %v2820_v28 = vld [vmem:[#allocation2 + $0x98] sm:$0xff] }
  0x87   : > { %v1094_v11 = vadd.f32 %v1092_v4, %v1088_v1  ;;  %v1135_v42 = vmul.f32 %v2722_v49, %v2320_v26  ;;  %v1125_v46 = vadd.f32 %v1123_v31, %v1119_v63  ;;  %v658_v7 = vadd.f32 %v656_v43, %v650_v44  ;;  %v2830_v44 = vld [vmem:[#allocation2 + $0x99] sm:$0xff] }
  0x88   : > { %v681_v21 = vadd.f32 %v679_v32, %v675_v54  ;;  %v668_v62 = vmul.f32 %v2724_v5, %v2316_v24  ;;  %v1142_v4 = vmul.f32 %v2796_v55, %v2335_v34  ;;  %v674_v8 = vmul.f32 %v2734_v6, %v2318_v25  ;;  %v2832_v54 = vld [vmem:[#allocation2 + $0x9a] sm:$0xff] }
  0x89   : > { %v1100_v60 = vadd.f32 %v1098_v33, %v1094_v11  ;;  %v1106_v3 = vmul.f32 %v2652_v22, %v2306_v17  ;;  %v1131_v18 = vadd.f32 %v1129_v38, %v1125_v46  ;;  %v664_v53 = vadd.f32 %v662_v15, %v658_v7  ;;  %v2818_v33 = vld [vmem:[#allocation2 + $0x152] sm:$0xff] }
  0x8a   : > { %v688_v9 = vadd.f32 %v686_v2, %v681_v21  ;;  %v1112_v35 = vmul.f32 %v2654_v13, %v2308_v19  ;;  %v1148_v37 = vmul.f32 %v2806_v14, %v2339_v39  ;;  %v680_v45 = vmul.f32 %v2736_v52, %v2320_v26  ;;  %v2844_v46 = vld [vmem:[#allocation2 + $0x158] sm:$0xff] }
  0x8b   : > { %1901 = vmatmul.mubr.f32.gmra.mrb[6].mxu1 %v1100_v60  ;;  %v1118_v41 = vmul.f32 %v2664_v27, %v2310_v20  ;;  %v1124_v22 = vmul.f32 %v2748_v12, %v2316_v24  ;;  %v1137_v23 = vadd.f32 %v1135_v42, %v1131_v18  ;;  %v670_v32 = vadd.f32 %v668_v62, %v664_v53  ;;  %v2846_v7 = vld [vmem:[#allocation2 + $0x159] sm:$0xff] }
  0x8c   : > { %v694_v47 = vadd.f32 %v692_v51, %v688_v9  ;;  %v1114_v13 = vadd.f32 %v1112_v35, %v1106_v3  ;;  %v1154_v2 = vmul.f32 %v2818_v33, %v2341_v40  ;;  %v687_v36 = vmul.f32 %v2820_v28, %v2335_v34  ;;  %v2856_v18 = vld [vmem:[#allocation2 + $0x15a] sm:$0xff] }
  0x8d   : > { %v1130_v27 = vmul.f32 %v2750_v58, %v2318_v25  ;;  %v706_v31 = vmul.f32 %v2676_v29, %v2306_v17  ;;  %v1144_v1 = vadd.f32 %v1142_v4, %v1137_v23  ;;  %v676_v38 = vadd.f32 %v674_v8, %v670_v32  ;;  %v2868_v23 = vld [vmem:[#allocation2 + $0xa8] sm:$0xff] }
  0x8e   : > { %v700_v50 = vadd.f32 %v698_v59, %v694_v47  ;;  %v1120_v63 = vadd.f32 %v1118_v41, %v1114_v13  ;;  %v693_v43 = vmul.f32 %v2830_v44, %v2339_v39  ;;  %v699_v15 = vmul.f32 %v2832_v54, %v2341_v40 }
  0x8f   : > { %v712_v11 = vmul.f32 %v2686_v61, %v2308_v19  ;;  %v718_v29 = vmul.f32 %v2688_v10, %v2310_v20  ;;  %v1150_v51 = vadd.f32 %v1148_v37, %v1144_v1  ;;  %v682_v59 = vadd.f32 %v680_v45, %v676_v38  ;;  %v2878_v1 = vld [vmem:[#allocation2 + $0xa9] sm:$0xff] }
  0x90   : > { %1879 = vmatprep.mubr.f32.mxu0 %v700_v50  ;;  %v1126_v42 = vadd.f32 %v1124_v22, %v1120_v63  ;;  %v1136_v21 = vmul.f32 %v2760_v30, %v2320_v26  ;;  %v1143_v62 = vmul.f32 %v2844_v46, %v2335_v34  ;;  %v1149_v61 = vmul.f32 %v2846_v7, %v2339_v39  ;;  %v2880_v38 = vld [vmem:[#allocation2 + $0xaa] sm:$0xff] }
  0x91   : > { %v714_v60 = vadd.f32 %v712_v11, %v706_v31  ;;  %v724_v10 = vmul.f32 %v2772_v0, %v2316_v24  ;;  %v1156_v4 = vadd.f32 %v1154_v2, %v1150_v51  ;;  %v689_v8 = vadd.f32 %v687_v36, %v682_v59 }
  0x92   : > { %v1132_v3 = vadd.f32 %v1130_v27, %v1126_v42  ;;  %v1162_v9 = vmul.f32 %v2700_v16, %v2306_v17  ;;  %v730_v35 = vmul.f32 %v2782_v56, %v2318_v25  ;;  %v1168_v37 = vmul.f32 %v2710_v57, %v2308_v19 }
  0x93   : > { %v720_v53 = vadd.f32 %v718_v29, %v714_v60  ;;  %v1174_v45 = vmul.f32 %v2722_v49, %v2310_v20  ;;  %1903 = vmatprep.mubr.f32.mxu1 %v1156_v4  ;;  %v695_v41 = vadd.f32 %v693_v43, %v689_v8  ;;  %v1155_v47 = vmul.f32 %v2856_v18, %v2341_v40 }
  0x94   : > { %v1138_v22 = vadd.f32 %v1136_v21, %v1132_v3  ;;  %v736_v16 = vmul.f32 %v2784_v48, %v2320_v26  ;;  %v743_v13 = vmul.f32 %v2868_v23, %v2335_v34  ;;  %v1170_v2 = vadd.f32 %v1168_v37, %v1162_v9  ;;  %v2892_v21 = vld [vmem:[#allocation2 + $0x168] sm:$0xff] }
  0x95   : > { %v726_v32 = vadd.f32 %v724_v10, %v720_v53  ;;  %v1180_v57 = vmul.f32 %v2796_v55, %v2316_v24  ;;  %v701_v49 = vadd.f32 %v699_v15, %v695_v41  ;;  %v1186_v27 = vmul.f32 %v2806_v14, %v2318_v25  ;;  %v2902_v3 = vld [vmem:[#allocation2 + $0x169] sm:$0xff] }
  0x96   : > { %v1145_v36 = vadd.f32 %v1143_v62, %v1138_v22  ;;  %v707_v31 = vmul.f32 %v2724_v5, %v2306_v17  ;;  %v1176_v63 = vadd.f32 %v1174_v45, %v1170_v2  ;;  %v713_v43 = vmul.f32 %v2734_v6, %v2308_v19 }
  0x97   : > { %v732_v50 = vadd.f32 %v730_v35, %v726_v32  ;;  %v719_v11 = vmul.f32 %v2736_v52, %v2310_v20  ;;  %1880 = vmatmul.mubr.f32.gmra.mrb[8].mxu0 %v701_v49  ;;  %v749_v29 = vmul.f32 %v2878_v1, %v2339_v39  ;;  %v755_v5 = vmul.f32 %v2880_v38, %v2341_v40  ;;  %v2916_v32 = vld [vmem:[#allocation2 + $0xb0] sm:$0xff] }
  0x98   : > { %v1151_v15 = vadd.f32 %v1149_v61, %v1145_v36  ;;  %v1192_v51 = vmul.f32 %v2818_v33, %v2320_v26  ;;  %v1182_v42 = vadd.f32 %v1180_v57, %v1176_v63  ;;  %v715_v62 = vadd.f32 %v713_v43, %v707_v31  ;;  %v2926_v31 = vld [vmem:[#allocation2 + $0xb1] sm:$0xff] }
  0x99   : > { %v738_v59 = vadd.f32 %v736_v16, %v732_v50  ;;  %v725_v6 = vmul.f32 %v2820_v28, %v2316_v24  ;;  %v1199_v61 = vmul.f32 %v2892_v21, %v2335_v34  ;;  %v731_v60 = vmul.f32 %v2830_v44, %v2318_v25  ;;  %v2928_v50 = vld [vmem:[#allocation2 + $0xb2] sm:$0xff] }
  0x9a   : > { %v1157_v52 = vadd.f32 %v1155_v47, %v1151_v15  ;;  %v1163_v10 = vmul.f32 %v2748_v12, %v2306_v17  ;;  %v1188_v8 = vadd.f32 %v1186_v27, %v1182_v42  ;;  %v721_v9 = vadd.f32 %v719_v11, %v715_v62  ;;  %v2914_v47 = vld [vmem:[#allocation2 + $0x16a] sm:$0xff] }
  0x9b   : > { %v745_v4 = vadd.f32 %v743_v13, %v738_v59  ;;  %v1169_v53 = vmul.f32 %v2750_v58, %v2308_v19  ;;  %v1205_v35 = vmul.f32 %v2902_v3, %v2339_v39  ;;  %v737_v37 = vmul.f32 %v2832_v54, %v2320_v26  ;;  %v2940_v42 = vld [vmem:[#allocation2 + $0x170] sm:$0xff] }
  0x9c   : > { %1904 = vmatmul.mubr.f32.gmra.mrb[8].mxu1 %v1157_v52  ;;  %v1175_v45 = vmul.f32 %v2760_v30, %v2310_v20  ;;  %v1181_v12 = vmul.f32 %v2844_v46, %v2316_v24  ;;  %v1194_v22 = vadd.f32 %v1192_v51, %v1188_v8  ;;  %v727_v16 = vadd.f32 %v725_v6, %v721_v9  ;;  %v2942_v62 = vld [vmem:[#allocation2 + $0x171] sm:$0xff] }
  0x9d   : > { %v751_v41 = vadd.f32 %v749_v29, %v745_v4  ;;  %v1171_v58 = vadd.f32 %v1169_v53, %v1163_v10  ;;  %v1211_v13 = vmul.f32 %v2914_v47, %v2341_v40  ;;  %v744_v2 = vmul.f32 %v2916_v32, %v2335_v34  ;;  %v2952_v8 = vld [vmem:[#allocation2 + $0x172] sm:$0xff] }
  0x9e   : > { %v1187_v30 = vmul.f32 %v2846_v7, %v2318_v25  ;;  %v763_v57 = vmul.f32 %v2772_v0, %v2306_v17  ;;  %v1201_v36 = vadd.f32 %v1199_v61, %v1194_v22  ;;  %v733_v27 = vadd.f32 %v731_v60, %v727_v16  ;;  %v2964_v22 = vld [vmem:[#allocation2 + $0xc0] sm:$0xff] }
  0x9f   : > { %v757_v49 = vadd.f32 %v755_v5, %v751_v41  ;;  %v1177_v63 = vadd.f32 %v1175_v45, %v1171_v58  ;;  %v750_v43 = vmul.f32 %v2926_v31, %v2339_v39  ;;  %v756_v11 = vmul.f32 %v2928_v50, %v2341_v40 }
  0xa0   : > { %v769_v15 = vmul.f32 %v2782_v56, %v2308_v19  ;;  %v775_v0 = vmul.f32 %v2784_v48, %v2310_v20  ;;  %v1207_v29 = vadd.f32 %v1205_v35, %v1201_v36  ;;  %v739_v5 = vadd.f32 %v737_v37, %v733_v27  ;;  %v2974_v36 = vld [vmem:[#allocation2 + $0xc1] sm:$0xff] }
  0xa1   : > { %1882 = vmatprep.mubr.f32.mxu0 %v757_v49  ;;  %v1183_v51 = vadd.f32 %v1181_v12, %v1177_v63  ;;  %v1193_v59 = vmul.f32 %v2856_v18, %v2320_v26  ;;  %v1200_v6 = vmul.f32 %v2940_v42, %v2335_v34  ;;  %v1206_v56 = vmul.f32 %v2942_v62, %v2339_v39  ;;  %v2976_v27 = vld [vmem:[#allocation2 + $0xc2] sm:$0xff] }
  0xa2   : > { %v771_v52 = vadd.f32 %v769_v15, %v763_v57  ;;  %v781_v48 = vmul.f32 %v2868_v23, %v2316_v24  ;;  %v1213_v61 = vadd.f32 %v1211_v13, %v1207_v29  ;;  %v746_v60 = vadd.f32 %v744_v2, %v739_v5 }
  0xa3   : > { %v1189_v10 = vadd.f32 %v1187_v30, %v1183_v51  ;;  %v1219_v4 = vmul.f32 %v2796_v55, %v2306_v17  ;;  %v787_v53 = vmul.f32 %v2878_v1, %v2318_v25  ;;  %v1225_v35 = vmul.f32 %v2806_v14, %v2308_v19 }
  0xa4   : > { %v777_v9 = vadd.f32 %v775_v0, %v771_v52  ;;  %v1231_v37 = vmul.f32 %v2818_v33, %v2310_v20  ;;  %1906 = vmatprep.mubr.f32.mxu1 %v1213_v61  ;;  %v752_v45 = vadd.f32 %v750_v43, %v746_v60  ;;  %v1212_v41 = vmul.f32 %v2952_v8, %v2341_v40 }
  0xa5   : > { %v1195_v12 = vadd.f32 %v1193_v59, %v1189_v10  ;;  %v793_v55 = vmul.f32 %v2880_v38, %v2320_v26  ;;  %v800_v58 = vmul.f32 %v2964_v22, %v2335_v34  ;;  %v1227_v13 = vadd.f32 %v1225_v35, %v1219_v4  ;;  %v2988_v59 = vld [vmem:[#allocation2 + $0x180] sm:$0xff] }
  0xa6   : > { %v783_v16 = vadd.f32 %v781_v48, %v777_v9  ;;  %v1237_v14 = vmul.f32 %v2892_v21, %v2316_v24  ;;  %v758_v33 = vadd.f32 %v756_v11, %v752_v45  ;;  %v1243_v30 = vmul.f32 %v2902_v3, %v2318_v25  ;;  %v1260_v10 = vld [vmem:[#allocation2 + $0x181] sm:$0xff] }
  0xa7   : > { %v1202_v2 = vadd.f32 %v1200_v6, %v1195_v12  ;;  %v764_v57 = vmul.f32 %v2820_v28, %v2306_v17  ;;  %v1233_v63 = vadd.f32 %v1231_v37, %v1227_v13  ;;  %v770_v43 = vmul.f32 %v2830_v44, %v2308_v19 }
  0xa8   : > { %v789_v49 = vadd.f32 %v787_v53, %v783_v16  ;;  %v776_v15 = vmul.f32 %v2832_v54, %v2310_v20  ;;  %1883 = vmatmul.mubr.f32.gmra.mrb[10].mxu0 %v758_v33  ;;  %v806_v0 = vmul.f32 %v2974_v36, %v2339_v39  ;;  %v812_v28 = vmul.f32 %v2976_v27, %v2341_v40  ;;  %v3009_v16 = vld [vmem:[#allocation2 + $0xc8] sm:$0xff] }
  0xa9   : > { %v1208_v11 = vadd.f32 %v1206_v56, %v1202_v2  ;;  %v1249_v29 = vmul.f32 %v2914_v47, %v2320_v26  ;;  %v1239_v51 = vadd.f32 %v1237_v14, %v1233_v63  ;;  %v772_v6 = vadd.f32 %v770_v43, %v764_v57  ;;  %v805_v57 = vld [vmem:[#allocation2 + $0xc9] sm:$0xff] }
  0xaa   : > { %v795_v5 = vadd.f32 %v793_v55, %v789_v49  ;;  %v782_v44 = vmul.f32 %v2916_v32, %v2316_v24  ;;  %v1256_v56 = vmul.f32 %v2988_v59, %v2335_v34  ;;  %v788_v52 = vmul.f32 %v2926_v31, %v2318_v25  ;;  %v3019_v49 = vld [vmem:[#allocation2 + $0xca] sm:$0xff] }
  0xab   : > { %v1214_v54 = vadd.f32 %v1212_v41, %v1208_v11  ;;  %v1220_v48 = vmul.f32 %v2844_v46, %v2306_v17  ;;  %v1245_v60 = vadd.f32 %v1243_v30, %v1239_v51  ;;  %v778_v4 = vadd.f32 %v776_v15, %v772_v6  ;;  %v3007_v41 = vld [vmem:[#allocation2 + $0x182] sm:$0xff] }
  0xac   : > { %v802_v61 = vadd.f32 %v800_v58, %v795_v5  ;;  %v1226_v9 = vmul.f32 %v2846_v7, %v2308_v19  ;;  %v1262_v53 = vmul.f32 %v1260_v10, %v2339_v39  ;;  %v794_v35 = vmul.f32 %v2928_v50, %v2320_v26  ;;  %v1255_v51 = vld [vmem:[#allocation2 + $0x188] sm:$0xff] }
  0xad   : > { %1907 = vmatmul.mubr.f32.gmra.mrb[10].mxu1 %v1214_v54  ;;  %v1232_v37 = vmul.f32 %v2856_v18, %v2310_v20  ;;  %v1238_v45 = vmul.f32 %v2940_v42, %v2316_v24  ;;  %v1251_v12 = vadd.f32 %v1249_v29, %v1245_v60  ;;  %v784_v55 = vadd.f32 %v782_v44, %v778_v4  ;;  %v3030_v6 = vld [vmem:[#allocation2 + $0x189] sm:$0xff] }
  0xae   : > { %v808_v46 = vadd.f32 %v806_v0, %v802_v61  ;;  %v1228_v7 = vadd.f32 %v1226_v9, %v1220_v48  ;;  %v1268_v58 = vmul.f32 %v3007_v41, %v2341_v40  ;;  %v801_v13 = vmul.f32 %v3009_v16, %v2335_v34  ;;  %v855_v61 = vld [vmem:[#allocation2 + $0xd8] sm:$0xff]  ;;  %v3039_v4 = vld [vmem:[#allocation2 + $0x18a] sm:$0xff] }
  0xaf   : > { %v1244_v18 = vmul.f32 %v2942_v62, %v2318_v25  ;;  %v820_v14 = vmul.f32 %v2868_v23, %v2306_v17  ;;  %v1258_v2 = vadd.f32 %v1256_v56, %v1251_v12  ;;  %v790_v30 = vadd.f32 %v788_v52, %v784_v55 }
  0xb0   : > { %v814_v33 = vadd.f32 %v812_v28, %v808_v46  ;;  %v1234_v63 = vadd.f32 %v1232_v37, %v1228_v7  ;;  %v807_v43 = vmul.f32 %v805_v57, %v2339_v39  ;;  %v813_v15 = vmul.f32 %v3019_v49, %v2341_v40  ;;  %v861_v7 = vld [vmem:[#allocation2 + $0xd9] sm:$0xff] }
  0xb1   : > { %v826_v11 = vmul.f32 %v2878_v1, %v2308_v19  ;;  %v832_v0 = vmul.f32 %v2880_v38, %v2310_v20  ;;  %v1264_v23 = vadd.f32 %v1262_v53, %v1258_v2  ;;  %v796_v28 = vadd.f32 %v794_v35, %v790_v30  ;;  %v1311_v30 = vld [vmem:[#allocation2 + $0x198] sm:$0xff] }
  0xb2   : > { %1885 = vmatprep.mubr.f32.mxu0 %v814_v33  ;;  %v1240_v29 = vadd.f32 %v1238_v45, %v1234_v63  ;;  %v1250_v5 = vmul.f32 %v2952_v8, %v2320_v26  ;;  %v1257_v44 = vmul.f32 %v1255_v51, %v2335_v34  ;;  %v1263_v54 = vmul.f32 %v3030_v6, %v2339_v39 }
  0xb3   : > { %v828_v56 = vadd.f32 %v826_v11, %v820_v14  ;;  %v838_v1 = vmul.f32 %v2964_v22, %v2316_v24  ;;  %v1270_v38 = vadd.f32 %v1268_v58, %v1264_v23  ;;  %v803_v52 = vadd.f32 %v801_v13, %v796_v28 }
  0xb4   : > { %v1246_v48 = vadd.f32 %v1244_v18, %v1240_v29  ;;  %v1276_v60 = vmul.f32 %v2892_v21, %v2306_v17  ;;  %v844_v53 = vmul.f32 %v2974_v36, %v2318_v25  ;;  %v1282_v35 = vmul.f32 %v2902_v3, %v2308_v19  ;;  %v867_v36 = vld [vmem:[#allocation2 + $0xda] sm:$0xff] }
  0xb5   : > { %v834_v9 = vadd.f32 %v832_v0, %v828_v56  ;;  %v1288_v37 = vmul.f32 %v2914_v47, %v2310_v20  ;;  %1909 = vmatprep.mubr.f32.mxu1 %v1270_v38  ;;  %v809_v22 = vadd.f32 %v807_v43, %v803_v52  ;;  %v1269_v46 = vmul.f32 %v3039_v4, %v2341_v40  ;;  %v1317_v0 = vld [vmem:[#allocation2 + $0x199] sm:$0xff] }
  0xb6   : > { %v1252_v45 = vadd.f32 %v1250_v5, %v1246_v48  ;;  %v850_v21 = vmul.f32 %v2976_v27, %v2320_v26  ;;  %v857_v55 = vmul.f32 %v855_v61, %v2335_v34  ;;  %v1284_v58 = vadd.f32 %v1282_v35, %v1276_v60  ;;  %v1323_v56 = vld [vmem:[#allocation2 + $0x19a] sm:$0xff] }
  0xb7   : > { %v840_v12 = vadd.f32 %v838_v1, %v834_v9  ;;  %v1294_v3 = vmul.f32 %v2988_v59, %v2316_v24  ;;  %v815_v13 = vadd.f32 %v813_v15, %v809_v22  ;;  %v1300_v18 = vmul.f32 %v1260_v10, %v2318_v25  ;;  %v862_v60 = vld [vmem:[#allocation2 + $0xe1] sm:$0xff] }
  0xb8   : > { %v1259_v47 = vadd.f32 %v1257_v44, %v1252_v45  ;;  %v821_v14 = vmul.f32 %v2916_v32, %v2306_v17  ;;  %v1290_v2 = vadd.f32 %v1288_v37, %v1284_v58  ;;  %v827_v27 = vmul.f32 %v2926_v31, %v2308_v19  ;;  %v868_v22 = vld [vmem:[#allocation2 + $0xe2] sm:$0xff] }
  0xb9   : > { %v846_v33 = vadd.f32 %v844_v53, %v840_v12  ;;  %v833_v63 = vmul.f32 %v2928_v50, %v2310_v20  ;;  %1886 = vmatmul.mubr.f32.gmra.mrb[12].mxu0 %v815_v13  ;;  %v863_v59 = vmul.f32 %v861_v7, %v2339_v39  ;;  %v869_v15 = vmul.f32 %v867_v36, %v2341_v40  ;;  %v1324_v58 = vld [vmem:[#allocation2 + $0x1a2] sm:$0xff] }
  0xba   : > { %v1265_v43 = vadd.f32 %v1263_v54, %v1259_v47  ;;  %v1306_v10 = vmul.f32 %v3007_v41, %v2320_v26  ;;  %v1296_v32 = vadd.f32 %v1294_v3, %v1290_v2  ;;  %v829_v23 = vadd.f32 %v827_v27, %v821_v14  ;;  %v856_v41 = vld [vmem:[#allocation2 + $0xe0] sm:$0xff] }
  0xbb   : > { %v852_v11 = vadd.f32 %v850_v21, %v846_v33  ;;  %v839_v28 = vmul.f32 %v3009_v16, %v2316_v24  ;;  %v1313_v29 = vmul.f32 %v1311_v30, %v2335_v34  ;;  %v845_v50 = vmul.f32 %v805_v57, %v2318_v25 }
  0xbc   : > { %v1271_v31 = vadd.f32 %v1269_v46, %v1265_v43  ;;  %v1277_v5 = vmul.f32 %v2940_v42, %v2306_v17  ;;  %v1302_v54 = vadd.f32 %v1300_v18, %v1296_v32  ;;  %v835_v1 = vadd.f32 %v833_v63, %v829_v23 }
  0xbd   : > { %v859_v44 = vadd.f32 %v857_v55, %v852_v11  ;;  %v1283_v38 = vmul.f32 %v2942_v62, %v2308_v19  ;;  %v1319_v52 = vmul.f32 %v1317_v0, %v2339_v39  ;;  %v851_v16 = vmul.f32 %v3019_v49, %v2320_v26  ;;  %v1318_v55 = vld [vmem:[#allocation2 + $0x1a1] sm:$0xff] }
  0xbe   : > { %1910 = vmatmul.mubr.f32.gmra.mrb[12].mxu1 %v1271_v31  ;;  %v1289_v57 = vmul.f32 %v2952_v8, %v2310_v20  ;;  %v1295_v48 = vmul.f32 %v1255_v51, %v2316_v24  ;;  %v1308_v42 = vadd.f32 %v1306_v10, %v1302_v54  ;;  %v841_v61 = vadd.f32 %v839_v28, %v835_v1  ;;  %v1312_v24 = vld [vmem:[#allocation2 + $0x1a0] sm:$0xff] }
  0xbf   : > { %v865_v17 = vadd.f32 %v863_v59, %v859_v44  ;;  %v1285_v9 = vadd.f32 %v1283_v38, %v1277_v5  ;;  %v1325_v53 = vmul.f32 %v1323_v56, %v2341_v40  ;;  %v858_v19 = vmul.f32 %v856_v41, %v2335_v34 }
  0xc0   : > { %v1301_v62 = vmul.f32 %v3030_v6, %v2318_v25  ;;  %v1315_v37 = vadd.f32 %v1313_v29, %v1308_v42  ;;  %v847_v49 = vadd.f32 %v845_v50, %v841_v61  ;;  %v864_v20 = vmul.f32 %v862_v60, %v2339_v39 }
  0xc1   : > { %v871_v35 = vadd.f32 %v869_v15, %v865_v17  ;;  %v1291_v45 = vadd.f32 %v1289_v57, %v1285_v9  ;;  %v1307_v21 = vmul.f32 %v3039_v4, %v2320_v26  ;;  %v870_v12 = vmul.f32 %v868_v22, %v2341_v40 }
  0xc2   : > { %v1321_v8 = vadd.f32 %v1319_v52, %v1315_v37  ;;  %v853_v51 = vadd.f32 %v851_v16, %v847_v49  ;;  %v1314_v36 = vmul.f32 %v1312_v24, %v2335_v34  ;;  %v1320_v47 = vmul.f32 %v1318_v55, %v2339_v39  ;;  %v3093_v34 = vld [vmem:[%s3219_s3] ss:$0 sm:$0xff] }
  0xc3   : > { %1888 = vmatprep.mubr.f32.mxu0 %v871_v35  ;;  %v1297_v46 = vadd.f32 %v1295_v48, %v1291_v45  ;;  %v1326_v26 = vmul.f32 %v1324_v58, %v2341_v40 }
  0xc4   : > { %v1327_v7 = vadd.f32 %v1325_v53, %v1321_v8  ;;  %v860_v25 = vadd.f32 %v858_v19, %v853_v51 }
  0xc5   : > { %v1303_v6 = vadd.f32 %v1301_v62, %v1297_v46 }
  0xc6   : > { %1912 = vmatprep.mubr.f32.mxu1 %v1327_v7  ;;  %v866_v3 = vadd.f32 %v864_v20, %v860_v25 }
  0xc7   : > { %v1309_v13 = vadd.f32 %v1307_v21, %v1303_v6 }
  0xc8   : > { %v872_v18 = vadd.f32 %v870_v12, %v866_v3 }
  0xc9   : > { %v1316_v14 = vadd.f32 %v1314_v36, %v1309_v13 }
  0xca   : > { %1889 = vmatmul.mubr.f32.gmra.mrb[14].mxu0 %v872_v18 }
  0xcb   : > { %v1322_v4 = vadd.f32 %v1320_v47, %v1316_v14 }
  0xcd   : > { %v1328_v33 = vadd.f32 %v1326_v26, %v1322_v4 }
  0xcf   : > { %1913 = vmatmul.mubr.f32.gmra.mrb[14].mxu1 %v1328_v33 }
 0x128   : > { %v1869_v2 = vpop.f32.mrb[0].mxu0 }
 0x129   : > { %v1461_v39 = vadd.f32 %v1869_v2, %v3093_v34  ;;  %v1455_v30 = vpop.f32.mrb[1].mxu0  ;;  %v1893_v27 = vpop.f32.mrb[0].mxu1 }
 0x12a   : > { %v1456_v40 = vadd.f32 %v3093_v34, %v1455_v30  ;;  %v1541_v63 = vadd.f32 %v1893_v27, %v3093_v34  ;;  %v1535_v43 = vpop.f32.mrb[1].mxu1 }
 0x12b   : > { %1615 = vst [vmem:[%s2251_s9 + $0x8] sm:$0xff] %v1461_v39  ;;  %v1536_v59 = vadd.f32 %v3093_v34, %v1535_v43 }
 0x12c   : > { %1614 = vst [vmem:[%s2251_s9] sm:$0xff] %v1456_v40  ;;  %1631 = vst [vmem:[%s2251_s9 + $0x88] sm:$0xff] %v1541_v63 }
 0x12d   : > { %1630 = vst [vmem:[%s2251_s9 + $0x80] sm:$0xff] %v1536_v59 }
 0x138   : > { %v1872_v15 = vpop.f32.mrb[2].mxu0 }
 0x139   : > { %v1471_v10 = vadd.f32 %v1872_v15, %v3093_v34  ;;  %v1465_v11 = vpop.f32.mrb[3].mxu0 }
 0x13a   : > { %v1466_v32 = vadd.f32 %v3093_v34, %v1465_v11 }
 0x13b   : > { %1617 = vst [vmem:[%s2251_s9 + $0x18] sm:$0xff] %v1471_v10  ;;  %v1896_v0 = vpop.f32.mrb[2].mxu1 }
 0x13c   : > { %1616 = vst [vmem:[%s2251_s9 + $0x10] sm:$0xff] %v1466_v32  ;;  %v1551_v23 = vadd.f32 %v1896_v0, %v3093_v34  ;;  %v1545_v28 = vpop.f32.mrb[3].mxu1 }
 0x13d   : > { %v1546_v31 = vadd.f32 %v3093_v34, %v1545_v28 }
 0x13e   : > { %1633 = vst [vmem:[%s2251_s9 + $0x98] sm:$0xff] %v1551_v23 }
 0x13f   : > { %1632 = vst [vmem:[%s2251_s9 + $0x90] sm:$0xff] %v1546_v31 }
 0x148   : > { %v1875_v29 = vpop.f32.mrb[4].mxu0 }
 0x149   : > { %v1481_v50 = vadd.f32 %v1875_v29, %v3093_v34  ;;  %v1475_v5 = vpop.f32.mrb[5].mxu0 }
 0x14a   : > { %v1476_v44 = vadd.f32 %v3093_v34, %v1475_v5 }
 0x14b   : > { %1619 = vst [vmem:[%s2251_s9 + $0x28] sm:$0xff] %v1481_v50 }
 0x14c   : > { %1618 = vst [vmem:[%s2251_s9 + $0x20] sm:$0xff] %v1476_v44 }
 0x14d   : > { %v1899_v54 = vpop.f32.mrb[4].mxu1 }
 0x14e   : > { %v1561_v56 = vadd.f32 %v1899_v54, %v3093_v34  ;;  %v1555_v1 = vpop.f32.mrb[5].mxu1 }
 0x14f   : > { %v1556_v41 = vadd.f32 %v3093_v34, %v1555_v1 }
 0x150   : > { %1635 = vst [vmem:[%s2251_s9 + $0xa8] sm:$0xff] %v1561_v56 }
 0x151   : > { %1634 = vst [vmem:[%s2251_s9 + $0xa0] sm:$0xff] %v1556_v41 }
 0x159   : > { %v1878_v38 = vpop.f32.mrb[6].mxu0 }
 0x15a   : > { %v1491_v52 = vadd.f32 %v1878_v38, %v3093_v34  ;;  %v1485_v16 = vpop.f32.mrb[7].mxu0 }
 0x15b   : > { %v1486_v57 = vadd.f32 %v3093_v34, %v1485_v16 }
 0x15c   : > { %1621 = vst [vmem:[%s2251_s9 + $0x38] sm:$0xff] %v1491_v52 }
 0x15d   : > { %1620 = vst [vmem:[%s2251_s9 + $0x30] sm:$0xff] %v1486_v57 }
 0x15e   : > { %v1902_v48 = vpop.f32.mrb[6].mxu1 }
 0x15f   : > { %v1571_v17 = vadd.f32 %v1902_v48, %v3093_v34  ;;  %v1565_v42 = vpop.f32.mrb[7].mxu1 }
 0x160   : > { %v1566_v61 = vadd.f32 %v3093_v34, %v1565_v42 }
 0x161   : > { %1637 = vst [vmem:[%s2251_s9 + $0xb8] sm:$0xff] %v1571_v17 }
 0x162   : > { %1636 = vst [vmem:[%s2251_s9 + $0xb0] sm:$0xff] %v1566_v61 }
 0x16a   : > { %v1881_v60 = vpop.f32.mrb[8].mxu0 }
 0x16b   : > { %v1501_v9 = vadd.f32 %v1881_v60, %v3093_v34  ;;  %v1495_v53 = vpop.f32.mrb[9].mxu0 }
 0x16c   : > { %v1496_v19 = vadd.f32 %v3093_v34, %v1495_v53 }
 0x16d   : > { %1623 = vst [vmem:[%s2251_s9 + $0x48] sm:$0xff] %v1501_v9 }
 0x16e   : > { %1622 = vst [vmem:[%s2251_s9 + $0x40] sm:$0xff] %v1496_v19 }
 0x16f   : > { %v1905_v62 = vpop.f32.mrb[8].mxu1 }
 0x170   : > { %v1581_v35 = vadd.f32 %v1905_v62, %v3093_v34  ;;  %v1575_v37 = vpop.f32.mrb[9].mxu1 }
 0x171   : > { %v1576_v49 = vadd.f32 %v3093_v34, %v1575_v37 }
 0x172   : > { %1639 = vst [vmem:[%s2251_s9 + $0xc8] sm:$0xff] %v1581_v35 }
 0x173   : > { %1638 = vst [vmem:[%s2251_s9 + $0xc0] sm:$0xff] %v1576_v49 }
 0x17b   : > { %v1884_v22 = vpop.f32.mrb[10].mxu0 }
 0x17c   : > { %v1511_v45 = vadd.f32 %v1884_v22, %v3093_v34  ;;  %v1505_v20 = vpop.f32.mrb[11].mxu0 }
 0x17d   : > { %v1506_v24 = vadd.f32 %v3093_v34, %v1505_v20 }
 0x17e   : > { %1625 = vst [vmem:[%s2251_s9 + $0x58] sm:$0xff] %v1511_v45 }
 0x17f   : > { %1624 = vst [vmem:[%s2251_s9 + $0x50] sm:$0xff] %v1506_v24 }
 0x180   : > { %v1908_v8 = vpop.f32.mrb[10].mxu1 }
 0x181   : > { %v1591_v51 = vadd.f32 %v1908_v8, %v3093_v34  ;;  %v1585_v46 = vpop.f32.mrb[11].mxu1 }
 0x182   : > { %v1586_v21 = vadd.f32 %v3093_v34, %v1585_v46 }
 0x183   : > { %1641 = vst [vmem:[%s2251_s9 + $0xd8] sm:$0xff] %v1591_v51 }
 0x184   : > { %1640 = vst [vmem:[%s2251_s9 + $0xd0] sm:$0xff] %v1586_v21 }
 0x18c   : > { %v1887_v12 = vpop.f32.mrb[12].mxu0 }
 0x18d   : > { %v1521_v55 = vadd.f32 %v1887_v12, %v3093_v34  ;;  %v1515_v7 = vpop.f32.mrb[13].mxu0 }
 0x18e   : > { %v1516_v25 = vadd.f32 %v3093_v34, %v1515_v7 }
 0x18f   : > { %1627 = vst [vmem:[%s2251_s9 + $0x68] sm:$0xff] %v1521_v55 }
 0x190   : > { %1626 = vst [vmem:[%s2251_s9 + $0x60] sm:$0xff] %v1516_v25 }
 0x191   : > { %v1911_v6 = vpop.f32.mrb[12].mxu1 }
 0x192   : > { %v1601_v36 = vadd.f32 %v1911_v6, %v3093_v34  ;;  %v1595_v58 = vpop.f32.mrb[13].mxu1 }
 0x193   : > { %v1596_v3 = vadd.f32 %v3093_v34, %v1595_v58 }
 0x194   : > { %1643 = vst [vmem:[%s2251_s9 + $0xe8] sm:$0xff] %v1601_v36 }
 0x195   : > { %1642 = vst [vmem:[%s2251_s9 + $0xe0] sm:$0xff] %v1596_v3 }
 0x19d   : > { %v1890_v13 = vpop.f32.mrb[14].mxu0 }
 0x19e   : > { %v1531_v47 = vadd.f32 %v1890_v13, %v3093_v34  ;;  %v1525_v18 = vpop.f32.mrb[15].mxu0 }
 0x19f   : > { %v1526_v14 = vadd.f32 %v3093_v34, %v1525_v18 }
 0x1a0   : > { %1629 = vst [vmem:[%s2251_s9 + $0x78] sm:$0xff] %v1531_v47 }
 0x1a1   : > { %1628 = vst [vmem:[%s2251_s9 + $0x70] sm:$0xff] %v1526_v14 }
 0x1a2   : > { %v1914_v26 = vpop.f32.mrb[14].mxu1 }
 0x1a3   : > { %v1611_v4 = vadd.f32 %v1914_v26, %v3093_v34  ;;  %v1605_v33 = vpop.f32.mrb[15].mxu1 }
 0x1a4   : > { %v1606_v2 = vadd.f32 %v3093_v34, %v1605_v33 }
 0x1a5   : > { %1645 = vst [vmem:[%s2251_s9 + $0xf8] sm:$0xff] %v1611_v4 }
 0x1a6   : > { %1644 = vst [vmem:[%s2251_s9 + $0xf0] sm:$0xff] %v1606_v2 }
 0x1a7   : > { %2033 = shalt.err (!%p2030_p3)
}
 0x1a8   : > { %s2034_s29 = scalar_lea.hbm %s3161_s12, 4096  ;;  %s2038_s26 = scalar_lea.hbm %s3220_s4, 8192 }
 0x1a9   : > { %p2035_p5 = scmp.ne.s32.totalorder %s3161_s12, %s2034_s29  ;;  %p2039_p9 = scmp.lt.u32.totalorder %s3161_s12, %s3220_s4 }
 0x1aa   : > { %p2040_p10 = scmp.lt.u32.totalorder %s2038_s26, %s2034_s29  ;;  %p2042_p12 = scmp.lt.u32.totalorder %s2034_s29, %s3161_s12 }
 0x1ab   : > { %p2036_p6 = pnand %p2035_p5, %p2170_p4 }
 0x1ac   : > { %p2041_p11 = por %p2040_p10, %p2039_p9 }
 0x1ad   : > { %p2037_p7 = pneg %p2036_p6 }
 0x1ae   : > { %p2043_p13 = por %p2042_p12, %p2041_p11 }
 0x1b0   : > { %p2044_p0 = pnand %p2043_p13, %p2037_p7 }
 0x1b2   : > { %2047 = shalt.err (!%p2044_p0)
}
 0x1b3   : > { %s2103_s6 = smov 128   ;;  %s2104_s7 = smov 8  }
 0x1b4   : > { %1963 = dma.vmem_to_hbm [thread:$0]  (%p2170_p4), %s3163_s8, 4096, %s3161_s12, %s3170_s18, %s2103_s6, %s2103_s6, %s2104_s7  }
 0x1b5 PF: > { %p1969_p1 = scmp.ge.s32.totalorder %s2100_s20, 2  ;;  %s1679_s10 = sand.u32 1, %s2080_s15  }
 0x1b6   : > { %s1680_s11 = scalar_lea.sflag [#allocation6], %s1679_s10 }
 0x1b7   : > { %p1966_p2 = pnand %p1969_p1, %p2177_p8 }
 0x1b9   : > { %2075 = dma.done.wait (!%p1966_p2), %s1680_s11, 4096  }
 0x1ba   : > { %2077 = vsyncadd (!%p1966_p2), %s1680_s11, 4294963200  ;;  %s17_s20 = sadd.s32 1, %s2100_s20   ;;  %s3223_s15 = smov %s2084_s16 }
 0x1bb   : > { %p14_p3 = scmp.ge.s32.totalorder %s17_s20, 4   ;;  %s3224_s16 = smov %s2088_s17 }
 0x1bc   : > { %s3225_s17 = smov %s2183_s28  ;;  %s3226_s18 = smov %s2096_s19 }
 0x1bd   : > { %s3227_s19 = smov %s3229_s23  ;;  %16 = sbr.rel (!%p14_p3) target bundleno = 4 (0x4), region = 139 }
 0x1c4   :  { %1685 = vsyncpa [#allocation6], 1 }
 0x1c5   :  { %1687 = vsyncpa [#allocation6 + $0x1], 1 }
 0x1c6   :  { %1688 = vsyncmov [#allocation4] }
 0x1c9   :  { %s1689_s25 = vpop.sfrf %1688 }
 0x1ca   :  { %p1785_p4 = scmp.ne.s32.totalorder %s1689_s25, 0 }
 0x1cc   :  { %1693 = shalt.err (%p1785_p4)  }

</bundles_post_ra>
